<compile_context>
chip_gen: v7x
topology: tpu7x:2x2x1
jax: 0.10.0
libtpu: 0.0.40
codegen_flags: <defaults>
</compile_context>

<pallas_src>
import math
import numpy as np

import jax
import jax.numpy as jnp
from jax.experimental import pallas as pl
from jax.experimental.pallas import tpu as pltpu


# Weights smaller than this skip the pallas_call entirely: the custom-call
# boundary forces a full HBM read+write, and for small tensors the dispatch
# alone dominates.  A plain `w * c` lets XLA fuse the scale into the consumer.
_FAST_PATH_BYTES = 1 * 1024 * 1024


def _sublane_multiple(dtype) -> int:
    # Sub-32-bit dtypes pack along sublanes; keep the row tile a multiple of
    # the packing factor so every vreg / DMA descriptor stays full.
    itemsize = jnp.dtype(dtype).itemsize
    return {4: 8, 2: 16, 1: 32}.get(itemsize, 8)


def _tpu_generation_params():
    """Return (max_block_bytes, vmem_limit_bytes, is_v7x), tuned per generation."""
    max_block = 4 * 1024 * 1024      # v5e/v6e: ~86% of HBM roofline at ~4 MiB tiles
    vmem_limit = 32 * 1024 * 1024    # double-buffered in+out = 16 MiB << 32 MiB
    is_v7x = False
    try:
        kind = jax.devices()[0].device_kind.lower()
        is_v7x = "v7" in kind
    except Exception:
        pass
    if not is_v7x:
        try:
            info = pltpu.get_tpu_info()
            vmem_cap = getattr(info, "vmem_capacity_bytes", None)
            # v7x has 64 MiB VMEM per TensorCore (v5e/v6e have 128 MiB).
            if vmem_cap is not None and vmem_cap <= 80 * 1024 * 1024:
                is_v7x = True
        except Exception:
            pass
    if is_v7x:
        # ~3.2 TB/s HBM per TC: amortize the fixed ~0.35 us/grid-step overhead
        # with larger tiles.  8 MiB blocks -> 32 MiB double-buffered footprint,
        # under the 48 MiB scoped limit and well clear of 64 MiB physical VMEM.
        max_block = 8 * 1024 * 1024
        vmem_limit = 48 * 1024 * 1024
    return max_block, vmem_limit, is_v7x


def _pick_blocks(rows: int, lane: int, dtype, max_block_bytes: int):
    """Pick (tm, tl): lane-dense, sublane-aligned blocks capped at max_block_bytes."""
    itemsize = jnp.dtype(dtype).itemsize
    sub = _sublane_multiple(dtype)
    # Lane block: keep the full lane width (maximally lane-dense stores) unless
    # even a `sub`-row stripe would blow the budget; halving keeps % 128 == 0.
    tl = lane
    while tl * itemsize * sub > max_block_bytes and tl % 256 == 0:
        tl //= 2
    # Row block: as many sublane-multiple rows as fit in the budget.
    cap_rows = max(sub, (max_block_bytes // (tl * itemsize)) // sub * sub)
    if rows <= sub:
        tm = rows  # block == full sublane extent (allowed by the tiling rule)
    else:
        tm = max(sub, min((rows // sub) * sub, cap_rows))
    return tm, tl


def _scale_kernel(c: float):
    """Kernel body: elementwise multiply of the whole tile by the scalar c."""

    def kernel(w_ref, o_ref):
        x = w_ref[...]
        # Multiply in f32 (keeps c exact for bf16/fp8 weights), cast back.
        # Free: the kernel is HBM/DMA-bound, VALU + cast slots idle under DMA.
        o_ref[...] = (x.astype(jnp.float32) * c).astype(o_ref.dtype)

    return kernel


def equalized_weight_forward(weight: jax.Array) -> jax.Array:
    """Pallas implementation of EqualizedWeight.forward().

    Returns weight * c with c = 1 / sqrt(prod(shape[1:])), same shape/dtype.
    """
    shape = weight.shape
    dtype = weight.dtype
    if len(shape) <= 1:
        return weight  # prod of empty trailing shape -> c == 1
    c = 1.0 / math.sqrt(float(np.prod(shape[1:])))

    nbytes = int(np.prod(shape)) * jnp.dtype(dtype).itemsize
    lane = int(shape[-1])

    # ---- Fast path --------------------------------------------------------
    # Small weights, non-float dtypes, or minor dims that are not a multiple
    # of 128 (ragged conv kernels): a plain fused multiply avoids the
    # custom-call boundary and all pad/slice/relayout HBM copies.
    if (nbytes < _FAST_PATH_BYTES
            or not jnp.issubdtype(dtype, jnp.floating)
            or lane % 128 != 0):
        # TODO(synk): when this weight feeds a matmul/conv, fold c into that
        # consumer kernel's epilogue instead of materializing weight * c.
        return (weight.astype(jnp.float32) * c).astype(dtype)

    # ---- Pallas path ------------------------------------------------------
    # Collapse leading dims only (minor dim preserved -> free reshape, never a
    # relayout copy) to a lane-dense 2-D slab.
    w2d = weight.reshape(-1, lane)
    rows = w2d.shape[0]

    max_block, vmem_limit, is_v7x = _tpu_generation_params()
    tm, tl = _pick_blocks(rows, lane, dtype, max_block)
    grid = (pl.cdiv(rows, tm), pl.cdiv(lane, tl))

    # v7x: shard row tiles across both TensorCores (per-TC HBM bandwidth);
    # single-TC v5e/v6e: plain "parallel" (neutral).
    row_sem = pltpu.CORE_PARALLEL if (is_v7x and grid[0] >= 2) else "parallel"

    out2d = pl.pallas_call(
        _scale_kernel(c),
        out_shape=jax.ShapeDtypeStruct((rows, lane), dtype),
        grid_spec=pltpu.PrefetchScalarGridSpec(
            num_scalar_prefetch=0,
            grid=grid,
            in_specs=[pl.BlockSpec((tm, tl), lambda i, j: (i, j))],
            out_specs=pl.BlockSpec((tm, tl), lambda i, j: (i, j)),
        ),
        compiler_params=pltpu.CompilerParams(
            dimension_semantics=(row_sem, "parallel"),
            vmem_limit_bytes=vmem_limit,
        ),
    )(w2d)
    return out2d.reshape(shape)


if __name__ == "__main__":
    key = jax.random.PRNGKey(0)
    k1, k2, k3, k4 = jax.random.split(key, 4)

    def ref(w):
        cw = 1.0 / math.sqrt(float(np.prod(w.shape[1:]))) if w.ndim > 1 else 1.0
        return np.asarray(w.astype(jnp.float32), dtype=np.float64) * cw

    # 1) Small linear-style weight [out, in] -> fast path (fused XLA multiply).
    w1 = jax.random.normal(k1, (32, 128), dtype=jnp.float32)
    o1 = jax.block_until_ready(equalized_weight_forward(w1))
    assert o1.shape == w1.shape and o1.dtype == w1.dtype
    np.testing.assert_allclose(np.asarray(o1), ref(w1), rtol=1e-6, atol=1e-6)

    # 2) Larger linear weight (8 MiB f32) -> Pallas path, multi-tile grid.
    w2 = jax.random.normal(k2, (2048, 1024), dtype=jnp.float32)
    o2 = jax.block_until_ready(equalized_weight_forward(w2))
    assert o2.shape == w2.shape and o2.dtype == w2.dtype
    np.testing.assert_allclose(np.asarray(o2), ref(w2), rtol=1e-6, atol=1e-6)

    # 3) Rank-3 bf16 weight with lane-dense minor dim -> Pallas path
    #    (leading dims collapsed for free, non-power-of-two lane width).
    w3 = jax.random.normal(k3, (8, 256, 640), dtype=jnp.bfloat16)
    o3 = jax.block_until_ready(equalized_weight_forward(w3))
    assert o3.shape == w3.shape and o3.dtype == w3.dtype
    np.testing.assert_allclose(
        np.asarray(o3.astype(jnp.float32), dtype=np.float64), ref(w3),
        rtol=1e-2, atol=1e-2)

    # 4) Conv-style ragged weight [O, I, kh, kw] -> fast path (no pad/slice).
    w4 = jax.random.normal(k4, (4, 3, 3, 3), dtype=jnp.float32)
    o4 = jax.block_until_ready(equalized_weight_forward(w4))
    assert o4.shape == w4.shape and o4.dtype == w4.dtype
    np.testing.assert_allclose(np.asarray(o4), ref(w4), rtol=1e-6, atol=1e-6)

    print("KERNEL_OK")
</pallas_src>

<mosaic_0001>
module attributes {stable_mosaic.version = 11 : i64} {
  func.func @kernel(%arg0: i32, %arg1: i32, %arg2: memref<1024x1024xf32, #tpu.memory_space<vmem>>, %arg3: memref<1024x1024xf32, #tpu.memory_space<vmem>>) attributes {dimension_semantics = [#tpu.dimension_semantics<parallel>, #tpu.dimension_semantics<parallel>], iteration_bounds = array<i64: 2, 1>, scalar_prefetch = 0 : i64, scratch_operands = 0 : i64, tpu.core_type = #tpu.core_type<tc>, window_params = [{transform_indices = @transform_0, window_bounds = array<i64: 1024, 1024>}, {transform_indices = @transform_1, window_bounds = array<i64: 1024, 1024>}]} {
    %c0 = arith.constant 0 : index
    %c0_0 = arith.constant 0 : index
    %0 = vector.load %arg2[%c0, %c0_0] : memref<1024x1024xf32, #tpu.memory_space<vmem>>, vector<1024x1024xf32>
    %cst = arith.constant 3.125000e-02 : f32
    %1 = vector.broadcast %cst : f32 to vector<1024x1024xf32>
    %2 = arith.mulf %0, %1 : vector<1024x1024xf32>
    %c0_1 = arith.constant 0 : index
    %c0_2 = arith.constant 0 : index
    %3 = vector.load %arg3[%c0_1, %c0_2] : memref<1024x1024xf32, #tpu.memory_space<vmem>>, vector<1024x1024xf32>
    tpu.vector_store %arg3[%c0_1, %c0_2], %2 {strides = array<i32>} : memref<1024x1024xf32, #tpu.memory_space<vmem>>, vector<1024x1024xf32>,
    return
  }
  func.func @transform_0(%arg0: i32, %arg1: i32) -> (i32, i32) {
    %c0_i32 = arith.constant 0 : i32
    return %arg0, %arg1 : i32, i32
  }
  func.func @transform_1(%arg0: i32, %arg1: i32) -> (i32, i32) {
    %c0_i32 = arith.constant 0 : i32
    return %arg0, %arg1 : i32, i32
  }
}

</mosaic_0001>

<bundles_post_ra>
// kernel: tpu_custom_call.1
= control target key start
LH: loop header
LB: loop body
LE: loop exit
PB: predicated region body
PF: predicated region fallthrough
CT: control target
= control target key end

     0   :  { %6 = vsyncpa [#allocation3], 0  ;;  %s5779_s0 = inlined_call_operand.hbm [shape: f32[2048,1024], index: 0, kind: input, shape index: {}]   ;;  %s5780_s1 = inlined_call_operand.hbm [shape: f32[2048,1024], index: 1, kind: output, shape index: {}]  }
   0x1   :  { %8 = vsyncpa [#allocation3 + $0x1], 0 }
   0x2   :  { %9 = vsyncpa [#allocation4], 0 }
   0x3   :  { %11 = vsyncpa [#allocation4 + $0x1], 0  ;;  %s3551_s6 = smov 0   ;;  %s3553_s7 = smov 0  }
   0x4   :  { %s3555_s8 = smov 0   ;;  %s3557_s9 = smov 0  }
   0x5   :  { %s3559_s10 = smov 0   ;;  %s3561_s11 = smov 0  }
   0x6 LB: > { %s3334_s12 = sadd.s32 4294967295, %s3533_s11   ;;  %s3335_s13 = sadd.s32 4294967294, %s3533_s11   ;;  %s3533_s11 = sphi %s3561_s11, %s17_s11   ;;  %s3529_s10 = sphi %s3559_s10, %s5795_s10   ;;  %s3525_s9 = sphi %s3557_s9, %s5794_s9   ;;  %s3521_s8 = sphi %s3555_s8, %s5793_s8   ;;  %s3517_s7 = sphi %s3553_s7, %s5792_s7   ;;  %s3513_s6 = sphi %s3551_s6, %s5791_s6  }
   0x7   : > { %s29_s14 = sadd.s32 1, %s3529_s10  ;;  %s38_s15 = sadd.s32 1, %s3521_s8 }
   0x8   : > { %p31_p0 = scmp.ge.s32.totalorder %s29_s14, 2  ;;  %p45_p1 = scmp.ne.s32.totalorder %s3521_s8, %s3517_s7 }
   0x9   : > { %p46_p2 = scmp.eq.s32.totalorder %s3533_s11, 0  ;;  %p51_p3 = scmp.ne.s32.totalorder %s3517_s7, %s3513_s6 }
   0xa   : > { %s5797_s14 = smov (%p31_p0, %s29_s14), 0  ;;  %p52_p5 = scmp.eq.s32.totalorder %s3334_s12, 0 }
   0xb   : > { %p3592_p4 = por %p46_p2, %p45_p1  ;;  %s33_s17 = ssub.s32 %s3529_s10, %s5797_s14 }
   0xc   : > { %p77_p6 = scmp.eq.s32.totalorder %s3334_s12, 1  ;;  %p36_p7 = scmp.eq.s32.totalorder %s33_s17, 0 }
   0xd   : > { %p3598_p8 = por %p52_p5, %p51_p3  ;;  %p83_p10 = scmp.eq.s32.totalorder %s3335_s13, 1 }
   0xe   : > { %p3602_p9 = por %p77_p6, %p45_p1  ;;  %p3367_p13 = scmp.lt.s32.totalorder %s3533_s11, 2 }
   0xf   : > { %s3607_s20 = scalar_select %p36_p7, %s3521_s8, %s38_s15  }
  0x10   : > { %s5784_s19 = scalar_select %p3602_p9, 1, 0 }
  0x11   : > { %p3609_p11 = por %p83_p10, %p51_p3  ;;  %s103_s22 = sand.u32 1, %s3521_s8  }
  0x12   : > { %s3338_s23 = sshll.u32 %s103_s22, 13  ;;  %s3352_s24 = sshll.u32 %s3529_s10, 17 }
  0x13   : > { %s5785_s21 = scalar_select %p3609_p11, 1, 0 }
  0x14   : > { %s3620_s27 = scalar_lea.hbm %s5779_s0, %s3352_s24  ;;  %s107_s28 = scalar_lea.vmem [#allocation2], %s3338_s23 }
  0x15   : > { %s117_s29 = sshll.u32 %s107_s28, 4  ;;  %p3626_p0 = pnand %p3367_p13, %p3592_p4  ;;  %s3622_s29 = int_to_ptr.vmem [resolvable:$true] %s117_s29 }
  0x16   : > { %s3631_s2 = scalar_lea.sflag [#allocation3], %s103_s22  ;;  %s3421_s3 = scalar_lea.hbm %s3620_s27, 131072 }
  0x17   : > { %p3422_p2 = scmp.ne.s32.totalorder %s3620_s27, %s3421_s3  ;;  %p3423_p3 = pneg %p3626_p0 }
  0x18   : > { %s3426_s12 = scalar_lea.hbm %s5779_s0, 262144  ;;  %p3427_p4 = scmp.lt.u32.totalorder %s3620_s27, %s5779_s0 }
  0x19   : > { %p3424_p5 = pnand %p3423_p3, %p3422_p2  ;;  %p3428_p7 = scmp.lt.u32.totalorder %s3426_s12, %s3421_s3 }
  0x1a   : > { %p3430_p13 = scmp.lt.u32.totalorder %s3421_s3, %s3620_s27 }
  0x1b   : > { %p3425_p6 = pneg %p3424_p5  ;;  %p3429_p10 = por %p3428_p7, %p3427_p4 }
  0x1d   : > { %p3431_p12 = por %p3430_p13, %p3429_p10 }
  0x1f   : > { %p3432_p1 = pnand %p3431_p12, %p3425_p6 }
  0x21   : > { %3435 = shalt.err (!%p3432_p1)
}
  0x22   : > { %s3436_s16 = scalar_lea.vmem %s3622_s29, 131072  ;;  %s3535_s17 = smov [#allocation2]  }
  0x23   : > { %p3437_p2 = scmp.ne.s32.totalorder %s3622_s29, %s3436_s16  ;;  %s3441_s22 = sshll.u32 %s3535_s17, 4  ;;  %s3442_s22 = int_to_ptr.vmem [resolvable:$false] %s3441_s22 }
  0x24   : > { %s3443_s23 = scalar_lea.vmem %s3442_s22, 262144  ;;  %p3444_p9 = scmp.lt.s32.totalorder %s3622_s29, %s3442_s22 }
  0x25   : > { %p3439_p5 = pnand %p3437_p2, %p3423_p3  ;;  %p3445_p4 = scmp.lt.s32.totalorder %s3443_s23, %s3436_s16 }
  0x27   : > { %p3440_p11 = pneg %p3439_p5  ;;  %p3446_p7 = por %p3445_p4, %p3444_p9 }
  0x29   : > { %p3447_p10 = pnand %p3446_p7, %p3440_p11 }
  0x2b   : > { %3450 = shalt.err (!%p3447_p10)
}
  0x2c   : > { %s3536_s24 = smov 1024   ;;  %s3537_s25 = smov 64  }
  0x2d   : > { %3362 = dma.hbm_to_vmem [thread:$0]  (!%p3626_p0), %s3620_s27, 131072, %s3622_s29, %s3631_s2, %s3536_s24, %s3536_s24, %s3537_s25  }
  0x2e   : > { %p125_p12 = scmp.lt.s32.totalorder %s3533_s11, 3  ;;  %p5787_p1 = scmp.ge.s32.totalorder %s3533_s11, 1 }
  0x30   : > { %p126_p3 = pnand %p5787_p1, %p125_p12 }
  0x31   : > { %s3663_s26 = sand.u32 (!%p126_p3), 1, %s3517_s7  }
  0x32   : > { %129 = sbr.rel (%p126_p3) target bundleno = 594 (0x252), region = 24  ;;  %s3343_s28 = sshll.u32 (!%p126_p3), %s3663_s26, 13 }
  0x33   : > { %s132_s3 = scalar_lea.sflag (!%p126_p3), [#allocation3], %s3663_s26  ;;  %s3667_s4 = scalar_lea.vmem (!%p126_p3), [#allocation2], %s3343_s28 }
  0x39   : > { %3504 = dma.done.wait (%p3598_p8), %s132_s3, 131072  }
  0x3a   : > { %3506 = vsyncadd (%p3598_p8), %s132_s3, 4294836224  ;;  %v158_v0 = vld [vmem:[%s3667_s4] sm:$0xff]  ;;  %v159_v1 = vld [vmem:[%s3667_s4 + $0x8] sm:$0xff]  ;;  %s3682_s18 = scalar_lea.vmem [#allocation5], %s3343_s28  ;;  %s3354_s27 = sshll.u32 %s3525_s9, 17 }
  0x3b   : > { %v160_v2 = vld [vmem:[%s3667_s4 + $0x10] sm:$0xff]  ;;  %v1182_v3 = vmul.f32 0.03125, %v158_v0  ;;  %v1183_v4 = vmul.f32 0.03125, %v159_v1  ;;  %v161_v6 = vld [vmem:[%s3667_s4 + $0x18] sm:$0xff]  ;;  %v162_v7 = vld [vmem:[%s3667_s4 + $0x20] sm:$0xff]  ;;  %s5723_s2 = scalar_lea.hbm %s5780_s1, %s3354_s27  ;;  %s3247_s5 = sshll.u32 %s3682_s18, 4  ;;  %s5729_s5 = int_to_ptr.vmem [resolvable:$true] %s3247_s5 }
  0x3c   : > { %v1184_v5 = vmul.f32 0.03125, %v160_v2  ;;  %v163_v8 = vld [vmem:[%s3667_s4 + $0x28] sm:$0xff]  ;;  %v1185_v9 = vmul.f32 0.03125, %v161_v6  ;;  %v1186_v10 = vmul.f32 0.03125, %v162_v7  ;;  %v164_v12 = vld [vmem:[%s3667_s4 + $0x30] sm:$0xff]  ;;  %v165_v13 = vld [vmem:[%s3667_s4 + $0x38] sm:$0xff] }
  0x3d   : > { %v1187_v11 = vmul.f32 0.03125, %v163_v8  ;;  %v166_v14 = vld [vmem:[%s3667_s4 + $0x40] sm:$0xff]  ;;  %2206 = vst [vmem:[%s3682_s18] sm:$0xff] %v1182_v3  ;;  %2207 = vst [vmem:[%s3682_s18 + $0x8] sm:$0xff] %v1183_v4  ;;  %v1188_v15 = vmul.f32 0.03125, %v164_v12  ;;  %v1189_v16 = vmul.f32 0.03125, %v165_v13  ;;  %v167_v18 = vld [vmem:[%s3667_s4 + $0x48] sm:$0xff] }
  0x3e   : > { %2208 = vst [vmem:[%s3682_s18 + $0x10] sm:$0xff] %v1184_v5  ;;  %v1190_v17 = vmul.f32 0.03125, %v166_v14  ;;  %v168_v19 = vld [vmem:[%s3667_s4 + $0x50] sm:$0xff]  ;;  %v169_v20 = vld [vmem:[%s3667_s4 + $0x58] sm:$0xff]  ;;  %2209 = vst [vmem:[%s3682_s18 + $0x18] sm:$0xff] %v1185_v9  ;;  %v1191_v21 = vmul.f32 0.03125, %v167_v18 }
  0x3f   : > { %2210 = vst [vmem:[%s3682_s18 + $0x20] sm:$0xff] %v1186_v10  ;;  %2211 = vst [vmem:[%s3682_s18 + $0x28] sm:$0xff] %v1187_v11  ;;  %v1192_v22 = vmul.f32 0.03125, %v168_v19  ;;  %v1193_v23 = vmul.f32 0.03125, %v169_v20  ;;  %v170_v24 = vld [vmem:[%s3667_s4 + $0x60] sm:$0xff]  ;;  %v171_v25 = vld [vmem:[%s3667_s4 + $0x68] sm:$0xff] }
  0x40   : > { %v172_v26 = vld [vmem:[%s3667_s4 + $0x70] sm:$0xff]  ;;  %2212 = vst [vmem:[%s3682_s18 + $0x30] sm:$0xff] %v1188_v15  ;;  %2213 = vst [vmem:[%s3682_s18 + $0x38] sm:$0xff] %v1189_v16  ;;  %v1194_v27 = vmul.f32 0.03125, %v170_v24  ;;  %v1195_v28 = vmul.f32 0.03125, %v171_v25  ;;  %v173_v30 = vld [vmem:[%s3667_s4 + $0x78] sm:$0xff] }
  0x41   : > { %2214 = vst [vmem:[%s3682_s18 + $0x40] sm:$0xff] %v1190_v17  ;;  %v1196_v29 = vmul.f32 0.03125, %v172_v26  ;;  %v174_v31 = vld [vmem:[%s3667_s4 + $0x80] sm:$0xff]  ;;  %v175_v32 = vld [vmem:[%s3667_s4 + $0x88] sm:$0xff]  ;;  %2215 = vst [vmem:[%s3682_s18 + $0x48] sm:$0xff] %v1191_v21  ;;  %v1197_v33 = vmul.f32 0.03125, %v173_v30 }
  0x42   : > { %2216 = vst [vmem:[%s3682_s18 + $0x50] sm:$0xff] %v1192_v22  ;;  %2217 = vst [vmem:[%s3682_s18 + $0x58] sm:$0xff] %v1193_v23  ;;  %v1198_v34 = vmul.f32 0.03125, %v174_v31  ;;  %v1199_v35 = vmul.f32 0.03125, %v175_v32  ;;  %v176_v36 = vld [vmem:[%s3667_s4 + $0x90] sm:$0xff]  ;;  %v177_v37 = vld [vmem:[%s3667_s4 + $0x98] sm:$0xff] }
  0x43   : > { %v178_v38 = vld [vmem:[%s3667_s4 + $0xa0] sm:$0xff]  ;;  %2218 = vst [vmem:[%s3682_s18 + $0x60] sm:$0xff] %v1194_v27  ;;  %2219 = vst [vmem:[%s3682_s18 + $0x68] sm:$0xff] %v1195_v28  ;;  %v1200_v39 = vmul.f32 0.03125, %v176_v36  ;;  %v1201_v40 = vmul.f32 0.03125, %v177_v37  ;;  %v179_v42 = vld [vmem:[%s3667_s4 + $0xa8] sm:$0xff] }
  0x44   : > { %2220 = vst [vmem:[%s3682_s18 + $0x70] sm:$0xff] %v1196_v29  ;;  %v1202_v41 = vmul.f32 0.03125, %v178_v38  ;;  %v180_v43 = vld [vmem:[%s3667_s4 + $0xb0] sm:$0xff]  ;;  %v181_v44 = vld [vmem:[%s3667_s4 + $0xb8] sm:$0xff]  ;;  %2221 = vst [vmem:[%s3682_s18 + $0x78] sm:$0xff] %v1197_v33  ;;  %v1203_v45 = vmul.f32 0.03125, %v179_v42 }
  0x45   : > { %2222 = vst [vmem:[%s3682_s18 + $0x80] sm:$0xff] %v1198_v34  ;;  %2223 = vst [vmem:[%s3682_s18 + $0x88] sm:$0xff] %v1199_v35  ;;  %v1204_v46 = vmul.f32 0.03125, %v180_v43  ;;  %v1205_v47 = vmul.f32 0.03125, %v181_v44  ;;  %v182_v48 = vld [vmem:[%s3667_s4 + $0xc0] sm:$0xff]  ;;  %v183_v49 = vld [vmem:[%s3667_s4 + $0xc8] sm:$0xff] }
  0x46   : > { %v184_v50 = vld [vmem:[%s3667_s4 + $0xd0] sm:$0xff]  ;;  %2224 = vst [vmem:[%s3682_s18 + $0x90] sm:$0xff] %v1200_v39  ;;  %2225 = vst [vmem:[%s3682_s18 + $0x98] sm:$0xff] %v1201_v40  ;;  %v1206_v51 = vmul.f32 0.03125, %v182_v48  ;;  %v1207_v52 = vmul.f32 0.03125, %v183_v49  ;;  %v185_v54 = vld [vmem:[%s3667_s4 + $0xd8] sm:$0xff] }
  0x47   : > { %2226 = vst [vmem:[%s3682_s18 + $0xa0] sm:$0xff] %v1202_v41  ;;  %v1208_v53 = vmul.f32 0.03125, %v184_v50  ;;  %v186_v55 = vld [vmem:[%s3667_s4 + $0xe0] sm:$0xff]  ;;  %v187_v56 = vld [vmem:[%s3667_s4 + $0xe8] sm:$0xff]  ;;  %2227 = vst [vmem:[%s3682_s18 + $0xa8] sm:$0xff] %v1203_v45  ;;  %v1209_v57 = vmul.f32 0.03125, %v185_v54 }
  0x48   : > { %2228 = vst [vmem:[%s3682_s18 + $0xb0] sm:$0xff] %v1204_v46  ;;  %2229 = vst [vmem:[%s3682_s18 + $0xb8] sm:$0xff] %v1205_v47  ;;  %v1210_v58 = vmul.f32 0.03125, %v186_v55  ;;  %v1211_v59 = vmul.f32 0.03125, %v187_v56  ;;  %v188_v60 = vld [vmem:[%s3667_s4 + $0xf0] sm:$0xff]  ;;  %v189_v61 = vld [vmem:[%s3667_s4 + $0xf8] sm:$0xff] }
  0x49   : > { %v190_v62 = vld [vmem:[%s3667_s4 + $0x100] sm:$0xff]  ;;  %2230 = vst [vmem:[%s3682_s18 + $0xc0] sm:$0xff] %v1206_v51  ;;  %2231 = vst [vmem:[%s3682_s18 + $0xc8] sm:$0xff] %v1207_v52  ;;  %v1212_v63 = vmul.f32 0.03125, %v188_v60  ;;  %v1213_v0 = vmul.f32 0.03125, %v189_v61  ;;  %v191_v2 = vld [vmem:[%s3667_s4 + $0x108] sm:$0xff] }
  0x4a   : > { %2232 = vst [vmem:[%s3682_s18 + $0xd0] sm:$0xff] %v1208_v53  ;;  %v1214_v1 = vmul.f32 0.03125, %v190_v62  ;;  %v192_v3 = vld [vmem:[%s3667_s4 + $0x110] sm:$0xff]  ;;  %v193_v4 = vld [vmem:[%s3667_s4 + $0x118] sm:$0xff]  ;;  %2233 = vst [vmem:[%s3682_s18 + $0xd8] sm:$0xff] %v1209_v57  ;;  %v1215_v5 = vmul.f32 0.03125, %v191_v2 }
  0x4b   : > { %2234 = vst [vmem:[%s3682_s18 + $0xe0] sm:$0xff] %v1210_v58  ;;  %2235 = vst [vmem:[%s3682_s18 + $0xe8] sm:$0xff] %v1211_v59  ;;  %v1216_v6 = vmul.f32 0.03125, %v192_v3  ;;  %v1217_v7 = vmul.f32 0.03125, %v193_v4  ;;  %v194_v8 = vld [vmem:[%s3667_s4 + $0x120] sm:$0xff]  ;;  %v195_v9 = vld [vmem:[%s3667_s4 + $0x128] sm:$0xff] }
  0x4c   : > { %v196_v10 = vld [vmem:[%s3667_s4 + $0x130] sm:$0xff]  ;;  %2236 = vst [vmem:[%s3682_s18 + $0xf0] sm:$0xff] %v1212_v63  ;;  %2237 = vst [vmem:[%s3682_s18 + $0xf8] sm:$0xff] %v1213_v0  ;;  %v1218_v11 = vmul.f32 0.03125, %v194_v8  ;;  %v1219_v12 = vmul.f32 0.03125, %v195_v9  ;;  %v197_v14 = vld [vmem:[%s3667_s4 + $0x138] sm:$0xff] }
  0x4d   : > { %2238 = vst [vmem:[%s3682_s18 + $0x100] sm:$0xff] %v1214_v1  ;;  %v1220_v13 = vmul.f32 0.03125, %v196_v10  ;;  %v198_v15 = vld [vmem:[%s3667_s4 + $0x140] sm:$0xff]  ;;  %v199_v16 = vld [vmem:[%s3667_s4 + $0x148] sm:$0xff]  ;;  %2239 = vst [vmem:[%s3682_s18 + $0x108] sm:$0xff] %v1215_v5  ;;  %v1221_v17 = vmul.f32 0.03125, %v197_v14 }
  0x4e   : > { %2240 = vst [vmem:[%s3682_s18 + $0x110] sm:$0xff] %v1216_v6  ;;  %2241 = vst [vmem:[%s3682_s18 + $0x118] sm:$0xff] %v1217_v7  ;;  %v1222_v18 = vmul.f32 0.03125, %v198_v15  ;;  %v1223_v19 = vmul.f32 0.03125, %v199_v16  ;;  %v200_v20 = vld [vmem:[%s3667_s4 + $0x150] sm:$0xff]  ;;  %v201_v21 = vld [vmem:[%s3667_s4 + $0x158] sm:$0xff] }
  0x4f   : > { %v202_v22 = vld [vmem:[%s3667_s4 + $0x160] sm:$0xff]  ;;  %2242 = vst [vmem:[%s3682_s18 + $0x120] sm:$0xff] %v1218_v11  ;;  %2243 = vst [vmem:[%s3682_s18 + $0x128] sm:$0xff] %v1219_v12  ;;  %v1224_v23 = vmul.f32 0.03125, %v200_v20  ;;  %v1225_v24 = vmul.f32 0.03125, %v201_v21  ;;  %v203_v26 = vld [vmem:[%s3667_s4 + $0x168] sm:$0xff] }
  0x50   : > { %2244 = vst [vmem:[%s3682_s18 + $0x130] sm:$0xff] %v1220_v13  ;;  %v1226_v25 = vmul.f32 0.03125, %v202_v22  ;;  %v204_v27 = vld [vmem:[%s3667_s4 + $0x170] sm:$0xff]  ;;  %v205_v28 = vld [vmem:[%s3667_s4 + $0x178] sm:$0xff]  ;;  %2245 = vst [vmem:[%s3682_s18 + $0x138] sm:$0xff] %v1221_v17  ;;  %v1227_v29 = vmul.f32 0.03125, %v203_v26 }
  0x51   : > { %2246 = vst [vmem:[%s3682_s18 + $0x140] sm:$0xff] %v1222_v18  ;;  %2247 = vst [vmem:[%s3682_s18 + $0x148] sm:$0xff] %v1223_v19  ;;  %v1228_v30 = vmul.f32 0.03125, %v204_v27  ;;  %v1229_v31 = vmul.f32 0.03125, %v205_v28  ;;  %v206_v32 = vld [vmem:[%s3667_s4 + $0x180] sm:$0xff]  ;;  %v207_v33 = vld [vmem:[%s3667_s4 + $0x188] sm:$0xff] }
  0x52   : > { %v208_v34 = vld [vmem:[%s3667_s4 + $0x190] sm:$0xff]  ;;  %2248 = vst [vmem:[%s3682_s18 + $0x150] sm:$0xff] %v1224_v23  ;;  %2249 = vst [vmem:[%s3682_s18 + $0x158] sm:$0xff] %v1225_v24  ;;  %v1230_v35 = vmul.f32 0.03125, %v206_v32  ;;  %v1231_v36 = vmul.f32 0.03125, %v207_v33  ;;  %v209_v38 = vld [vmem:[%s3667_s4 + $0x198] sm:$0xff] }
  0x53   : > { %2250 = vst [vmem:[%s3682_s18 + $0x160] sm:$0xff] %v1226_v25  ;;  %v1232_v37 = vmul.f32 0.03125, %v208_v34  ;;  %v210_v39 = vld [vmem:[%s3667_s4 + $0x1a0] sm:$0xff]  ;;  %v211_v40 = vld [vmem:[%s3667_s4 + $0x1a8] sm:$0xff]  ;;  %2251 = vst [vmem:[%s3682_s18 + $0x168] sm:$0xff] %v1227_v29  ;;  %v1233_v41 = vmul.f32 0.03125, %v209_v38 }
  0x54   : > { %2252 = vst [vmem:[%s3682_s18 + $0x170] sm:$0xff] %v1228_v30  ;;  %2253 = vst [vmem:[%s3682_s18 + $0x178] sm:$0xff] %v1229_v31  ;;  %v1234_v42 = vmul.f32 0.03125, %v210_v39  ;;  %v1235_v43 = vmul.f32 0.03125, %v211_v40  ;;  %v212_v44 = vld [vmem:[%s3667_s4 + $0x1b0] sm:$0xff]  ;;  %v213_v45 = vld [vmem:[%s3667_s4 + $0x1b8] sm:$0xff] }
  0x55   : > { %v214_v46 = vld [vmem:[%s3667_s4 + $0x1c0] sm:$0xff]  ;;  %2254 = vst [vmem:[%s3682_s18 + $0x180] sm:$0xff] %v1230_v35  ;;  %2255 = vst [vmem:[%s3682_s18 + $0x188] sm:$0xff] %v1231_v36  ;;  %v1236_v47 = vmul.f32 0.03125, %v212_v44  ;;  %v1237_v48 = vmul.f32 0.03125, %v213_v45  ;;  %v215_v50 = vld [vmem:[%s3667_s4 + $0x1c8] sm:$0xff] }
  0x56   : > { %2256 = vst [vmem:[%s3682_s18 + $0x190] sm:$0xff] %v1232_v37  ;;  %v1238_v49 = vmul.f32 0.03125, %v214_v46  ;;  %v216_v51 = vld [vmem:[%s3667_s4 + $0x1d0] sm:$0xff]  ;;  %v217_v52 = vld [vmem:[%s3667_s4 + $0x1d8] sm:$0xff]  ;;  %2257 = vst [vmem:[%s3682_s18 + $0x198] sm:$0xff] %v1233_v41  ;;  %v1239_v53 = vmul.f32 0.03125, %v215_v50 }
  0x57   : > { %2258 = vst [vmem:[%s3682_s18 + $0x1a0] sm:$0xff] %v1234_v42  ;;  %2259 = vst [vmem:[%s3682_s18 + $0x1a8] sm:$0xff] %v1235_v43  ;;  %v1240_v54 = vmul.f32 0.03125, %v216_v51  ;;  %v1241_v55 = vmul.f32 0.03125, %v217_v52  ;;  %v218_v56 = vld [vmem:[%s3667_s4 + $0x1e0] sm:$0xff]  ;;  %v219_v57 = vld [vmem:[%s3667_s4 + $0x1e8] sm:$0xff] }
  0x58   : > { %v220_v58 = vld [vmem:[%s3667_s4 + $0x1f0] sm:$0xff]  ;;  %2260 = vst [vmem:[%s3682_s18 + $0x1b0] sm:$0xff] %v1236_v47  ;;  %2261 = vst [vmem:[%s3682_s18 + $0x1b8] sm:$0xff] %v1237_v48  ;;  %v1242_v59 = vmul.f32 0.03125, %v218_v56  ;;  %v1243_v60 = vmul.f32 0.03125, %v219_v57  ;;  %v221_v62 = vld [vmem:[%s3667_s4 + $0x1f8] sm:$0xff] }
  0x59   : > { %2262 = vst [vmem:[%s3682_s18 + $0x1c0] sm:$0xff] %v1238_v49  ;;  %v1244_v61 = vmul.f32 0.03125, %v220_v58  ;;  %v222_v63 = vld [vmem:[%s3667_s4 + $0x200] sm:$0xff]  ;;  %v223_v0 = vld [vmem:[%s3667_s4 + $0x208] sm:$0xff]  ;;  %2263 = vst [vmem:[%s3682_s18 + $0x1c8] sm:$0xff] %v1239_v53  ;;  %v1245_v1 = vmul.f32 0.03125, %v221_v62 }
  0x5a   : > { %2264 = vst [vmem:[%s3682_s18 + $0x1d0] sm:$0xff] %v1240_v54  ;;  %2265 = vst [vmem:[%s3682_s18 + $0x1d8] sm:$0xff] %v1241_v55  ;;  %v1246_v2 = vmul.f32 0.03125, %v222_v63  ;;  %v1247_v3 = vmul.f32 0.03125, %v223_v0  ;;  %v224_v4 = vld [vmem:[%s3667_s4 + $0x210] sm:$0xff]  ;;  %v225_v5 = vld [vmem:[%s3667_s4 + $0x218] sm:$0xff] }
  0x5b   : > { %v226_v6 = vld [vmem:[%s3667_s4 + $0x220] sm:$0xff]  ;;  %2266 = vst [vmem:[%s3682_s18 + $0x1e0] sm:$0xff] %v1242_v59  ;;  %2267 = vst [vmem:[%s3682_s18 + $0x1e8] sm:$0xff] %v1243_v60  ;;  %v1248_v7 = vmul.f32 0.03125, %v224_v4  ;;  %v1249_v8 = vmul.f32 0.03125, %v225_v5  ;;  %v227_v10 = vld [vmem:[%s3667_s4 + $0x228] sm:$0xff] }
  0x5c   : > { %2268 = vst [vmem:[%s3682_s18 + $0x1f0] sm:$0xff] %v1244_v61  ;;  %v1250_v9 = vmul.f32 0.03125, %v226_v6  ;;  %v228_v11 = vld [vmem:[%s3667_s4 + $0x230] sm:$0xff]  ;;  %v229_v12 = vld [vmem:[%s3667_s4 + $0x238] sm:$0xff]  ;;  %2269 = vst [vmem:[%s3682_s18 + $0x1f8] sm:$0xff] %v1245_v1  ;;  %v1251_v13 = vmul.f32 0.03125, %v227_v10 }
  0x5d   : > { %2270 = vst [vmem:[%s3682_s18 + $0x200] sm:$0xff] %v1246_v2  ;;  %2271 = vst [vmem:[%s3682_s18 + $0x208] sm:$0xff] %v1247_v3  ;;  %v1252_v14 = vmul.f32 0.03125, %v228_v11  ;;  %v1253_v15 = vmul.f32 0.03125, %v229_v12  ;;  %v230_v16 = vld [vmem:[%s3667_s4 + $0x240] sm:$0xff]  ;;  %v231_v17 = vld [vmem:[%s3667_s4 + $0x248] sm:$0xff] }
  0x5e   : > { %v232_v18 = vld [vmem:[%s3667_s4 + $0x250] sm:$0xff]  ;;  %2272 = vst [vmem:[%s3682_s18 + $0x210] sm:$0xff] %v1248_v7  ;;  %2273 = vst [vmem:[%s3682_s18 + $0x218] sm:$0xff] %v1249_v8  ;;  %v1254_v19 = vmul.f32 0.03125, %v230_v16  ;;  %v1255_v20 = vmul.f32 0.03125, %v231_v17  ;;  %v233_v22 = vld [vmem:[%s3667_s4 + $0x258] sm:$0xff] }
  0x5f   : > { %2274 = vst [vmem:[%s3682_s18 + $0x220] sm:$0xff] %v1250_v9  ;;  %v1256_v21 = vmul.f32 0.03125, %v232_v18  ;;  %v234_v23 = vld [vmem:[%s3667_s4 + $0x260] sm:$0xff]  ;;  %v235_v24 = vld [vmem:[%s3667_s4 + $0x268] sm:$0xff]  ;;  %2275 = vst [vmem:[%s3682_s18 + $0x228] sm:$0xff] %v1251_v13  ;;  %v1257_v25 = vmul.f32 0.03125, %v233_v22 }
  0x60   : > { %2276 = vst [vmem:[%s3682_s18 + $0x230] sm:$0xff] %v1252_v14  ;;  %2277 = vst [vmem:[%s3682_s18 + $0x238] sm:$0xff] %v1253_v15  ;;  %v1258_v26 = vmul.f32 0.03125, %v234_v23  ;;  %v1259_v27 = vmul.f32 0.03125, %v235_v24  ;;  %v236_v28 = vld [vmem:[%s3667_s4 + $0x270] sm:$0xff]  ;;  %v237_v29 = vld [vmem:[%s3667_s4 + $0x278] sm:$0xff] }
  0x61   : > { %v238_v30 = vld [vmem:[%s3667_s4 + $0x280] sm:$0xff]  ;;  %2278 = vst [vmem:[%s3682_s18 + $0x240] sm:$0xff] %v1254_v19  ;;  %2279 = vst [vmem:[%s3682_s18 + $0x248] sm:$0xff] %v1255_v20  ;;  %v1260_v31 = vmul.f32 0.03125, %v236_v28  ;;  %v1261_v32 = vmul.f32 0.03125, %v237_v29  ;;  %v239_v34 = vld [vmem:[%s3667_s4 + $0x288] sm:$0xff] }
  0x62   : > { %2280 = vst [vmem:[%s3682_s18 + $0x250] sm:$0xff] %v1256_v21  ;;  %v1262_v33 = vmul.f32 0.03125, %v238_v30  ;;  %v240_v35 = vld [vmem:[%s3667_s4 + $0x290] sm:$0xff]  ;;  %v241_v36 = vld [vmem:[%s3667_s4 + $0x298] sm:$0xff]  ;;  %2281 = vst [vmem:[%s3682_s18 + $0x258] sm:$0xff] %v1257_v25  ;;  %v1263_v37 = vmul.f32 0.03125, %v239_v34 }
  0x63   : > { %2282 = vst [vmem:[%s3682_s18 + $0x260] sm:$0xff] %v1258_v26  ;;  %2283 = vst [vmem:[%s3682_s18 + $0x268] sm:$0xff] %v1259_v27  ;;  %v1264_v38 = vmul.f32 0.03125, %v240_v35  ;;  %v1265_v39 = vmul.f32 0.03125, %v241_v36  ;;  %v242_v40 = vld [vmem:[%s3667_s4 + $0x2a0] sm:$0xff]  ;;  %v243_v41 = vld [vmem:[%s3667_s4 + $0x2a8] sm:$0xff] }
  0x64   : > { %v244_v42 = vld [vmem:[%s3667_s4 + $0x2b0] sm:$0xff]  ;;  %2284 = vst [vmem:[%s3682_s18 + $0x270] sm:$0xff] %v1260_v31  ;;  %2285 = vst [vmem:[%s3682_s18 + $0x278] sm:$0xff] %v1261_v32  ;;  %v1266_v43 = vmul.f32 0.03125, %v242_v40  ;;  %v1267_v44 = vmul.f32 0.03125, %v243_v41  ;;  %v245_v46 = vld [vmem:[%s3667_s4 + $0x2b8] sm:$0xff] }
  0x65   : > { %2286 = vst [vmem:[%s3682_s18 + $0x280] sm:$0xff] %v1262_v33  ;;  %v1268_v45 = vmul.f32 0.03125, %v244_v42  ;;  %v246_v47 = vld [vmem:[%s3667_s4 + $0x2c0] sm:$0xff]  ;;  %v247_v48 = vld [vmem:[%s3667_s4 + $0x2c8] sm:$0xff]  ;;  %2287 = vst [vmem:[%s3682_s18 + $0x288] sm:$0xff] %v1263_v37  ;;  %v1269_v49 = vmul.f32 0.03125, %v245_v46 }
  0x66   : > { %2288 = vst [vmem:[%s3682_s18 + $0x290] sm:$0xff] %v1264_v38  ;;  %2289 = vst [vmem:[%s3682_s18 + $0x298] sm:$0xff] %v1265_v39  ;;  %v1270_v50 = vmul.f32 0.03125, %v246_v47  ;;  %v1271_v51 = vmul.f32 0.03125, %v247_v48  ;;  %v248_v52 = vld [vmem:[%s3667_s4 + $0x2d0] sm:$0xff]  ;;  %v249_v53 = vld [vmem:[%s3667_s4 + $0x2d8] sm:$0xff] }
  0x67   : > { %v250_v54 = vld [vmem:[%s3667_s4 + $0x2e0] sm:$0xff]  ;;  %2290 = vst [vmem:[%s3682_s18 + $0x2a0] sm:$0xff] %v1266_v43  ;;  %2291 = vst [vmem:[%s3682_s18 + $0x2a8] sm:$0xff] %v1267_v44  ;;  %v1272_v55 = vmul.f32 0.03125, %v248_v52  ;;  %v1273_v56 = vmul.f32 0.03125, %v249_v53  ;;  %v251_v58 = vld [vmem:[%s3667_s4 + $0x2e8] sm:$0xff] }
  0x68   : > { %2292 = vst [vmem:[%s3682_s18 + $0x2b0] sm:$0xff] %v1268_v45  ;;  %v1274_v57 = vmul.f32 0.03125, %v250_v54  ;;  %v252_v59 = vld [vmem:[%s3667_s4 + $0x2f0] sm:$0xff]  ;;  %v253_v60 = vld [vmem:[%s3667_s4 + $0x2f8] sm:$0xff]  ;;  %2293 = vst [vmem:[%s3682_s18 + $0x2b8] sm:$0xff] %v1269_v49  ;;  %v1275_v61 = vmul.f32 0.03125, %v251_v58 }
  0x69   : > { %2294 = vst [vmem:[%s3682_s18 + $0x2c0] sm:$0xff] %v1270_v50  ;;  %2295 = vst [vmem:[%s3682_s18 + $0x2c8] sm:$0xff] %v1271_v51  ;;  %v1276_v62 = vmul.f32 0.03125, %v252_v59  ;;  %v1277_v63 = vmul.f32 0.03125, %v253_v60  ;;  %v254_v0 = vld [vmem:[%s3667_s4 + $0x300] sm:$0xff]  ;;  %v255_v1 = vld [vmem:[%s3667_s4 + $0x308] sm:$0xff] }
  0x6a   : > { %v256_v2 = vld [vmem:[%s3667_s4 + $0x310] sm:$0xff]  ;;  %2296 = vst [vmem:[%s3682_s18 + $0x2d0] sm:$0xff] %v1272_v55  ;;  %2297 = vst [vmem:[%s3682_s18 + $0x2d8] sm:$0xff] %v1273_v56  ;;  %v1278_v3 = vmul.f32 0.03125, %v254_v0  ;;  %v1279_v4 = vmul.f32 0.03125, %v255_v1  ;;  %v257_v6 = vld [vmem:[%s3667_s4 + $0x318] sm:$0xff] }
  0x6b   : > { %2298 = vst [vmem:[%s3682_s18 + $0x2e0] sm:$0xff] %v1274_v57  ;;  %v1280_v5 = vmul.f32 0.03125, %v256_v2  ;;  %v258_v7 = vld [vmem:[%s3667_s4 + $0x320] sm:$0xff]  ;;  %v259_v8 = vld [vmem:[%s3667_s4 + $0x328] sm:$0xff]  ;;  %2299 = vst [vmem:[%s3682_s18 + $0x2e8] sm:$0xff] %v1275_v61  ;;  %v1281_v9 = vmul.f32 0.03125, %v257_v6 }
  0x6c   : > { %2300 = vst [vmem:[%s3682_s18 + $0x2f0] sm:$0xff] %v1276_v62  ;;  %2301 = vst [vmem:[%s3682_s18 + $0x2f8] sm:$0xff] %v1277_v63  ;;  %v1282_v10 = vmul.f32 0.03125, %v258_v7  ;;  %v1283_v11 = vmul.f32 0.03125, %v259_v8  ;;  %v260_v12 = vld [vmem:[%s3667_s4 + $0x330] sm:$0xff]  ;;  %v261_v13 = vld [vmem:[%s3667_s4 + $0x338] sm:$0xff] }
  0x6d   : > { %v262_v14 = vld [vmem:[%s3667_s4 + $0x340] sm:$0xff]  ;;  %2302 = vst [vmem:[%s3682_s18 + $0x300] sm:$0xff] %v1278_v3  ;;  %2303 = vst [vmem:[%s3682_s18 + $0x308] sm:$0xff] %v1279_v4  ;;  %v1284_v15 = vmul.f32 0.03125, %v260_v12  ;;  %v1285_v16 = vmul.f32 0.03125, %v261_v13  ;;  %v263_v18 = vld [vmem:[%s3667_s4 + $0x348] sm:$0xff] }
  0x6e   : > { %2304 = vst [vmem:[%s3682_s18 + $0x310] sm:$0xff] %v1280_v5  ;;  %v1286_v17 = vmul.f32 0.03125, %v262_v14  ;;  %v264_v19 = vld [vmem:[%s3667_s4 + $0x350] sm:$0xff]  ;;  %v265_v20 = vld [vmem:[%s3667_s4 + $0x358] sm:$0xff]  ;;  %2305 = vst [vmem:[%s3682_s18 + $0x318] sm:$0xff] %v1281_v9  ;;  %v1287_v21 = vmul.f32 0.03125, %v263_v18 }
  0x6f   : > { %2306 = vst [vmem:[%s3682_s18 + $0x320] sm:$0xff] %v1282_v10  ;;  %2307 = vst [vmem:[%s3682_s18 + $0x328] sm:$0xff] %v1283_v11  ;;  %v1288_v22 = vmul.f32 0.03125, %v264_v19  ;;  %v1289_v23 = vmul.f32 0.03125, %v265_v20  ;;  %v266_v24 = vld [vmem:[%s3667_s4 + $0x360] sm:$0xff]  ;;  %v267_v25 = vld [vmem:[%s3667_s4 + $0x368] sm:$0xff] }
  0x70   : > { %v268_v26 = vld [vmem:[%s3667_s4 + $0x370] sm:$0xff]  ;;  %2308 = vst [vmem:[%s3682_s18 + $0x330] sm:$0xff] %v1284_v15  ;;  %2309 = vst [vmem:[%s3682_s18 + $0x338] sm:$0xff] %v1285_v16  ;;  %v1290_v27 = vmul.f32 0.03125, %v266_v24  ;;  %v1291_v28 = vmul.f32 0.03125, %v267_v25  ;;  %v269_v30 = vld [vmem:[%s3667_s4 + $0x378] sm:$0xff] }
  0x71   : > { %2310 = vst [vmem:[%s3682_s18 + $0x340] sm:$0xff] %v1286_v17  ;;  %v1292_v29 = vmul.f32 0.03125, %v268_v26  ;;  %v270_v31 = vld [vmem:[%s3667_s4 + $0x380] sm:$0xff]  ;;  %v271_v32 = vld [vmem:[%s3667_s4 + $0x388] sm:$0xff]  ;;  %2311 = vst [vmem:[%s3682_s18 + $0x348] sm:$0xff] %v1287_v21  ;;  %v1293_v33 = vmul.f32 0.03125, %v269_v30 }
  0x72   : > { %2312 = vst [vmem:[%s3682_s18 + $0x350] sm:$0xff] %v1288_v22  ;;  %2313 = vst [vmem:[%s3682_s18 + $0x358] sm:$0xff] %v1289_v23  ;;  %v1294_v34 = vmul.f32 0.03125, %v270_v31  ;;  %v1295_v35 = vmul.f32 0.03125, %v271_v32  ;;  %v272_v36 = vld [vmem:[%s3667_s4 + $0x390] sm:$0xff]  ;;  %v273_v37 = vld [vmem:[%s3667_s4 + $0x398] sm:$0xff] }
  0x73   : > { %v274_v38 = vld [vmem:[%s3667_s4 + $0x3a0] sm:$0xff]  ;;  %2314 = vst [vmem:[%s3682_s18 + $0x360] sm:$0xff] %v1290_v27  ;;  %2315 = vst [vmem:[%s3682_s18 + $0x368] sm:$0xff] %v1291_v28  ;;  %v1296_v39 = vmul.f32 0.03125, %v272_v36  ;;  %v1297_v40 = vmul.f32 0.03125, %v273_v37  ;;  %v275_v42 = vld [vmem:[%s3667_s4 + $0x3a8] sm:$0xff] }
  0x74   : > { %2316 = vst [vmem:[%s3682_s18 + $0x370] sm:$0xff] %v1292_v29  ;;  %v1298_v41 = vmul.f32 0.03125, %v274_v38  ;;  %v276_v43 = vld [vmem:[%s3667_s4 + $0x3b0] sm:$0xff]  ;;  %v277_v44 = vld [vmem:[%s3667_s4 + $0x3b8] sm:$0xff]  ;;  %2317 = vst [vmem:[%s3682_s18 + $0x378] sm:$0xff] %v1293_v33  ;;  %v1299_v45 = vmul.f32 0.03125, %v275_v42 }
  0x75   : > { %2318 = vst [vmem:[%s3682_s18 + $0x380] sm:$0xff] %v1294_v34  ;;  %2319 = vst [vmem:[%s3682_s18 + $0x388] sm:$0xff] %v1295_v35  ;;  %v1300_v46 = vmul.f32 0.03125, %v276_v43  ;;  %v1301_v47 = vmul.f32 0.03125, %v277_v44  ;;  %v278_v48 = vld [vmem:[%s3667_s4 + $0x3c0] sm:$0xff]  ;;  %v279_v49 = vld [vmem:[%s3667_s4 + $0x3c8] sm:$0xff] }
  0x76   : > { %v280_v50 = vld [vmem:[%s3667_s4 + $0x3d0] sm:$0xff]  ;;  %2320 = vst [vmem:[%s3682_s18 + $0x390] sm:$0xff] %v1296_v39  ;;  %2321 = vst [vmem:[%s3682_s18 + $0x398] sm:$0xff] %v1297_v40  ;;  %v1302_v51 = vmul.f32 0.03125, %v278_v48  ;;  %v1303_v52 = vmul.f32 0.03125, %v279_v49  ;;  %v281_v54 = vld [vmem:[%s3667_s4 + $0x3d8] sm:$0xff] }
  0x77   : > { %2322 = vst [vmem:[%s3682_s18 + $0x3a0] sm:$0xff] %v1298_v41  ;;  %v1304_v53 = vmul.f32 0.03125, %v280_v50  ;;  %v282_v55 = vld [vmem:[%s3667_s4 + $0x3e0] sm:$0xff]  ;;  %v283_v56 = vld [vmem:[%s3667_s4 + $0x3e8] sm:$0xff]  ;;  %2323 = vst [vmem:[%s3682_s18 + $0x3a8] sm:$0xff] %v1299_v45  ;;  %v1305_v57 = vmul.f32 0.03125, %v281_v54 }
  0x78   : > { %2324 = vst [vmem:[%s3682_s18 + $0x3b0] sm:$0xff] %v1300_v46  ;;  %2325 = vst [vmem:[%s3682_s18 + $0x3b8] sm:$0xff] %v1301_v47  ;;  %v1306_v58 = vmul.f32 0.03125, %v282_v55  ;;  %v1307_v59 = vmul.f32 0.03125, %v283_v56  ;;  %v284_v60 = vld [vmem:[%s3667_s4 + $0x3f0] sm:$0xff]  ;;  %v285_v61 = vld [vmem:[%s3667_s4 + $0x3f8] sm:$0xff] }
  0x79   : > { %v286_v62 = vld [vmem:[%s3667_s4 + $0x400] sm:$0xff]  ;;  %2326 = vst [vmem:[%s3682_s18 + $0x3c0] sm:$0xff] %v1302_v51  ;;  %2327 = vst [vmem:[%s3682_s18 + $0x3c8] sm:$0xff] %v1303_v52  ;;  %v1308_v63 = vmul.f32 0.03125, %v284_v60  ;;  %v1309_v0 = vmul.f32 0.03125, %v285_v61  ;;  %v287_v2 = vld [vmem:[%s3667_s4 + $0x408] sm:$0xff] }
  0x7a   : > { %2328 = vst [vmem:[%s3682_s18 + $0x3d0] sm:$0xff] %v1304_v53  ;;  %v1310_v1 = vmul.f32 0.03125, %v286_v62  ;;  %v288_v3 = vld [vmem:[%s3667_s4 + $0x410] sm:$0xff]  ;;  %v289_v4 = vld [vmem:[%s3667_s4 + $0x418] sm:$0xff]  ;;  %2329 = vst [vmem:[%s3682_s18 + $0x3d8] sm:$0xff] %v1305_v57  ;;  %v1311_v5 = vmul.f32 0.03125, %v287_v2 }
  0x7b   : > { %2330 = vst [vmem:[%s3682_s18 + $0x3e0] sm:$0xff] %v1306_v58  ;;  %2331 = vst [vmem:[%s3682_s18 + $0x3e8] sm:$0xff] %v1307_v59  ;;  %v1312_v6 = vmul.f32 0.03125, %v288_v3  ;;  %v1313_v7 = vmul.f32 0.03125, %v289_v4  ;;  %v290_v8 = vld [vmem:[%s3667_s4 + $0x420] sm:$0xff]  ;;  %v291_v9 = vld [vmem:[%s3667_s4 + $0x428] sm:$0xff] }
  0x7c   : > { %v292_v10 = vld [vmem:[%s3667_s4 + $0x430] sm:$0xff]  ;;  %2332 = vst [vmem:[%s3682_s18 + $0x3f0] sm:$0xff] %v1308_v63  ;;  %2333 = vst [vmem:[%s3682_s18 + $0x3f8] sm:$0xff] %v1309_v0  ;;  %v1314_v11 = vmul.f32 0.03125, %v290_v8  ;;  %v1315_v12 = vmul.f32 0.03125, %v291_v9  ;;  %v293_v14 = vld [vmem:[%s3667_s4 + $0x438] sm:$0xff] }
  0x7d   : > { %2334 = vst [vmem:[%s3682_s18 + $0x400] sm:$0xff] %v1310_v1  ;;  %v1316_v13 = vmul.f32 0.03125, %v292_v10  ;;  %v294_v15 = vld [vmem:[%s3667_s4 + $0x440] sm:$0xff]  ;;  %v295_v16 = vld [vmem:[%s3667_s4 + $0x448] sm:$0xff]  ;;  %2335 = vst [vmem:[%s3682_s18 + $0x408] sm:$0xff] %v1311_v5  ;;  %v1317_v17 = vmul.f32 0.03125, %v293_v14 }
  0x7e   : > { %2336 = vst [vmem:[%s3682_s18 + $0x410] sm:$0xff] %v1312_v6  ;;  %2337 = vst [vmem:[%s3682_s18 + $0x418] sm:$0xff] %v1313_v7  ;;  %v1318_v18 = vmul.f32 0.03125, %v294_v15  ;;  %v1319_v19 = vmul.f32 0.03125, %v295_v16  ;;  %v296_v20 = vld [vmem:[%s3667_s4 + $0x450] sm:$0xff]  ;;  %v297_v21 = vld [vmem:[%s3667_s4 + $0x458] sm:$0xff] }
  0x7f   : > { %v298_v22 = vld [vmem:[%s3667_s4 + $0x460] sm:$0xff]  ;;  %2338 = vst [vmem:[%s3682_s18 + $0x420] sm:$0xff] %v1314_v11  ;;  %2339 = vst [vmem:[%s3682_s18 + $0x428] sm:$0xff] %v1315_v12  ;;  %v1320_v23 = vmul.f32 0.03125, %v296_v20  ;;  %v1321_v24 = vmul.f32 0.03125, %v297_v21  ;;  %v299_v26 = vld [vmem:[%s3667_s4 + $0x468] sm:$0xff] }
  0x80   : > { %2340 = vst [vmem:[%s3682_s18 + $0x430] sm:$0xff] %v1316_v13  ;;  %v1322_v25 = vmul.f32 0.03125, %v298_v22  ;;  %v300_v27 = vld [vmem:[%s3667_s4 + $0x470] sm:$0xff]  ;;  %v301_v28 = vld [vmem:[%s3667_s4 + $0x478] sm:$0xff]  ;;  %2341 = vst [vmem:[%s3682_s18 + $0x438] sm:$0xff] %v1317_v17  ;;  %v1323_v29 = vmul.f32 0.03125, %v299_v26 }
  0x81   : > { %2342 = vst [vmem:[%s3682_s18 + $0x440] sm:$0xff] %v1318_v18  ;;  %2343 = vst [vmem:[%s3682_s18 + $0x448] sm:$0xff] %v1319_v19  ;;  %v1324_v30 = vmul.f32 0.03125, %v300_v27  ;;  %v1325_v31 = vmul.f32 0.03125, %v301_v28  ;;  %v302_v32 = vld [vmem:[%s3667_s4 + $0x480] sm:$0xff]  ;;  %v303_v33 = vld [vmem:[%s3667_s4 + $0x488] sm:$0xff] }
  0x82   : > { %v304_v34 = vld [vmem:[%s3667_s4 + $0x490] sm:$0xff]  ;;  %2344 = vst [vmem:[%s3682_s18 + $0x450] sm:$0xff] %v1320_v23  ;;  %2345 = vst [vmem:[%s3682_s18 + $0x458] sm:$0xff] %v1321_v24  ;;  %v1326_v35 = vmul.f32 0.03125, %v302_v32  ;;  %v1327_v36 = vmul.f32 0.03125, %v303_v33  ;;  %v305_v38 = vld [vmem:[%s3667_s4 + $0x498] sm:$0xff] }
  0x83   : > { %2346 = vst [vmem:[%s3682_s18 + $0x460] sm:$0xff] %v1322_v25  ;;  %v1328_v37 = vmul.f32 0.03125, %v304_v34  ;;  %v306_v39 = vld [vmem:[%s3667_s4 + $0x4a0] sm:$0xff]  ;;  %v307_v40 = vld [vmem:[%s3667_s4 + $0x4a8] sm:$0xff]  ;;  %2347 = vst [vmem:[%s3682_s18 + $0x468] sm:$0xff] %v1323_v29  ;;  %v1329_v41 = vmul.f32 0.03125, %v305_v38 }
  0x84   : > { %2348 = vst [vmem:[%s3682_s18 + $0x470] sm:$0xff] %v1324_v30  ;;  %2349 = vst [vmem:[%s3682_s18 + $0x478] sm:$0xff] %v1325_v31  ;;  %v1330_v42 = vmul.f32 0.03125, %v306_v39  ;;  %v1331_v43 = vmul.f32 0.03125, %v307_v40  ;;  %v308_v44 = vld [vmem:[%s3667_s4 + $0x4b0] sm:$0xff]  ;;  %v309_v45 = vld [vmem:[%s3667_s4 + $0x4b8] sm:$0xff] }
  0x85   : > { %v310_v46 = vld [vmem:[%s3667_s4 + $0x4c0] sm:$0xff]  ;;  %2350 = vst [vmem:[%s3682_s18 + $0x480] sm:$0xff] %v1326_v35  ;;  %2351 = vst [vmem:[%s3682_s18 + $0x488] sm:$0xff] %v1327_v36  ;;  %v1332_v47 = vmul.f32 0.03125, %v308_v44  ;;  %v1333_v48 = vmul.f32 0.03125, %v309_v45  ;;  %v311_v50 = vld [vmem:[%s3667_s4 + $0x4c8] sm:$0xff] }
  0x86   : > { %2352 = vst [vmem:[%s3682_s18 + $0x490] sm:$0xff] %v1328_v37  ;;  %v1334_v49 = vmul.f32 0.03125, %v310_v46  ;;  %v312_v51 = vld [vmem:[%s3667_s4 + $0x4d0] sm:$0xff]  ;;  %v313_v52 = vld [vmem:[%s3667_s4 + $0x4d8] sm:$0xff]  ;;  %2353 = vst [vmem:[%s3682_s18 + $0x498] sm:$0xff] %v1329_v41  ;;  %v1335_v53 = vmul.f32 0.03125, %v311_v50 }
  0x87   : > { %2354 = vst [vmem:[%s3682_s18 + $0x4a0] sm:$0xff] %v1330_v42  ;;  %2355 = vst [vmem:[%s3682_s18 + $0x4a8] sm:$0xff] %v1331_v43  ;;  %v1336_v54 = vmul.f32 0.03125, %v312_v51  ;;  %v1337_v55 = vmul.f32 0.03125, %v313_v52  ;;  %v314_v56 = vld [vmem:[%s3667_s4 + $0x4e0] sm:$0xff]  ;;  %v315_v57 = vld [vmem:[%s3667_s4 + $0x4e8] sm:$0xff] }
  0x88   : > { %v316_v58 = vld [vmem:[%s3667_s4 + $0x4f0] sm:$0xff]  ;;  %2356 = vst [vmem:[%s3682_s18 + $0x4b0] sm:$0xff] %v1332_v47  ;;  %2357 = vst [vmem:[%s3682_s18 + $0x4b8] sm:$0xff] %v1333_v48  ;;  %v1338_v59 = vmul.f32 0.03125, %v314_v56  ;;  %v1339_v60 = vmul.f32 0.03125, %v315_v57  ;;  %v317_v62 = vld [vmem:[%s3667_s4 + $0x4f8] sm:$0xff] }
  0x89   : > { %2358 = vst [vmem:[%s3682_s18 + $0x4c0] sm:$0xff] %v1334_v49  ;;  %v1340_v61 = vmul.f32 0.03125, %v316_v58  ;;  %v318_v63 = vld [vmem:[%s3667_s4 + $0x500] sm:$0xff]  ;;  %v319_v0 = vld [vmem:[%s3667_s4 + $0x508] sm:$0xff]  ;;  %2359 = vst [vmem:[%s3682_s18 + $0x4c8] sm:$0xff] %v1335_v53  ;;  %v1341_v1 = vmul.f32 0.03125, %v317_v62 }
  0x8a   : > { %2360 = vst [vmem:[%s3682_s18 + $0x4d0] sm:$0xff] %v1336_v54  ;;  %2361 = vst [vmem:[%s3682_s18 + $0x4d8] sm:$0xff] %v1337_v55  ;;  %v1342_v2 = vmul.f32 0.03125, %v318_v63  ;;  %v1343_v3 = vmul.f32 0.03125, %v319_v0  ;;  %v320_v4 = vld [vmem:[%s3667_s4 + $0x510] sm:$0xff]  ;;  %v321_v5 = vld [vmem:[%s3667_s4 + $0x518] sm:$0xff] }
  0x8b   : > { %v322_v6 = vld [vmem:[%s3667_s4 + $0x520] sm:$0xff]  ;;  %2362 = vst [vmem:[%s3682_s18 + $0x4e0] sm:$0xff] %v1338_v59  ;;  %2363 = vst [vmem:[%s3682_s18 + $0x4e8] sm:$0xff] %v1339_v60  ;;  %v1344_v7 = vmul.f32 0.03125, %v320_v4  ;;  %v1345_v8 = vmul.f32 0.03125, %v321_v5  ;;  %v323_v10 = vld [vmem:[%s3667_s4 + $0x528] sm:$0xff] }
  0x8c   : > { %2364 = vst [vmem:[%s3682_s18 + $0x4f0] sm:$0xff] %v1340_v61  ;;  %v1346_v9 = vmul.f32 0.03125, %v322_v6  ;;  %v324_v11 = vld [vmem:[%s3667_s4 + $0x530] sm:$0xff]  ;;  %v325_v12 = vld [vmem:[%s3667_s4 + $0x538] sm:$0xff]  ;;  %2365 = vst [vmem:[%s3682_s18 + $0x4f8] sm:$0xff] %v1341_v1  ;;  %v1347_v13 = vmul.f32 0.03125, %v323_v10 }
  0x8d   : > { %2366 = vst [vmem:[%s3682_s18 + $0x500] sm:$0xff] %v1342_v2  ;;  %2367 = vst [vmem:[%s3682_s18 + $0x508] sm:$0xff] %v1343_v3  ;;  %v1348_v14 = vmul.f32 0.03125, %v324_v11  ;;  %v1349_v15 = vmul.f32 0.03125, %v325_v12  ;;  %v326_v16 = vld [vmem:[%s3667_s4 + $0x540] sm:$0xff]  ;;  %v327_v17 = vld [vmem:[%s3667_s4 + $0x548] sm:$0xff] }
  0x8e   : > { %v328_v18 = vld [vmem:[%s3667_s4 + $0x550] sm:$0xff]  ;;  %2368 = vst [vmem:[%s3682_s18 + $0x510] sm:$0xff] %v1344_v7  ;;  %2369 = vst [vmem:[%s3682_s18 + $0x518] sm:$0xff] %v1345_v8  ;;  %v1350_v19 = vmul.f32 0.03125, %v326_v16  ;;  %v1351_v20 = vmul.f32 0.03125, %v327_v17  ;;  %v329_v22 = vld [vmem:[%s3667_s4 + $0x558] sm:$0xff] }
  0x8f   : > { %2370 = vst [vmem:[%s3682_s18 + $0x520] sm:$0xff] %v1346_v9  ;;  %v1352_v21 = vmul.f32 0.03125, %v328_v18  ;;  %v330_v23 = vld [vmem:[%s3667_s4 + $0x560] sm:$0xff]  ;;  %v331_v24 = vld [vmem:[%s3667_s4 + $0x568] sm:$0xff]  ;;  %2371 = vst [vmem:[%s3682_s18 + $0x528] sm:$0xff] %v1347_v13  ;;  %v1353_v25 = vmul.f32 0.03125, %v329_v22 }
  0x90   : > { %2372 = vst [vmem:[%s3682_s18 + $0x530] sm:$0xff] %v1348_v14  ;;  %2373 = vst [vmem:[%s3682_s18 + $0x538] sm:$0xff] %v1349_v15  ;;  %v1354_v26 = vmul.f32 0.03125, %v330_v23  ;;  %v1355_v27 = vmul.f32 0.03125, %v331_v24  ;;  %v332_v28 = vld [vmem:[%s3667_s4 + $0x570] sm:$0xff]  ;;  %v333_v29 = vld [vmem:[%s3667_s4 + $0x578] sm:$0xff] }
  0x91   : > { %v334_v30 = vld [vmem:[%s3667_s4 + $0x580] sm:$0xff]  ;;  %2374 = vst [vmem:[%s3682_s18 + $0x540] sm:$0xff] %v1350_v19  ;;  %2375 = vst [vmem:[%s3682_s18 + $0x548] sm:$0xff] %v1351_v20  ;;  %v1356_v31 = vmul.f32 0.03125, %v332_v28  ;;  %v1357_v32 = vmul.f32 0.03125, %v333_v29  ;;  %v335_v34 = vld [vmem:[%s3667_s4 + $0x588] sm:$0xff] }
  0x92   : > { %2376 = vst [vmem:[%s3682_s18 + $0x550] sm:$0xff] %v1352_v21  ;;  %v1358_v33 = vmul.f32 0.03125, %v334_v30  ;;  %v336_v35 = vld [vmem:[%s3667_s4 + $0x590] sm:$0xff]  ;;  %v337_v36 = vld [vmem:[%s3667_s4 + $0x598] sm:$0xff]  ;;  %2377 = vst [vmem:[%s3682_s18 + $0x558] sm:$0xff] %v1353_v25  ;;  %v1359_v37 = vmul.f32 0.03125, %v335_v34 }
  0x93   : > { %2378 = vst [vmem:[%s3682_s18 + $0x560] sm:$0xff] %v1354_v26  ;;  %2379 = vst [vmem:[%s3682_s18 + $0x568] sm:$0xff] %v1355_v27  ;;  %v1360_v38 = vmul.f32 0.03125, %v336_v35  ;;  %v1361_v39 = vmul.f32 0.03125, %v337_v36  ;;  %v338_v40 = vld [vmem:[%s3667_s4 + $0x5a0] sm:$0xff]  ;;  %v339_v41 = vld [vmem:[%s3667_s4 + $0x5a8] sm:$0xff] }
  0x94   : > { %v340_v42 = vld [vmem:[%s3667_s4 + $0x5b0] sm:$0xff]  ;;  %2380 = vst [vmem:[%s3682_s18 + $0x570] sm:$0xff] %v1356_v31  ;;  %2381 = vst [vmem:[%s3682_s18 + $0x578] sm:$0xff] %v1357_v32  ;;  %v1362_v43 = vmul.f32 0.03125, %v338_v40  ;;  %v1363_v44 = vmul.f32 0.03125, %v339_v41  ;;  %v341_v46 = vld [vmem:[%s3667_s4 + $0x5b8] sm:$0xff] }
  0x95   : > { %2382 = vst [vmem:[%s3682_s18 + $0x580] sm:$0xff] %v1358_v33  ;;  %v1364_v45 = vmul.f32 0.03125, %v340_v42  ;;  %v342_v47 = vld [vmem:[%s3667_s4 + $0x5c0] sm:$0xff]  ;;  %v343_v48 = vld [vmem:[%s3667_s4 + $0x5c8] sm:$0xff]  ;;  %2383 = vst [vmem:[%s3682_s18 + $0x588] sm:$0xff] %v1359_v37  ;;  %v1365_v49 = vmul.f32 0.03125, %v341_v46 }
  0x96   : > { %2384 = vst [vmem:[%s3682_s18 + $0x590] sm:$0xff] %v1360_v38  ;;  %2385 = vst [vmem:[%s3682_s18 + $0x598] sm:$0xff] %v1361_v39  ;;  %v1366_v50 = vmul.f32 0.03125, %v342_v47  ;;  %v1367_v51 = vmul.f32 0.03125, %v343_v48  ;;  %v344_v52 = vld [vmem:[%s3667_s4 + $0x5d0] sm:$0xff]  ;;  %v345_v53 = vld [vmem:[%s3667_s4 + $0x5d8] sm:$0xff] }
  0x97   : > { %v346_v54 = vld [vmem:[%s3667_s4 + $0x5e0] sm:$0xff]  ;;  %2386 = vst [vmem:[%s3682_s18 + $0x5a0] sm:$0xff] %v1362_v43  ;;  %2387 = vst [vmem:[%s3682_s18 + $0x5a8] sm:$0xff] %v1363_v44  ;;  %v1368_v55 = vmul.f32 0.03125, %v344_v52  ;;  %v1369_v56 = vmul.f32 0.03125, %v345_v53  ;;  %v347_v58 = vld [vmem:[%s3667_s4 + $0x5e8] sm:$0xff] }
  0x98   : > { %2388 = vst [vmem:[%s3682_s18 + $0x5b0] sm:$0xff] %v1364_v45  ;;  %v1370_v57 = vmul.f32 0.03125, %v346_v54  ;;  %v348_v59 = vld [vmem:[%s3667_s4 + $0x5f0] sm:$0xff]  ;;  %v349_v60 = vld [vmem:[%s3667_s4 + $0x5f8] sm:$0xff]  ;;  %2389 = vst [vmem:[%s3682_s18 + $0x5b8] sm:$0xff] %v1365_v49  ;;  %v1371_v61 = vmul.f32 0.03125, %v347_v58 }
  0x99   : > { %2390 = vst [vmem:[%s3682_s18 + $0x5c0] sm:$0xff] %v1366_v50  ;;  %2391 = vst [vmem:[%s3682_s18 + $0x5c8] sm:$0xff] %v1367_v51  ;;  %v1372_v62 = vmul.f32 0.03125, %v348_v59  ;;  %v1373_v63 = vmul.f32 0.03125, %v349_v60  ;;  %v350_v0 = vld [vmem:[%s3667_s4 + $0x600] sm:$0xff]  ;;  %v351_v1 = vld [vmem:[%s3667_s4 + $0x608] sm:$0xff] }
  0x9a   : > { %v352_v2 = vld [vmem:[%s3667_s4 + $0x610] sm:$0xff]  ;;  %2392 = vst [vmem:[%s3682_s18 + $0x5d0] sm:$0xff] %v1368_v55  ;;  %2393 = vst [vmem:[%s3682_s18 + $0x5d8] sm:$0xff] %v1369_v56  ;;  %v1374_v3 = vmul.f32 0.03125, %v350_v0  ;;  %v1375_v4 = vmul.f32 0.03125, %v351_v1  ;;  %v353_v6 = vld [vmem:[%s3667_s4 + $0x618] sm:$0xff] }
  0x9b   : > { %2394 = vst [vmem:[%s3682_s18 + $0x5e0] sm:$0xff] %v1370_v57  ;;  %v1376_v5 = vmul.f32 0.03125, %v352_v2  ;;  %v354_v7 = vld [vmem:[%s3667_s4 + $0x620] sm:$0xff]  ;;  %v355_v8 = vld [vmem:[%s3667_s4 + $0x628] sm:$0xff]  ;;  %2395 = vst [vmem:[%s3682_s18 + $0x5e8] sm:$0xff] %v1371_v61  ;;  %v1377_v9 = vmul.f32 0.03125, %v353_v6 }
  0x9c   : > { %2396 = vst [vmem:[%s3682_s18 + $0x5f0] sm:$0xff] %v1372_v62  ;;  %2397 = vst [vmem:[%s3682_s18 + $0x5f8] sm:$0xff] %v1373_v63  ;;  %v1378_v10 = vmul.f32 0.03125, %v354_v7  ;;  %v1379_v11 = vmul.f32 0.03125, %v355_v8  ;;  %v356_v12 = vld [vmem:[%s3667_s4 + $0x630] sm:$0xff]  ;;  %v357_v13 = vld [vmem:[%s3667_s4 + $0x638] sm:$0xff] }
  0x9d   : > { %v358_v14 = vld [vmem:[%s3667_s4 + $0x640] sm:$0xff]  ;;  %2398 = vst [vmem:[%s3682_s18 + $0x600] sm:$0xff] %v1374_v3  ;;  %2399 = vst [vmem:[%s3682_s18 + $0x608] sm:$0xff] %v1375_v4  ;;  %v1380_v15 = vmul.f32 0.03125, %v356_v12  ;;  %v1381_v16 = vmul.f32 0.03125, %v357_v13  ;;  %v359_v18 = vld [vmem:[%s3667_s4 + $0x648] sm:$0xff] }
  0x9e   : > { %2400 = vst [vmem:[%s3682_s18 + $0x610] sm:$0xff] %v1376_v5  ;;  %v1382_v17 = vmul.f32 0.03125, %v358_v14  ;;  %v360_v19 = vld [vmem:[%s3667_s4 + $0x650] sm:$0xff]  ;;  %v361_v20 = vld [vmem:[%s3667_s4 + $0x658] sm:$0xff]  ;;  %2401 = vst [vmem:[%s3682_s18 + $0x618] sm:$0xff] %v1377_v9  ;;  %v1383_v21 = vmul.f32 0.03125, %v359_v18 }
  0x9f   : > { %2402 = vst [vmem:[%s3682_s18 + $0x620] sm:$0xff] %v1378_v10  ;;  %2403 = vst [vmem:[%s3682_s18 + $0x628] sm:$0xff] %v1379_v11  ;;  %v1384_v22 = vmul.f32 0.03125, %v360_v19  ;;  %v1385_v23 = vmul.f32 0.03125, %v361_v20  ;;  %v362_v24 = vld [vmem:[%s3667_s4 + $0x660] sm:$0xff]  ;;  %v363_v25 = vld [vmem:[%s3667_s4 + $0x668] sm:$0xff] }
  0xa0   : > { %v364_v26 = vld [vmem:[%s3667_s4 + $0x670] sm:$0xff]  ;;  %2404 = vst [vmem:[%s3682_s18 + $0x630] sm:$0xff] %v1380_v15  ;;  %2405 = vst [vmem:[%s3682_s18 + $0x638] sm:$0xff] %v1381_v16  ;;  %v1386_v27 = vmul.f32 0.03125, %v362_v24  ;;  %v1387_v28 = vmul.f32 0.03125, %v363_v25  ;;  %v365_v30 = vld [vmem:[%s3667_s4 + $0x678] sm:$0xff] }
  0xa1   : > { %2406 = vst [vmem:[%s3682_s18 + $0x640] sm:$0xff] %v1382_v17  ;;  %v1388_v29 = vmul.f32 0.03125, %v364_v26  ;;  %v366_v31 = vld [vmem:[%s3667_s4 + $0x680] sm:$0xff]  ;;  %v367_v32 = vld [vmem:[%s3667_s4 + $0x688] sm:$0xff]  ;;  %2407 = vst [vmem:[%s3682_s18 + $0x648] sm:$0xff] %v1383_v21  ;;  %v1389_v33 = vmul.f32 0.03125, %v365_v30 }
  0xa2   : > { %2408 = vst [vmem:[%s3682_s18 + $0x650] sm:$0xff] %v1384_v22  ;;  %2409 = vst [vmem:[%s3682_s18 + $0x658] sm:$0xff] %v1385_v23  ;;  %v1390_v34 = vmul.f32 0.03125, %v366_v31  ;;  %v1391_v35 = vmul.f32 0.03125, %v367_v32  ;;  %v368_v36 = vld [vmem:[%s3667_s4 + $0x690] sm:$0xff]  ;;  %v369_v37 = vld [vmem:[%s3667_s4 + $0x698] sm:$0xff] }
  0xa3   : > { %v370_v38 = vld [vmem:[%s3667_s4 + $0x6a0] sm:$0xff]  ;;  %2410 = vst [vmem:[%s3682_s18 + $0x660] sm:$0xff] %v1386_v27  ;;  %2411 = vst [vmem:[%s3682_s18 + $0x668] sm:$0xff] %v1387_v28  ;;  %v1392_v39 = vmul.f32 0.03125, %v368_v36  ;;  %v1393_v40 = vmul.f32 0.03125, %v369_v37  ;;  %v371_v42 = vld [vmem:[%s3667_s4 + $0x6a8] sm:$0xff] }
  0xa4   : > { %2412 = vst [vmem:[%s3682_s18 + $0x670] sm:$0xff] %v1388_v29  ;;  %v1394_v41 = vmul.f32 0.03125, %v370_v38  ;;  %v372_v43 = vld [vmem:[%s3667_s4 + $0x6b0] sm:$0xff]  ;;  %v373_v44 = vld [vmem:[%s3667_s4 + $0x6b8] sm:$0xff]  ;;  %2413 = vst [vmem:[%s3682_s18 + $0x678] sm:$0xff] %v1389_v33  ;;  %v1395_v45 = vmul.f32 0.03125, %v371_v42 }
  0xa5   : > { %2414 = vst [vmem:[%s3682_s18 + $0x680] sm:$0xff] %v1390_v34  ;;  %2415 = vst [vmem:[%s3682_s18 + $0x688] sm:$0xff] %v1391_v35  ;;  %v1396_v46 = vmul.f32 0.03125, %v372_v43  ;;  %v1397_v47 = vmul.f32 0.03125, %v373_v44  ;;  %v374_v48 = vld [vmem:[%s3667_s4 + $0x6c0] sm:$0xff]  ;;  %v375_v49 = vld [vmem:[%s3667_s4 + $0x6c8] sm:$0xff] }
  0xa6   : > { %v376_v50 = vld [vmem:[%s3667_s4 + $0x6d0] sm:$0xff]  ;;  %2416 = vst [vmem:[%s3682_s18 + $0x690] sm:$0xff] %v1392_v39  ;;  %2417 = vst [vmem:[%s3682_s18 + $0x698] sm:$0xff] %v1393_v40  ;;  %v1398_v51 = vmul.f32 0.03125, %v374_v48  ;;  %v1399_v52 = vmul.f32 0.03125, %v375_v49  ;;  %v377_v54 = vld [vmem:[%s3667_s4 + $0x6d8] sm:$0xff] }
  0xa7   : > { %2418 = vst [vmem:[%s3682_s18 + $0x6a0] sm:$0xff] %v1394_v41  ;;  %v1400_v53 = vmul.f32 0.03125, %v376_v50  ;;  %v378_v55 = vld [vmem:[%s3667_s4 + $0x6e0] sm:$0xff]  ;;  %v379_v56 = vld [vmem:[%s3667_s4 + $0x6e8] sm:$0xff]  ;;  %2419 = vst [vmem:[%s3682_s18 + $0x6a8] sm:$0xff] %v1395_v45  ;;  %v1401_v57 = vmul.f32 0.03125, %v377_v54 }
  0xa8   : > { %2420 = vst [vmem:[%s3682_s18 + $0x6b0] sm:$0xff] %v1396_v46  ;;  %2421 = vst [vmem:[%s3682_s18 + $0x6b8] sm:$0xff] %v1397_v47  ;;  %v1402_v58 = vmul.f32 0.03125, %v378_v55  ;;  %v1403_v59 = vmul.f32 0.03125, %v379_v56  ;;  %v380_v60 = vld [vmem:[%s3667_s4 + $0x6f0] sm:$0xff]  ;;  %v381_v61 = vld [vmem:[%s3667_s4 + $0x6f8] sm:$0xff] }
  0xa9   : > { %v382_v62 = vld [vmem:[%s3667_s4 + $0x700] sm:$0xff]  ;;  %2422 = vst [vmem:[%s3682_s18 + $0x6c0] sm:$0xff] %v1398_v51  ;;  %2423 = vst [vmem:[%s3682_s18 + $0x6c8] sm:$0xff] %v1399_v52  ;;  %v1404_v63 = vmul.f32 0.03125, %v380_v60  ;;  %v1405_v0 = vmul.f32 0.03125, %v381_v61  ;;  %v383_v2 = vld [vmem:[%s3667_s4 + $0x708] sm:$0xff] }
  0xaa   : > { %2424 = vst [vmem:[%s3682_s18 + $0x6d0] sm:$0xff] %v1400_v53  ;;  %v1406_v1 = vmul.f32 0.03125, %v382_v62  ;;  %v384_v3 = vld [vmem:[%s3667_s4 + $0x710] sm:$0xff]  ;;  %v385_v4 = vld [vmem:[%s3667_s4 + $0x718] sm:$0xff]  ;;  %2425 = vst [vmem:[%s3682_s18 + $0x6d8] sm:$0xff] %v1401_v57  ;;  %v1407_v5 = vmul.f32 0.03125, %v383_v2 }
  0xab   : > { %2426 = vst [vmem:[%s3682_s18 + $0x6e0] sm:$0xff] %v1402_v58  ;;  %2427 = vst [vmem:[%s3682_s18 + $0x6e8] sm:$0xff] %v1403_v59  ;;  %v1408_v6 = vmul.f32 0.03125, %v384_v3  ;;  %v1409_v7 = vmul.f32 0.03125, %v385_v4  ;;  %v386_v8 = vld [vmem:[%s3667_s4 + $0x720] sm:$0xff]  ;;  %v387_v9 = vld [vmem:[%s3667_s4 + $0x728] sm:$0xff] }
  0xac   : > { %v388_v10 = vld [vmem:[%s3667_s4 + $0x730] sm:$0xff]  ;;  %2428 = vst [vmem:[%s3682_s18 + $0x6f0] sm:$0xff] %v1404_v63  ;;  %2429 = vst [vmem:[%s3682_s18 + $0x6f8] sm:$0xff] %v1405_v0  ;;  %v1410_v11 = vmul.f32 0.03125, %v386_v8  ;;  %v1411_v12 = vmul.f32 0.03125, %v387_v9  ;;  %v389_v14 = vld [vmem:[%s3667_s4 + $0x738] sm:$0xff] }
  0xad   : > { %2430 = vst [vmem:[%s3682_s18 + $0x700] sm:$0xff] %v1406_v1  ;;  %v1412_v13 = vmul.f32 0.03125, %v388_v10  ;;  %v390_v15 = vld [vmem:[%s3667_s4 + $0x740] sm:$0xff]  ;;  %v391_v16 = vld [vmem:[%s3667_s4 + $0x748] sm:$0xff]  ;;  %2431 = vst [vmem:[%s3682_s18 + $0x708] sm:$0xff] %v1407_v5  ;;  %v1413_v17 = vmul.f32 0.03125, %v389_v14 }
  0xae   : > { %2432 = vst [vmem:[%s3682_s18 + $0x710] sm:$0xff] %v1408_v6  ;;  %2433 = vst [vmem:[%s3682_s18 + $0x718] sm:$0xff] %v1409_v7  ;;  %v1414_v18 = vmul.f32 0.03125, %v390_v15  ;;  %v1415_v19 = vmul.f32 0.03125, %v391_v16  ;;  %v392_v20 = vld [vmem:[%s3667_s4 + $0x750] sm:$0xff]  ;;  %v393_v21 = vld [vmem:[%s3667_s4 + $0x758] sm:$0xff] }
  0xaf   : > { %v394_v22 = vld [vmem:[%s3667_s4 + $0x760] sm:$0xff]  ;;  %2434 = vst [vmem:[%s3682_s18 + $0x720] sm:$0xff] %v1410_v11  ;;  %2435 = vst [vmem:[%s3682_s18 + $0x728] sm:$0xff] %v1411_v12  ;;  %v1416_v23 = vmul.f32 0.03125, %v392_v20  ;;  %v1417_v24 = vmul.f32 0.03125, %v393_v21  ;;  %v395_v26 = vld [vmem:[%s3667_s4 + $0x768] sm:$0xff] }
  0xb0   : > { %2436 = vst [vmem:[%s3682_s18 + $0x730] sm:$0xff] %v1412_v13  ;;  %v1418_v25 = vmul.f32 0.03125, %v394_v22  ;;  %v396_v27 = vld [vmem:[%s3667_s4 + $0x770] sm:$0xff]  ;;  %v397_v28 = vld [vmem:[%s3667_s4 + $0x778] sm:$0xff]  ;;  %2437 = vst [vmem:[%s3682_s18 + $0x738] sm:$0xff] %v1413_v17  ;;  %v1419_v29 = vmul.f32 0.03125, %v395_v26 }
  0xb1   : > { %2438 = vst [vmem:[%s3682_s18 + $0x740] sm:$0xff] %v1414_v18  ;;  %2439 = vst [vmem:[%s3682_s18 + $0x748] sm:$0xff] %v1415_v19  ;;  %v1420_v30 = vmul.f32 0.03125, %v396_v27  ;;  %v1421_v31 = vmul.f32 0.03125, %v397_v28  ;;  %v398_v32 = vld [vmem:[%s3667_s4 + $0x780] sm:$0xff]  ;;  %v399_v33 = vld [vmem:[%s3667_s4 + $0x788] sm:$0xff] }
  0xb2   : > { %v400_v34 = vld [vmem:[%s3667_s4 + $0x790] sm:$0xff]  ;;  %2440 = vst [vmem:[%s3682_s18 + $0x750] sm:$0xff] %v1416_v23  ;;  %2441 = vst [vmem:[%s3682_s18 + $0x758] sm:$0xff] %v1417_v24  ;;  %v1422_v35 = vmul.f32 0.03125, %v398_v32  ;;  %v1423_v36 = vmul.f32 0.03125, %v399_v33  ;;  %v401_v38 = vld [vmem:[%s3667_s4 + $0x798] sm:$0xff] }
  0xb3   : > { %2442 = vst [vmem:[%s3682_s18 + $0x760] sm:$0xff] %v1418_v25  ;;  %v1424_v37 = vmul.f32 0.03125, %v400_v34  ;;  %v402_v39 = vld [vmem:[%s3667_s4 + $0x7a0] sm:$0xff]  ;;  %v403_v40 = vld [vmem:[%s3667_s4 + $0x7a8] sm:$0xff]  ;;  %2443 = vst [vmem:[%s3682_s18 + $0x768] sm:$0xff] %v1419_v29  ;;  %v1425_v41 = vmul.f32 0.03125, %v401_v38 }
  0xb4   : > { %2444 = vst [vmem:[%s3682_s18 + $0x770] sm:$0xff] %v1420_v30  ;;  %2445 = vst [vmem:[%s3682_s18 + $0x778] sm:$0xff] %v1421_v31  ;;  %v1426_v42 = vmul.f32 0.03125, %v402_v39  ;;  %v1427_v43 = vmul.f32 0.03125, %v403_v40  ;;  %v404_v44 = vld [vmem:[%s3667_s4 + $0x7b0] sm:$0xff]  ;;  %v405_v45 = vld [vmem:[%s3667_s4 + $0x7b8] sm:$0xff] }
  0xb5   : > { %v406_v46 = vld [vmem:[%s3667_s4 + $0x7c0] sm:$0xff]  ;;  %2446 = vst [vmem:[%s3682_s18 + $0x780] sm:$0xff] %v1422_v35  ;;  %2447 = vst [vmem:[%s3682_s18 + $0x788] sm:$0xff] %v1423_v36  ;;  %v1428_v47 = vmul.f32 0.03125, %v404_v44  ;;  %v1429_v48 = vmul.f32 0.03125, %v405_v45  ;;  %v407_v50 = vld [vmem:[%s3667_s4 + $0x7c8] sm:$0xff] }
  0xb6   : > { %2448 = vst [vmem:[%s3682_s18 + $0x790] sm:$0xff] %v1424_v37  ;;  %v1430_v49 = vmul.f32 0.03125, %v406_v46  ;;  %v408_v51 = vld [vmem:[%s3667_s4 + $0x7d0] sm:$0xff]  ;;  %v409_v52 = vld [vmem:[%s3667_s4 + $0x7d8] sm:$0xff]  ;;  %2449 = vst [vmem:[%s3682_s18 + $0x798] sm:$0xff] %v1425_v41  ;;  %v1431_v53 = vmul.f32 0.03125, %v407_v50 }
  0xb7   : > { %2450 = vst [vmem:[%s3682_s18 + $0x7a0] sm:$0xff] %v1426_v42  ;;  %2451 = vst [vmem:[%s3682_s18 + $0x7a8] sm:$0xff] %v1427_v43  ;;  %v1432_v54 = vmul.f32 0.03125, %v408_v51  ;;  %v1433_v55 = vmul.f32 0.03125, %v409_v52  ;;  %v410_v56 = vld [vmem:[%s3667_s4 + $0x7e0] sm:$0xff]  ;;  %v411_v57 = vld [vmem:[%s3667_s4 + $0x7e8] sm:$0xff] }
  0xb8   : > { %v412_v58 = vld [vmem:[%s3667_s4 + $0x7f0] sm:$0xff]  ;;  %2452 = vst [vmem:[%s3682_s18 + $0x7b0] sm:$0xff] %v1428_v47  ;;  %2453 = vst [vmem:[%s3682_s18 + $0x7b8] sm:$0xff] %v1429_v48  ;;  %v1434_v59 = vmul.f32 0.03125, %v410_v56  ;;  %v1435_v60 = vmul.f32 0.03125, %v411_v57  ;;  %v413_v62 = vld [vmem:[%s3667_s4 + $0x7f8] sm:$0xff] }
  0xb9   : > { %2454 = vst [vmem:[%s3682_s18 + $0x7c0] sm:$0xff] %v1430_v49  ;;  %v1436_v61 = vmul.f32 0.03125, %v412_v58  ;;  %v414_v63 = vld [vmem:[%s3667_s4 + $0x800] sm:$0xff]  ;;  %v415_v0 = vld [vmem:[%s3667_s4 + $0x808] sm:$0xff]  ;;  %2455 = vst [vmem:[%s3682_s18 + $0x7c8] sm:$0xff] %v1431_v53  ;;  %v1437_v1 = vmul.f32 0.03125, %v413_v62 }
  0xba   : > { %2456 = vst [vmem:[%s3682_s18 + $0x7d0] sm:$0xff] %v1432_v54  ;;  %2457 = vst [vmem:[%s3682_s18 + $0x7d8] sm:$0xff] %v1433_v55  ;;  %v1438_v2 = vmul.f32 0.03125, %v414_v63  ;;  %v1439_v3 = vmul.f32 0.03125, %v415_v0  ;;  %v416_v4 = vld [vmem:[%s3667_s4 + $0x810] sm:$0xff]  ;;  %v417_v5 = vld [vmem:[%s3667_s4 + $0x818] sm:$0xff] }
  0xbb   : > { %v418_v6 = vld [vmem:[%s3667_s4 + $0x820] sm:$0xff]  ;;  %2458 = vst [vmem:[%s3682_s18 + $0x7e0] sm:$0xff] %v1434_v59  ;;  %2459 = vst [vmem:[%s3682_s18 + $0x7e8] sm:$0xff] %v1435_v60  ;;  %v1440_v7 = vmul.f32 0.03125, %v416_v4  ;;  %v1441_v8 = vmul.f32 0.03125, %v417_v5  ;;  %v419_v10 = vld [vmem:[%s3667_s4 + $0x828] sm:$0xff] }
  0xbc   : > { %2460 = vst [vmem:[%s3682_s18 + $0x7f0] sm:$0xff] %v1436_v61  ;;  %v1442_v9 = vmul.f32 0.03125, %v418_v6  ;;  %v420_v11 = vld [vmem:[%s3667_s4 + $0x830] sm:$0xff]  ;;  %v421_v12 = vld [vmem:[%s3667_s4 + $0x838] sm:$0xff]  ;;  %2461 = vst [vmem:[%s3682_s18 + $0x7f8] sm:$0xff] %v1437_v1  ;;  %v1443_v13 = vmul.f32 0.03125, %v419_v10 }
  0xbd   : > { %2462 = vst [vmem:[%s3682_s18 + $0x800] sm:$0xff] %v1438_v2  ;;  %2463 = vst [vmem:[%s3682_s18 + $0x808] sm:$0xff] %v1439_v3  ;;  %v1444_v14 = vmul.f32 0.03125, %v420_v11  ;;  %v1445_v15 = vmul.f32 0.03125, %v421_v12  ;;  %v422_v16 = vld [vmem:[%s3667_s4 + $0x840] sm:$0xff]  ;;  %v423_v17 = vld [vmem:[%s3667_s4 + $0x848] sm:$0xff] }
  0xbe   : > { %v424_v18 = vld [vmem:[%s3667_s4 + $0x850] sm:$0xff]  ;;  %2464 = vst [vmem:[%s3682_s18 + $0x810] sm:$0xff] %v1440_v7  ;;  %2465 = vst [vmem:[%s3682_s18 + $0x818] sm:$0xff] %v1441_v8  ;;  %v1446_v19 = vmul.f32 0.03125, %v422_v16  ;;  %v1447_v20 = vmul.f32 0.03125, %v423_v17  ;;  %v425_v22 = vld [vmem:[%s3667_s4 + $0x858] sm:$0xff] }
  0xbf   : > { %2466 = vst [vmem:[%s3682_s18 + $0x820] sm:$0xff] %v1442_v9  ;;  %v1448_v21 = vmul.f32 0.03125, %v424_v18  ;;  %v426_v23 = vld [vmem:[%s3667_s4 + $0x860] sm:$0xff]  ;;  %v427_v24 = vld [vmem:[%s3667_s4 + $0x868] sm:$0xff]  ;;  %2467 = vst [vmem:[%s3682_s18 + $0x828] sm:$0xff] %v1443_v13  ;;  %v1449_v25 = vmul.f32 0.03125, %v425_v22 }
  0xc0   : > { %2468 = vst [vmem:[%s3682_s18 + $0x830] sm:$0xff] %v1444_v14  ;;  %2469 = vst [vmem:[%s3682_s18 + $0x838] sm:$0xff] %v1445_v15  ;;  %v1450_v26 = vmul.f32 0.03125, %v426_v23  ;;  %v1451_v27 = vmul.f32 0.03125, %v427_v24  ;;  %v428_v28 = vld [vmem:[%s3667_s4 + $0x870] sm:$0xff]  ;;  %v429_v29 = vld [vmem:[%s3667_s4 + $0x878] sm:$0xff] }
  0xc1   : > { %v430_v30 = vld [vmem:[%s3667_s4 + $0x880] sm:$0xff]  ;;  %2470 = vst [vmem:[%s3682_s18 + $0x840] sm:$0xff] %v1446_v19  ;;  %2471 = vst [vmem:[%s3682_s18 + $0x848] sm:$0xff] %v1447_v20  ;;  %v1452_v31 = vmul.f32 0.03125, %v428_v28  ;;  %v1453_v32 = vmul.f32 0.03125, %v429_v29  ;;  %v431_v34 = vld [vmem:[%s3667_s4 + $0x888] sm:$0xff] }
  0xc2   : > { %2472 = vst [vmem:[%s3682_s18 + $0x850] sm:$0xff] %v1448_v21  ;;  %v1454_v33 = vmul.f32 0.03125, %v430_v30  ;;  %v432_v35 = vld [vmem:[%s3667_s4 + $0x890] sm:$0xff]  ;;  %v433_v36 = vld [vmem:[%s3667_s4 + $0x898] sm:$0xff]  ;;  %2473 = vst [vmem:[%s3682_s18 + $0x858] sm:$0xff] %v1449_v25  ;;  %v1455_v37 = vmul.f32 0.03125, %v431_v34 }
  0xc3   : > { %2474 = vst [vmem:[%s3682_s18 + $0x860] sm:$0xff] %v1450_v26  ;;  %2475 = vst [vmem:[%s3682_s18 + $0x868] sm:$0xff] %v1451_v27  ;;  %v1456_v38 = vmul.f32 0.03125, %v432_v35  ;;  %v1457_v39 = vmul.f32 0.03125, %v433_v36  ;;  %v434_v40 = vld [vmem:[%s3667_s4 + $0x8a0] sm:$0xff]  ;;  %v435_v41 = vld [vmem:[%s3667_s4 + $0x8a8] sm:$0xff] }
  0xc4   : > { %v436_v42 = vld [vmem:[%s3667_s4 + $0x8b0] sm:$0xff]  ;;  %2476 = vst [vmem:[%s3682_s18 + $0x870] sm:$0xff] %v1452_v31  ;;  %2477 = vst [vmem:[%s3682_s18 + $0x878] sm:$0xff] %v1453_v32  ;;  %v1458_v43 = vmul.f32 0.03125, %v434_v40  ;;  %v1459_v44 = vmul.f32 0.03125, %v435_v41  ;;  %v437_v46 = vld [vmem:[%s3667_s4 + $0x8b8] sm:$0xff] }
  0xc5   : > { %2478 = vst [vmem:[%s3682_s18 + $0x880] sm:$0xff] %v1454_v33  ;;  %v1460_v45 = vmul.f32 0.03125, %v436_v42  ;;  %v438_v47 = vld [vmem:[%s3667_s4 + $0x8c0] sm:$0xff]  ;;  %v439_v48 = vld [vmem:[%s3667_s4 + $0x8c8] sm:$0xff]  ;;  %2479 = vst [vmem:[%s3682_s18 + $0x888] sm:$0xff] %v1455_v37  ;;  %v1461_v49 = vmul.f32 0.03125, %v437_v46 }
  0xc6   : > { %2480 = vst [vmem:[%s3682_s18 + $0x890] sm:$0xff] %v1456_v38  ;;  %2481 = vst [vmem:[%s3682_s18 + $0x898] sm:$0xff] %v1457_v39  ;;  %v1462_v50 = vmul.f32 0.03125, %v438_v47  ;;  %v1463_v51 = vmul.f32 0.03125, %v439_v48  ;;  %v440_v52 = vld [vmem:[%s3667_s4 + $0x8d0] sm:$0xff]  ;;  %v441_v53 = vld [vmem:[%s3667_s4 + $0x8d8] sm:$0xff] }
  0xc7   : > { %v442_v54 = vld [vmem:[%s3667_s4 + $0x8e0] sm:$0xff]  ;;  %2482 = vst [vmem:[%s3682_s18 + $0x8a0] sm:$0xff] %v1458_v43  ;;  %2483 = vst [vmem:[%s3682_s18 + $0x8a8] sm:$0xff] %v1459_v44  ;;  %v1464_v55 = vmul.f32 0.03125, %v440_v52  ;;  %v1465_v56 = vmul.f32 0.03125, %v441_v53  ;;  %v443_v58 = vld [vmem:[%s3667_s4 + $0x8e8] sm:$0xff] }
  0xc8   : > { %2484 = vst [vmem:[%s3682_s18 + $0x8b0] sm:$0xff] %v1460_v45  ;;  %v1466_v57 = vmul.f32 0.03125, %v442_v54  ;;  %v444_v59 = vld [vmem:[%s3667_s4 + $0x8f0] sm:$0xff]  ;;  %v445_v60 = vld [vmem:[%s3667_s4 + $0x8f8] sm:$0xff]  ;;  %2485 = vst [vmem:[%s3682_s18 + $0x8b8] sm:$0xff] %v1461_v49  ;;  %v1467_v61 = vmul.f32 0.03125, %v443_v58 }
  0xc9   : > { %2486 = vst [vmem:[%s3682_s18 + $0x8c0] sm:$0xff] %v1462_v50  ;;  %2487 = vst [vmem:[%s3682_s18 + $0x8c8] sm:$0xff] %v1463_v51  ;;  %v1468_v62 = vmul.f32 0.03125, %v444_v59  ;;  %v1469_v63 = vmul.f32 0.03125, %v445_v60  ;;  %v446_v0 = vld [vmem:[%s3667_s4 + $0x900] sm:$0xff]  ;;  %v447_v1 = vld [vmem:[%s3667_s4 + $0x908] sm:$0xff] }
  0xca   : > { %v448_v2 = vld [vmem:[%s3667_s4 + $0x910] sm:$0xff]  ;;  %2488 = vst [vmem:[%s3682_s18 + $0x8d0] sm:$0xff] %v1464_v55  ;;  %2489 = vst [vmem:[%s3682_s18 + $0x8d8] sm:$0xff] %v1465_v56  ;;  %v1470_v3 = vmul.f32 0.03125, %v446_v0  ;;  %v1471_v4 = vmul.f32 0.03125, %v447_v1  ;;  %v449_v6 = vld [vmem:[%s3667_s4 + $0x918] sm:$0xff] }
  0xcb   : > { %2490 = vst [vmem:[%s3682_s18 + $0x8e0] sm:$0xff] %v1466_v57  ;;  %v1472_v5 = vmul.f32 0.03125, %v448_v2  ;;  %v450_v7 = vld [vmem:[%s3667_s4 + $0x920] sm:$0xff]  ;;  %v451_v8 = vld [vmem:[%s3667_s4 + $0x928] sm:$0xff]  ;;  %2491 = vst [vmem:[%s3682_s18 + $0x8e8] sm:$0xff] %v1467_v61  ;;  %v1473_v9 = vmul.f32 0.03125, %v449_v6 }
  0xcc   : > { %2492 = vst [vmem:[%s3682_s18 + $0x8f0] sm:$0xff] %v1468_v62  ;;  %2493 = vst [vmem:[%s3682_s18 + $0x8f8] sm:$0xff] %v1469_v63  ;;  %v1474_v10 = vmul.f32 0.03125, %v450_v7  ;;  %v1475_v11 = vmul.f32 0.03125, %v451_v8  ;;  %v452_v12 = vld [vmem:[%s3667_s4 + $0x930] sm:$0xff]  ;;  %v453_v13 = vld [vmem:[%s3667_s4 + $0x938] sm:$0xff] }
  0xcd   : > { %v454_v14 = vld [vmem:[%s3667_s4 + $0x940] sm:$0xff]  ;;  %2494 = vst [vmem:[%s3682_s18 + $0x900] sm:$0xff] %v1470_v3  ;;  %2495 = vst [vmem:[%s3682_s18 + $0x908] sm:$0xff] %v1471_v4  ;;  %v1476_v15 = vmul.f32 0.03125, %v452_v12  ;;  %v1477_v16 = vmul.f32 0.03125, %v453_v13  ;;  %v455_v18 = vld [vmem:[%s3667_s4 + $0x948] sm:$0xff] }
  0xce   : > { %2496 = vst [vmem:[%s3682_s18 + $0x910] sm:$0xff] %v1472_v5  ;;  %v1478_v17 = vmul.f32 0.03125, %v454_v14  ;;  %v456_v19 = vld [vmem:[%s3667_s4 + $0x950] sm:$0xff]  ;;  %v457_v20 = vld [vmem:[%s3667_s4 + $0x958] sm:$0xff]  ;;  %2497 = vst [vmem:[%s3682_s18 + $0x918] sm:$0xff] %v1473_v9  ;;  %v1479_v21 = vmul.f32 0.03125, %v455_v18 }
  0xcf   : > { %2498 = vst [vmem:[%s3682_s18 + $0x920] sm:$0xff] %v1474_v10  ;;  %2499 = vst [vmem:[%s3682_s18 + $0x928] sm:$0xff] %v1475_v11  ;;  %v1480_v22 = vmul.f32 0.03125, %v456_v19  ;;  %v1481_v23 = vmul.f32 0.03125, %v457_v20  ;;  %v458_v24 = vld [vmem:[%s3667_s4 + $0x960] sm:$0xff]  ;;  %v459_v25 = vld [vmem:[%s3667_s4 + $0x968] sm:$0xff] }
  0xd0   : > { %v460_v26 = vld [vmem:[%s3667_s4 + $0x970] sm:$0xff]  ;;  %2500 = vst [vmem:[%s3682_s18 + $0x930] sm:$0xff] %v1476_v15  ;;  %2501 = vst [vmem:[%s3682_s18 + $0x938] sm:$0xff] %v1477_v16  ;;  %v1482_v27 = vmul.f32 0.03125, %v458_v24  ;;  %v1483_v28 = vmul.f32 0.03125, %v459_v25  ;;  %v461_v30 = vld [vmem:[%s3667_s4 + $0x978] sm:$0xff] }
  0xd1   : > { %2502 = vst [vmem:[%s3682_s18 + $0x940] sm:$0xff] %v1478_v17  ;;  %v1484_v29 = vmul.f32 0.03125, %v460_v26  ;;  %v462_v31 = vld [vmem:[%s3667_s4 + $0x980] sm:$0xff]  ;;  %v463_v32 = vld [vmem:[%s3667_s4 + $0x988] sm:$0xff]  ;;  %2503 = vst [vmem:[%s3682_s18 + $0x948] sm:$0xff] %v1479_v21  ;;  %v1485_v33 = vmul.f32 0.03125, %v461_v30 }
  0xd2   : > { %2504 = vst [vmem:[%s3682_s18 + $0x950] sm:$0xff] %v1480_v22  ;;  %2505 = vst [vmem:[%s3682_s18 + $0x958] sm:$0xff] %v1481_v23  ;;  %v1486_v34 = vmul.f32 0.03125, %v462_v31  ;;  %v1487_v35 = vmul.f32 0.03125, %v463_v32  ;;  %v464_v36 = vld [vmem:[%s3667_s4 + $0x990] sm:$0xff]  ;;  %v465_v37 = vld [vmem:[%s3667_s4 + $0x998] sm:$0xff] }
  0xd3   : > { %v466_v38 = vld [vmem:[%s3667_s4 + $0x9a0] sm:$0xff]  ;;  %2506 = vst [vmem:[%s3682_s18 + $0x960] sm:$0xff] %v1482_v27  ;;  %2507 = vst [vmem:[%s3682_s18 + $0x968] sm:$0xff] %v1483_v28  ;;  %v1488_v39 = vmul.f32 0.03125, %v464_v36  ;;  %v1489_v40 = vmul.f32 0.03125, %v465_v37  ;;  %v467_v42 = vld [vmem:[%s3667_s4 + $0x9a8] sm:$0xff] }
  0xd4   : > { %2508 = vst [vmem:[%s3682_s18 + $0x970] sm:$0xff] %v1484_v29  ;;  %v1490_v41 = vmul.f32 0.03125, %v466_v38  ;;  %v468_v43 = vld [vmem:[%s3667_s4 + $0x9b0] sm:$0xff]  ;;  %v469_v44 = vld [vmem:[%s3667_s4 + $0x9b8] sm:$0xff]  ;;  %2509 = vst [vmem:[%s3682_s18 + $0x978] sm:$0xff] %v1485_v33  ;;  %v1491_v45 = vmul.f32 0.03125, %v467_v42 }
  0xd5   : > { %2510 = vst [vmem:[%s3682_s18 + $0x980] sm:$0xff] %v1486_v34  ;;  %2511 = vst [vmem:[%s3682_s18 + $0x988] sm:$0xff] %v1487_v35  ;;  %v1492_v46 = vmul.f32 0.03125, %v468_v43  ;;  %v1493_v47 = vmul.f32 0.03125, %v469_v44  ;;  %v470_v48 = vld [vmem:[%s3667_s4 + $0x9c0] sm:$0xff]  ;;  %v471_v49 = vld [vmem:[%s3667_s4 + $0x9c8] sm:$0xff] }
  0xd6   : > { %v472_v50 = vld [vmem:[%s3667_s4 + $0x9d0] sm:$0xff]  ;;  %2512 = vst [vmem:[%s3682_s18 + $0x990] sm:$0xff] %v1488_v39  ;;  %2513 = vst [vmem:[%s3682_s18 + $0x998] sm:$0xff] %v1489_v40  ;;  %v1494_v51 = vmul.f32 0.03125, %v470_v48  ;;  %v1495_v52 = vmul.f32 0.03125, %v471_v49  ;;  %v473_v54 = vld [vmem:[%s3667_s4 + $0x9d8] sm:$0xff] }
  0xd7   : > { %2514 = vst [vmem:[%s3682_s18 + $0x9a0] sm:$0xff] %v1490_v41  ;;  %v1496_v53 = vmul.f32 0.03125, %v472_v50  ;;  %v474_v55 = vld [vmem:[%s3667_s4 + $0x9e0] sm:$0xff]  ;;  %v475_v56 = vld [vmem:[%s3667_s4 + $0x9e8] sm:$0xff]  ;;  %2515 = vst [vmem:[%s3682_s18 + $0x9a8] sm:$0xff] %v1491_v45  ;;  %v1497_v57 = vmul.f32 0.03125, %v473_v54 }
  0xd8   : > { %2516 = vst [vmem:[%s3682_s18 + $0x9b0] sm:$0xff] %v1492_v46  ;;  %2517 = vst [vmem:[%s3682_s18 + $0x9b8] sm:$0xff] %v1493_v47  ;;  %v1498_v58 = vmul.f32 0.03125, %v474_v55  ;;  %v1499_v59 = vmul.f32 0.03125, %v475_v56  ;;  %v476_v60 = vld [vmem:[%s3667_s4 + $0x9f0] sm:$0xff]  ;;  %v477_v61 = vld [vmem:[%s3667_s4 + $0x9f8] sm:$0xff] }
  0xd9   : > { %v478_v62 = vld [vmem:[%s3667_s4 + $0xa00] sm:$0xff]  ;;  %2518 = vst [vmem:[%s3682_s18 + $0x9c0] sm:$0xff] %v1494_v51  ;;  %2519 = vst [vmem:[%s3682_s18 + $0x9c8] sm:$0xff] %v1495_v52  ;;  %v1500_v63 = vmul.f32 0.03125, %v476_v60  ;;  %v1501_v0 = vmul.f32 0.03125, %v477_v61  ;;  %v479_v2 = vld [vmem:[%s3667_s4 + $0xa08] sm:$0xff] }
  0xda   : > { %2520 = vst [vmem:[%s3682_s18 + $0x9d0] sm:$0xff] %v1496_v53  ;;  %v1502_v1 = vmul.f32 0.03125, %v478_v62  ;;  %v480_v3 = vld [vmem:[%s3667_s4 + $0xa10] sm:$0xff]  ;;  %v481_v4 = vld [vmem:[%s3667_s4 + $0xa18] sm:$0xff]  ;;  %2521 = vst [vmem:[%s3682_s18 + $0x9d8] sm:$0xff] %v1497_v57  ;;  %v1503_v5 = vmul.f32 0.03125, %v479_v2 }
  0xdb   : > { %2522 = vst [vmem:[%s3682_s18 + $0x9e0] sm:$0xff] %v1498_v58  ;;  %2523 = vst [vmem:[%s3682_s18 + $0x9e8] sm:$0xff] %v1499_v59  ;;  %v1504_v6 = vmul.f32 0.03125, %v480_v3  ;;  %v1505_v7 = vmul.f32 0.03125, %v481_v4  ;;  %v482_v8 = vld [vmem:[%s3667_s4 + $0xa20] sm:$0xff]  ;;  %v483_v9 = vld [vmem:[%s3667_s4 + $0xa28] sm:$0xff] }
  0xdc   : > { %v484_v10 = vld [vmem:[%s3667_s4 + $0xa30] sm:$0xff]  ;;  %2524 = vst [vmem:[%s3682_s18 + $0x9f0] sm:$0xff] %v1500_v63  ;;  %2525 = vst [vmem:[%s3682_s18 + $0x9f8] sm:$0xff] %v1501_v0  ;;  %v1506_v11 = vmul.f32 0.03125, %v482_v8  ;;  %v1507_v12 = vmul.f32 0.03125, %v483_v9  ;;  %v485_v14 = vld [vmem:[%s3667_s4 + $0xa38] sm:$0xff] }
  0xdd   : > { %2526 = vst [vmem:[%s3682_s18 + $0xa00] sm:$0xff] %v1502_v1  ;;  %v1508_v13 = vmul.f32 0.03125, %v484_v10  ;;  %v486_v15 = vld [vmem:[%s3667_s4 + $0xa40] sm:$0xff]  ;;  %v487_v16 = vld [vmem:[%s3667_s4 + $0xa48] sm:$0xff]  ;;  %2527 = vst [vmem:[%s3682_s18 + $0xa08] sm:$0xff] %v1503_v5  ;;  %v1509_v17 = vmul.f32 0.03125, %v485_v14 }
  0xde   : > { %2528 = vst [vmem:[%s3682_s18 + $0xa10] sm:$0xff] %v1504_v6  ;;  %2529 = vst [vmem:[%s3682_s18 + $0xa18] sm:$0xff] %v1505_v7  ;;  %v1510_v18 = vmul.f32 0.03125, %v486_v15  ;;  %v1511_v19 = vmul.f32 0.03125, %v487_v16  ;;  %v488_v20 = vld [vmem:[%s3667_s4 + $0xa50] sm:$0xff]  ;;  %v489_v21 = vld [vmem:[%s3667_s4 + $0xa58] sm:$0xff] }
  0xdf   : > { %v490_v22 = vld [vmem:[%s3667_s4 + $0xa60] sm:$0xff]  ;;  %2530 = vst [vmem:[%s3682_s18 + $0xa20] sm:$0xff] %v1506_v11  ;;  %2531 = vst [vmem:[%s3682_s18 + $0xa28] sm:$0xff] %v1507_v12  ;;  %v1512_v23 = vmul.f32 0.03125, %v488_v20  ;;  %v1513_v24 = vmul.f32 0.03125, %v489_v21  ;;  %v491_v26 = vld [vmem:[%s3667_s4 + $0xa68] sm:$0xff] }
  0xe0   : > { %2532 = vst [vmem:[%s3682_s18 + $0xa30] sm:$0xff] %v1508_v13  ;;  %v1514_v25 = vmul.f32 0.03125, %v490_v22  ;;  %v492_v27 = vld [vmem:[%s3667_s4 + $0xa70] sm:$0xff]  ;;  %v493_v28 = vld [vmem:[%s3667_s4 + $0xa78] sm:$0xff]  ;;  %2533 = vst [vmem:[%s3682_s18 + $0xa38] sm:$0xff] %v1509_v17  ;;  %v1515_v29 = vmul.f32 0.03125, %v491_v26 }
  0xe1   : > { %2534 = vst [vmem:[%s3682_s18 + $0xa40] sm:$0xff] %v1510_v18  ;;  %2535 = vst [vmem:[%s3682_s18 + $0xa48] sm:$0xff] %v1511_v19  ;;  %v1516_v30 = vmul.f32 0.03125, %v492_v27  ;;  %v1517_v31 = vmul.f32 0.03125, %v493_v28  ;;  %v494_v32 = vld [vmem:[%s3667_s4 + $0xa80] sm:$0xff]  ;;  %v495_v33 = vld [vmem:[%s3667_s4 + $0xa88] sm:$0xff] }
  0xe2   : > { %v496_v34 = vld [vmem:[%s3667_s4 + $0xa90] sm:$0xff]  ;;  %2536 = vst [vmem:[%s3682_s18 + $0xa50] sm:$0xff] %v1512_v23  ;;  %2537 = vst [vmem:[%s3682_s18 + $0xa58] sm:$0xff] %v1513_v24  ;;  %v1518_v35 = vmul.f32 0.03125, %v494_v32  ;;  %v1519_v36 = vmul.f32 0.03125, %v495_v33  ;;  %v497_v38 = vld [vmem:[%s3667_s4 + $0xa98] sm:$0xff] }
  0xe3   : > { %2538 = vst [vmem:[%s3682_s18 + $0xa60] sm:$0xff] %v1514_v25  ;;  %v1520_v37 = vmul.f32 0.03125, %v496_v34  ;;  %v498_v39 = vld [vmem:[%s3667_s4 + $0xaa0] sm:$0xff]  ;;  %v499_v40 = vld [vmem:[%s3667_s4 + $0xaa8] sm:$0xff]  ;;  %2539 = vst [vmem:[%s3682_s18 + $0xa68] sm:$0xff] %v1515_v29  ;;  %v1521_v41 = vmul.f32 0.03125, %v497_v38 }
  0xe4   : > { %2540 = vst [vmem:[%s3682_s18 + $0xa70] sm:$0xff] %v1516_v30  ;;  %2541 = vst [vmem:[%s3682_s18 + $0xa78] sm:$0xff] %v1517_v31  ;;  %v1522_v42 = vmul.f32 0.03125, %v498_v39  ;;  %v1523_v43 = vmul.f32 0.03125, %v499_v40  ;;  %v500_v44 = vld [vmem:[%s3667_s4 + $0xab0] sm:$0xff]  ;;  %v501_v45 = vld [vmem:[%s3667_s4 + $0xab8] sm:$0xff] }
  0xe5   : > { %v502_v46 = vld [vmem:[%s3667_s4 + $0xac0] sm:$0xff]  ;;  %2542 = vst [vmem:[%s3682_s18 + $0xa80] sm:$0xff] %v1518_v35  ;;  %2543 = vst [vmem:[%s3682_s18 + $0xa88] sm:$0xff] %v1519_v36  ;;  %v1524_v47 = vmul.f32 0.03125, %v500_v44  ;;  %v1525_v48 = vmul.f32 0.03125, %v501_v45  ;;  %v503_v50 = vld [vmem:[%s3667_s4 + $0xac8] sm:$0xff] }
  0xe6   : > { %2544 = vst [vmem:[%s3682_s18 + $0xa90] sm:$0xff] %v1520_v37  ;;  %v1526_v49 = vmul.f32 0.03125, %v502_v46  ;;  %v504_v51 = vld [vmem:[%s3667_s4 + $0xad0] sm:$0xff]  ;;  %v505_v52 = vld [vmem:[%s3667_s4 + $0xad8] sm:$0xff]  ;;  %2545 = vst [vmem:[%s3682_s18 + $0xa98] sm:$0xff] %v1521_v41  ;;  %v1527_v53 = vmul.f32 0.03125, %v503_v50 }
  0xe7   : > { %2546 = vst [vmem:[%s3682_s18 + $0xaa0] sm:$0xff] %v1522_v42  ;;  %2547 = vst [vmem:[%s3682_s18 + $0xaa8] sm:$0xff] %v1523_v43  ;;  %v1528_v54 = vmul.f32 0.03125, %v504_v51  ;;  %v1529_v55 = vmul.f32 0.03125, %v505_v52  ;;  %v506_v56 = vld [vmem:[%s3667_s4 + $0xae0] sm:$0xff]  ;;  %v507_v57 = vld [vmem:[%s3667_s4 + $0xae8] sm:$0xff] }
  0xe8   : > { %v508_v58 = vld [vmem:[%s3667_s4 + $0xaf0] sm:$0xff]  ;;  %2548 = vst [vmem:[%s3682_s18 + $0xab0] sm:$0xff] %v1524_v47  ;;  %2549 = vst [vmem:[%s3682_s18 + $0xab8] sm:$0xff] %v1525_v48  ;;  %v1530_v59 = vmul.f32 0.03125, %v506_v56  ;;  %v1531_v60 = vmul.f32 0.03125, %v507_v57  ;;  %v509_v62 = vld [vmem:[%s3667_s4 + $0xaf8] sm:$0xff] }
  0xe9   : > { %2550 = vst [vmem:[%s3682_s18 + $0xac0] sm:$0xff] %v1526_v49  ;;  %v1532_v61 = vmul.f32 0.03125, %v508_v58  ;;  %v510_v63 = vld [vmem:[%s3667_s4 + $0xb00] sm:$0xff]  ;;  %v511_v0 = vld [vmem:[%s3667_s4 + $0xb08] sm:$0xff]  ;;  %2551 = vst [vmem:[%s3682_s18 + $0xac8] sm:$0xff] %v1527_v53  ;;  %v1533_v1 = vmul.f32 0.03125, %v509_v62 }
  0xea   : > { %2552 = vst [vmem:[%s3682_s18 + $0xad0] sm:$0xff] %v1528_v54  ;;  %2553 = vst [vmem:[%s3682_s18 + $0xad8] sm:$0xff] %v1529_v55  ;;  %v1534_v2 = vmul.f32 0.03125, %v510_v63  ;;  %v1535_v3 = vmul.f32 0.03125, %v511_v0  ;;  %v512_v4 = vld [vmem:[%s3667_s4 + $0xb10] sm:$0xff]  ;;  %v513_v5 = vld [vmem:[%s3667_s4 + $0xb18] sm:$0xff] }
  0xeb   : > { %v514_v6 = vld [vmem:[%s3667_s4 + $0xb20] sm:$0xff]  ;;  %2554 = vst [vmem:[%s3682_s18 + $0xae0] sm:$0xff] %v1530_v59  ;;  %2555 = vst [vmem:[%s3682_s18 + $0xae8] sm:$0xff] %v1531_v60  ;;  %v1536_v7 = vmul.f32 0.03125, %v512_v4  ;;  %v1537_v8 = vmul.f32 0.03125, %v513_v5  ;;  %v515_v10 = vld [vmem:[%s3667_s4 + $0xb28] sm:$0xff] }
  0xec   : > { %2556 = vst [vmem:[%s3682_s18 + $0xaf0] sm:$0xff] %v1532_v61  ;;  %v1538_v9 = vmul.f32 0.03125, %v514_v6  ;;  %v516_v11 = vld [vmem:[%s3667_s4 + $0xb30] sm:$0xff]  ;;  %v517_v12 = vld [vmem:[%s3667_s4 + $0xb38] sm:$0xff]  ;;  %2557 = vst [vmem:[%s3682_s18 + $0xaf8] sm:$0xff] %v1533_v1  ;;  %v1539_v13 = vmul.f32 0.03125, %v515_v10 }
  0xed   : > { %2558 = vst [vmem:[%s3682_s18 + $0xb00] sm:$0xff] %v1534_v2  ;;  %2559 = vst [vmem:[%s3682_s18 + $0xb08] sm:$0xff] %v1535_v3  ;;  %v1540_v14 = vmul.f32 0.03125, %v516_v11  ;;  %v1541_v15 = vmul.f32 0.03125, %v517_v12  ;;  %v518_v16 = vld [vmem:[%s3667_s4 + $0xb40] sm:$0xff]  ;;  %v519_v17 = vld [vmem:[%s3667_s4 + $0xb48] sm:$0xff] }
  0xee   : > { %v520_v18 = vld [vmem:[%s3667_s4 + $0xb50] sm:$0xff]  ;;  %2560 = vst [vmem:[%s3682_s18 + $0xb10] sm:$0xff] %v1536_v7  ;;  %2561 = vst [vmem:[%s3682_s18 + $0xb18] sm:$0xff] %v1537_v8  ;;  %v1542_v19 = vmul.f32 0.03125, %v518_v16  ;;  %v1543_v20 = vmul.f32 0.03125, %v519_v17  ;;  %v521_v22 = vld [vmem:[%s3667_s4 + $0xb58] sm:$0xff] }
  0xef   : > { %2562 = vst [vmem:[%s3682_s18 + $0xb20] sm:$0xff] %v1538_v9  ;;  %v1544_v21 = vmul.f32 0.03125, %v520_v18  ;;  %v522_v23 = vld [vmem:[%s3667_s4 + $0xb60] sm:$0xff]  ;;  %v523_v24 = vld [vmem:[%s3667_s4 + $0xb68] sm:$0xff]  ;;  %2563 = vst [vmem:[%s3682_s18 + $0xb28] sm:$0xff] %v1539_v13  ;;  %v1545_v25 = vmul.f32 0.03125, %v521_v22 }
  0xf0   : > { %2564 = vst [vmem:[%s3682_s18 + $0xb30] sm:$0xff] %v1540_v14  ;;  %2565 = vst [vmem:[%s3682_s18 + $0xb38] sm:$0xff] %v1541_v15  ;;  %v1546_v26 = vmul.f32 0.03125, %v522_v23  ;;  %v1547_v27 = vmul.f32 0.03125, %v523_v24  ;;  %v524_v28 = vld [vmem:[%s3667_s4 + $0xb70] sm:$0xff]  ;;  %v525_v29 = vld [vmem:[%s3667_s4 + $0xb78] sm:$0xff] }
  0xf1   : > { %v526_v30 = vld [vmem:[%s3667_s4 + $0xb80] sm:$0xff]  ;;  %2566 = vst [vmem:[%s3682_s18 + $0xb40] sm:$0xff] %v1542_v19  ;;  %2567 = vst [vmem:[%s3682_s18 + $0xb48] sm:$0xff] %v1543_v20  ;;  %v1548_v31 = vmul.f32 0.03125, %v524_v28  ;;  %v1549_v32 = vmul.f32 0.03125, %v525_v29  ;;  %v527_v34 = vld [vmem:[%s3667_s4 + $0xb88] sm:$0xff] }
  0xf2   : > { %2568 = vst [vmem:[%s3682_s18 + $0xb50] sm:$0xff] %v1544_v21  ;;  %v1550_v33 = vmul.f32 0.03125, %v526_v30  ;;  %v528_v35 = vld [vmem:[%s3667_s4 + $0xb90] sm:$0xff]  ;;  %v529_v36 = vld [vmem:[%s3667_s4 + $0xb98] sm:$0xff]  ;;  %2569 = vst [vmem:[%s3682_s18 + $0xb58] sm:$0xff] %v1545_v25  ;;  %v1551_v37 = vmul.f32 0.03125, %v527_v34 }
  0xf3   : > { %2570 = vst [vmem:[%s3682_s18 + $0xb60] sm:$0xff] %v1546_v26  ;;  %2571 = vst [vmem:[%s3682_s18 + $0xb68] sm:$0xff] %v1547_v27  ;;  %v1552_v38 = vmul.f32 0.03125, %v528_v35  ;;  %v1553_v39 = vmul.f32 0.03125, %v529_v36  ;;  %v530_v40 = vld [vmem:[%s3667_s4 + $0xba0] sm:$0xff]  ;;  %v531_v41 = vld [vmem:[%s3667_s4 + $0xba8] sm:$0xff] }
  0xf4   : > { %v532_v42 = vld [vmem:[%s3667_s4 + $0xbb0] sm:$0xff]  ;;  %2572 = vst [vmem:[%s3682_s18 + $0xb70] sm:$0xff] %v1548_v31  ;;  %2573 = vst [vmem:[%s3682_s18 + $0xb78] sm:$0xff] %v1549_v32  ;;  %v1554_v43 = vmul.f32 0.03125, %v530_v40  ;;  %v1555_v44 = vmul.f32 0.03125, %v531_v41  ;;  %v533_v46 = vld [vmem:[%s3667_s4 + $0xbb8] sm:$0xff] }
  0xf5   : > { %2574 = vst [vmem:[%s3682_s18 + $0xb80] sm:$0xff] %v1550_v33  ;;  %v1556_v45 = vmul.f32 0.03125, %v532_v42  ;;  %v534_v47 = vld [vmem:[%s3667_s4 + $0xbc0] sm:$0xff]  ;;  %v535_v48 = vld [vmem:[%s3667_s4 + $0xbc8] sm:$0xff]  ;;  %2575 = vst [vmem:[%s3682_s18 + $0xb88] sm:$0xff] %v1551_v37  ;;  %v1557_v49 = vmul.f32 0.03125, %v533_v46 }
  0xf6   : > { %2576 = vst [vmem:[%s3682_s18 + $0xb90] sm:$0xff] %v1552_v38  ;;  %2577 = vst [vmem:[%s3682_s18 + $0xb98] sm:$0xff] %v1553_v39  ;;  %v1558_v50 = vmul.f32 0.03125, %v534_v47  ;;  %v1559_v51 = vmul.f32 0.03125, %v535_v48  ;;  %v536_v52 = vld [vmem:[%s3667_s4 + $0xbd0] sm:$0xff]  ;;  %v537_v53 = vld [vmem:[%s3667_s4 + $0xbd8] sm:$0xff] }
  0xf7   : > { %v538_v54 = vld [vmem:[%s3667_s4 + $0xbe0] sm:$0xff]  ;;  %2578 = vst [vmem:[%s3682_s18 + $0xba0] sm:$0xff] %v1554_v43  ;;  %2579 = vst [vmem:[%s3682_s18 + $0xba8] sm:$0xff] %v1555_v44  ;;  %v1560_v55 = vmul.f32 0.03125, %v536_v52  ;;  %v1561_v56 = vmul.f32 0.03125, %v537_v53  ;;  %v539_v58 = vld [vmem:[%s3667_s4 + $0xbe8] sm:$0xff] }
  0xf8   : > { %2580 = vst [vmem:[%s3682_s18 + $0xbb0] sm:$0xff] %v1556_v45  ;;  %v1562_v57 = vmul.f32 0.03125, %v538_v54  ;;  %v540_v59 = vld [vmem:[%s3667_s4 + $0xbf0] sm:$0xff]  ;;  %v541_v60 = vld [vmem:[%s3667_s4 + $0xbf8] sm:$0xff]  ;;  %2581 = vst [vmem:[%s3682_s18 + $0xbb8] sm:$0xff] %v1557_v49  ;;  %v1563_v61 = vmul.f32 0.03125, %v539_v58 }
  0xf9   : > { %2582 = vst [vmem:[%s3682_s18 + $0xbc0] sm:$0xff] %v1558_v50  ;;  %2583 = vst [vmem:[%s3682_s18 + $0xbc8] sm:$0xff] %v1559_v51  ;;  %v1564_v62 = vmul.f32 0.03125, %v540_v59  ;;  %v1565_v63 = vmul.f32 0.03125, %v541_v60  ;;  %v542_v0 = vld [vmem:[%s3667_s4 + $0xc00] sm:$0xff]  ;;  %v543_v1 = vld [vmem:[%s3667_s4 + $0xc08] sm:$0xff] }
  0xfa   : > { %v544_v2 = vld [vmem:[%s3667_s4 + $0xc10] sm:$0xff]  ;;  %2584 = vst [vmem:[%s3682_s18 + $0xbd0] sm:$0xff] %v1560_v55  ;;  %2585 = vst [vmem:[%s3682_s18 + $0xbd8] sm:$0xff] %v1561_v56  ;;  %v1566_v3 = vmul.f32 0.03125, %v542_v0  ;;  %v1567_v4 = vmul.f32 0.03125, %v543_v1  ;;  %v545_v6 = vld [vmem:[%s3667_s4 + $0xc18] sm:$0xff] }
  0xfb   : > { %2586 = vst [vmem:[%s3682_s18 + $0xbe0] sm:$0xff] %v1562_v57  ;;  %v1568_v5 = vmul.f32 0.03125, %v544_v2  ;;  %v546_v7 = vld [vmem:[%s3667_s4 + $0xc20] sm:$0xff]  ;;  %v547_v8 = vld [vmem:[%s3667_s4 + $0xc28] sm:$0xff]  ;;  %2587 = vst [vmem:[%s3682_s18 + $0xbe8] sm:$0xff] %v1563_v61  ;;  %v1569_v9 = vmul.f32 0.03125, %v545_v6 }
  0xfc   : > { %2588 = vst [vmem:[%s3682_s18 + $0xbf0] sm:$0xff] %v1564_v62  ;;  %2589 = vst [vmem:[%s3682_s18 + $0xbf8] sm:$0xff] %v1565_v63  ;;  %v1570_v10 = vmul.f32 0.03125, %v546_v7  ;;  %v1571_v11 = vmul.f32 0.03125, %v547_v8  ;;  %v548_v12 = vld [vmem:[%s3667_s4 + $0xc30] sm:$0xff]  ;;  %v549_v13 = vld [vmem:[%s3667_s4 + $0xc38] sm:$0xff] }
  0xfd   : > { %v550_v14 = vld [vmem:[%s3667_s4 + $0xc40] sm:$0xff]  ;;  %2590 = vst [vmem:[%s3682_s18 + $0xc00] sm:$0xff] %v1566_v3  ;;  %2591 = vst [vmem:[%s3682_s18 + $0xc08] sm:$0xff] %v1567_v4  ;;  %v1572_v15 = vmul.f32 0.03125, %v548_v12  ;;  %v1573_v16 = vmul.f32 0.03125, %v549_v13  ;;  %v551_v18 = vld [vmem:[%s3667_s4 + $0xc48] sm:$0xff] }
  0xfe   : > { %2592 = vst [vmem:[%s3682_s18 + $0xc10] sm:$0xff] %v1568_v5  ;;  %v1574_v17 = vmul.f32 0.03125, %v550_v14  ;;  %v552_v19 = vld [vmem:[%s3667_s4 + $0xc50] sm:$0xff]  ;;  %v553_v20 = vld [vmem:[%s3667_s4 + $0xc58] sm:$0xff]  ;;  %2593 = vst [vmem:[%s3682_s18 + $0xc18] sm:$0xff] %v1569_v9  ;;  %v1575_v21 = vmul.f32 0.03125, %v551_v18 }
  0xff   : > { %2594 = vst [vmem:[%s3682_s18 + $0xc20] sm:$0xff] %v1570_v10  ;;  %2595 = vst [vmem:[%s3682_s18 + $0xc28] sm:$0xff] %v1571_v11  ;;  %v1576_v22 = vmul.f32 0.03125, %v552_v19  ;;  %v1577_v23 = vmul.f32 0.03125, %v553_v20  ;;  %v554_v24 = vld [vmem:[%s3667_s4 + $0xc60] sm:$0xff]  ;;  %v555_v25 = vld [vmem:[%s3667_s4 + $0xc68] sm:$0xff] }
 0x100   : > { %v556_v26 = vld [vmem:[%s3667_s4 + $0xc70] sm:$0xff]  ;;  %2596 = vst [vmem:[%s3682_s18 + $0xc30] sm:$0xff] %v1572_v15  ;;  %2597 = vst [vmem:[%s3682_s18 + $0xc38] sm:$0xff] %v1573_v16  ;;  %v1578_v27 = vmul.f32 0.03125, %v554_v24  ;;  %v1579_v28 = vmul.f32 0.03125, %v555_v25  ;;  %v557_v30 = vld [vmem:[%s3667_s4 + $0xc78] sm:$0xff] }
 0x101   : > { %2598 = vst [vmem:[%s3682_s18 + $0xc40] sm:$0xff] %v1574_v17  ;;  %v1580_v29 = vmul.f32 0.03125, %v556_v26  ;;  %v558_v31 = vld [vmem:[%s3667_s4 + $0xc80] sm:$0xff]  ;;  %v559_v32 = vld [vmem:[%s3667_s4 + $0xc88] sm:$0xff]  ;;  %2599 = vst [vmem:[%s3682_s18 + $0xc48] sm:$0xff] %v1575_v21  ;;  %v1581_v33 = vmul.f32 0.03125, %v557_v30 }
 0x102   : > { %2600 = vst [vmem:[%s3682_s18 + $0xc50] sm:$0xff] %v1576_v22  ;;  %2601 = vst [vmem:[%s3682_s18 + $0xc58] sm:$0xff] %v1577_v23  ;;  %v1582_v34 = vmul.f32 0.03125, %v558_v31  ;;  %v1583_v35 = vmul.f32 0.03125, %v559_v32  ;;  %v560_v36 = vld [vmem:[%s3667_s4 + $0xc90] sm:$0xff]  ;;  %v561_v37 = vld [vmem:[%s3667_s4 + $0xc98] sm:$0xff] }
 0x103   : > { %v562_v38 = vld [vmem:[%s3667_s4 + $0xca0] sm:$0xff]  ;;  %2602 = vst [vmem:[%s3682_s18 + $0xc60] sm:$0xff] %v1578_v27  ;;  %2603 = vst [vmem:[%s3682_s18 + $0xc68] sm:$0xff] %v1579_v28  ;;  %v1584_v39 = vmul.f32 0.03125, %v560_v36  ;;  %v1585_v40 = vmul.f32 0.03125, %v561_v37  ;;  %v563_v42 = vld [vmem:[%s3667_s4 + $0xca8] sm:$0xff] }
 0x104   : > { %2604 = vst [vmem:[%s3682_s18 + $0xc70] sm:$0xff] %v1580_v29  ;;  %v1586_v41 = vmul.f32 0.03125, %v562_v38  ;;  %v564_v43 = vld [vmem:[%s3667_s4 + $0xcb0] sm:$0xff]  ;;  %v565_v44 = vld [vmem:[%s3667_s4 + $0xcb8] sm:$0xff]  ;;  %2605 = vst [vmem:[%s3682_s18 + $0xc78] sm:$0xff] %v1581_v33  ;;  %v1587_v45 = vmul.f32 0.03125, %v563_v42 }
 0x105   : > { %2606 = vst [vmem:[%s3682_s18 + $0xc80] sm:$0xff] %v1582_v34  ;;  %2607 = vst [vmem:[%s3682_s18 + $0xc88] sm:$0xff] %v1583_v35  ;;  %v1588_v46 = vmul.f32 0.03125, %v564_v43  ;;  %v1589_v47 = vmul.f32 0.03125, %v565_v44  ;;  %v566_v48 = vld [vmem:[%s3667_s4 + $0xcc0] sm:$0xff]  ;;  %v567_v49 = vld [vmem:[%s3667_s4 + $0xcc8] sm:$0xff] }
 0x106   : > { %v568_v50 = vld [vmem:[%s3667_s4 + $0xcd0] sm:$0xff]  ;;  %2608 = vst [vmem:[%s3682_s18 + $0xc90] sm:$0xff] %v1584_v39  ;;  %2609 = vst [vmem:[%s3682_s18 + $0xc98] sm:$0xff] %v1585_v40  ;;  %v1590_v51 = vmul.f32 0.03125, %v566_v48  ;;  %v1591_v52 = vmul.f32 0.03125, %v567_v49  ;;  %v569_v54 = vld [vmem:[%s3667_s4 + $0xcd8] sm:$0xff] }
 0x107   : > { %2610 = vst [vmem:[%s3682_s18 + $0xca0] sm:$0xff] %v1586_v41  ;;  %v1592_v53 = vmul.f32 0.03125, %v568_v50  ;;  %v570_v55 = vld [vmem:[%s3667_s4 + $0xce0] sm:$0xff]  ;;  %v571_v56 = vld [vmem:[%s3667_s4 + $0xce8] sm:$0xff]  ;;  %2611 = vst [vmem:[%s3682_s18 + $0xca8] sm:$0xff] %v1587_v45  ;;  %v1593_v57 = vmul.f32 0.03125, %v569_v54 }
 0x108   : > { %2612 = vst [vmem:[%s3682_s18 + $0xcb0] sm:$0xff] %v1588_v46  ;;  %2613 = vst [vmem:[%s3682_s18 + $0xcb8] sm:$0xff] %v1589_v47  ;;  %v1594_v58 = vmul.f32 0.03125, %v570_v55  ;;  %v1595_v59 = vmul.f32 0.03125, %v571_v56  ;;  %v572_v60 = vld [vmem:[%s3667_s4 + $0xcf0] sm:$0xff]  ;;  %v573_v61 = vld [vmem:[%s3667_s4 + $0xcf8] sm:$0xff] }
 0x109   : > { %v574_v62 = vld [vmem:[%s3667_s4 + $0xd00] sm:$0xff]  ;;  %2614 = vst [vmem:[%s3682_s18 + $0xcc0] sm:$0xff] %v1590_v51  ;;  %2615 = vst [vmem:[%s3682_s18 + $0xcc8] sm:$0xff] %v1591_v52  ;;  %v1596_v63 = vmul.f32 0.03125, %v572_v60  ;;  %v1597_v0 = vmul.f32 0.03125, %v573_v61  ;;  %v575_v2 = vld [vmem:[%s3667_s4 + $0xd08] sm:$0xff] }
 0x10a   : > { %2616 = vst [vmem:[%s3682_s18 + $0xcd0] sm:$0xff] %v1592_v53  ;;  %v1598_v1 = vmul.f32 0.03125, %v574_v62  ;;  %v576_v3 = vld [vmem:[%s3667_s4 + $0xd10] sm:$0xff]  ;;  %v577_v4 = vld [vmem:[%s3667_s4 + $0xd18] sm:$0xff]  ;;  %2617 = vst [vmem:[%s3682_s18 + $0xcd8] sm:$0xff] %v1593_v57  ;;  %v1599_v5 = vmul.f32 0.03125, %v575_v2 }
 0x10b   : > { %2618 = vst [vmem:[%s3682_s18 + $0xce0] sm:$0xff] %v1594_v58  ;;  %2619 = vst [vmem:[%s3682_s18 + $0xce8] sm:$0xff] %v1595_v59  ;;  %v1600_v6 = vmul.f32 0.03125, %v576_v3  ;;  %v1601_v7 = vmul.f32 0.03125, %v577_v4  ;;  %v578_v8 = vld [vmem:[%s3667_s4 + $0xd20] sm:$0xff]  ;;  %v579_v9 = vld [vmem:[%s3667_s4 + $0xd28] sm:$0xff] }
 0x10c   : > { %v580_v10 = vld [vmem:[%s3667_s4 + $0xd30] sm:$0xff]  ;;  %2620 = vst [vmem:[%s3682_s18 + $0xcf0] sm:$0xff] %v1596_v63  ;;  %2621 = vst [vmem:[%s3682_s18 + $0xcf8] sm:$0xff] %v1597_v0  ;;  %v1602_v11 = vmul.f32 0.03125, %v578_v8  ;;  %v1603_v12 = vmul.f32 0.03125, %v579_v9  ;;  %v581_v14 = vld [vmem:[%s3667_s4 + $0xd38] sm:$0xff] }
 0x10d   : > { %2622 = vst [vmem:[%s3682_s18 + $0xd00] sm:$0xff] %v1598_v1  ;;  %v1604_v13 = vmul.f32 0.03125, %v580_v10  ;;  %v582_v15 = vld [vmem:[%s3667_s4 + $0xd40] sm:$0xff]  ;;  %v583_v16 = vld [vmem:[%s3667_s4 + $0xd48] sm:$0xff]  ;;  %2623 = vst [vmem:[%s3682_s18 + $0xd08] sm:$0xff] %v1599_v5  ;;  %v1605_v17 = vmul.f32 0.03125, %v581_v14 }
 0x10e   : > { %2624 = vst [vmem:[%s3682_s18 + $0xd10] sm:$0xff] %v1600_v6  ;;  %2625 = vst [vmem:[%s3682_s18 + $0xd18] sm:$0xff] %v1601_v7  ;;  %v1606_v18 = vmul.f32 0.03125, %v582_v15  ;;  %v1607_v19 = vmul.f32 0.03125, %v583_v16  ;;  %v584_v20 = vld [vmem:[%s3667_s4 + $0xd50] sm:$0xff]  ;;  %v585_v21 = vld [vmem:[%s3667_s4 + $0xd58] sm:$0xff] }
 0x10f   : > { %v586_v22 = vld [vmem:[%s3667_s4 + $0xd60] sm:$0xff]  ;;  %2626 = vst [vmem:[%s3682_s18 + $0xd20] sm:$0xff] %v1602_v11  ;;  %2627 = vst [vmem:[%s3682_s18 + $0xd28] sm:$0xff] %v1603_v12  ;;  %v1608_v23 = vmul.f32 0.03125, %v584_v20  ;;  %v1609_v24 = vmul.f32 0.03125, %v585_v21  ;;  %v587_v26 = vld [vmem:[%s3667_s4 + $0xd68] sm:$0xff] }
 0x110   : > { %2628 = vst [vmem:[%s3682_s18 + $0xd30] sm:$0xff] %v1604_v13  ;;  %v1610_v25 = vmul.f32 0.03125, %v586_v22  ;;  %v588_v27 = vld [vmem:[%s3667_s4 + $0xd70] sm:$0xff]  ;;  %v589_v28 = vld [vmem:[%s3667_s4 + $0xd78] sm:$0xff]  ;;  %2629 = vst [vmem:[%s3682_s18 + $0xd38] sm:$0xff] %v1605_v17  ;;  %v1611_v29 = vmul.f32 0.03125, %v587_v26 }
 0x111   : > { %2630 = vst [vmem:[%s3682_s18 + $0xd40] sm:$0xff] %v1606_v18  ;;  %2631 = vst [vmem:[%s3682_s18 + $0xd48] sm:$0xff] %v1607_v19  ;;  %v1612_v30 = vmul.f32 0.03125, %v588_v27  ;;  %v1613_v31 = vmul.f32 0.03125, %v589_v28  ;;  %v590_v32 = vld [vmem:[%s3667_s4 + $0xd80] sm:$0xff]  ;;  %v591_v33 = vld [vmem:[%s3667_s4 + $0xd88] sm:$0xff] }
 0x112   : > { %v592_v34 = vld [vmem:[%s3667_s4 + $0xd90] sm:$0xff]  ;;  %2632 = vst [vmem:[%s3682_s18 + $0xd50] sm:$0xff] %v1608_v23  ;;  %2633 = vst [vmem:[%s3682_s18 + $0xd58] sm:$0xff] %v1609_v24  ;;  %v1614_v35 = vmul.f32 0.03125, %v590_v32  ;;  %v1615_v36 = vmul.f32 0.03125, %v591_v33  ;;  %v593_v38 = vld [vmem:[%s3667_s4 + $0xd98] sm:$0xff] }
 0x113   : > { %2634 = vst [vmem:[%s3682_s18 + $0xd60] sm:$0xff] %v1610_v25  ;;  %v1616_v37 = vmul.f32 0.03125, %v592_v34  ;;  %v594_v39 = vld [vmem:[%s3667_s4 + $0xda0] sm:$0xff]  ;;  %v595_v40 = vld [vmem:[%s3667_s4 + $0xda8] sm:$0xff]  ;;  %2635 = vst [vmem:[%s3682_s18 + $0xd68] sm:$0xff] %v1611_v29  ;;  %v1617_v41 = vmul.f32 0.03125, %v593_v38 }
 0x114   : > { %2636 = vst [vmem:[%s3682_s18 + $0xd70] sm:$0xff] %v1612_v30  ;;  %2637 = vst [vmem:[%s3682_s18 + $0xd78] sm:$0xff] %v1613_v31  ;;  %v1618_v42 = vmul.f32 0.03125, %v594_v39  ;;  %v1619_v43 = vmul.f32 0.03125, %v595_v40  ;;  %v596_v44 = vld [vmem:[%s3667_s4 + $0xdb0] sm:$0xff]  ;;  %v597_v45 = vld [vmem:[%s3667_s4 + $0xdb8] sm:$0xff] }
 0x115   : > { %v598_v46 = vld [vmem:[%s3667_s4 + $0xdc0] sm:$0xff]  ;;  %2638 = vst [vmem:[%s3682_s18 + $0xd80] sm:$0xff] %v1614_v35  ;;  %2639 = vst [vmem:[%s3682_s18 + $0xd88] sm:$0xff] %v1615_v36  ;;  %v1620_v47 = vmul.f32 0.03125, %v596_v44  ;;  %v1621_v48 = vmul.f32 0.03125, %v597_v45  ;;  %v599_v50 = vld [vmem:[%s3667_s4 + $0xdc8] sm:$0xff] }
 0x116   : > { %2640 = vst [vmem:[%s3682_s18 + $0xd90] sm:$0xff] %v1616_v37  ;;  %v1622_v49 = vmul.f32 0.03125, %v598_v46  ;;  %v600_v51 = vld [vmem:[%s3667_s4 + $0xdd0] sm:$0xff]  ;;  %v601_v52 = vld [vmem:[%s3667_s4 + $0xdd8] sm:$0xff]  ;;  %2641 = vst [vmem:[%s3682_s18 + $0xd98] sm:$0xff] %v1617_v41  ;;  %v1623_v53 = vmul.f32 0.03125, %v599_v50 }
 0x117   : > { %2642 = vst [vmem:[%s3682_s18 + $0xda0] sm:$0xff] %v1618_v42  ;;  %2643 = vst [vmem:[%s3682_s18 + $0xda8] sm:$0xff] %v1619_v43  ;;  %v1624_v54 = vmul.f32 0.03125, %v600_v51  ;;  %v1625_v55 = vmul.f32 0.03125, %v601_v52  ;;  %v602_v56 = vld [vmem:[%s3667_s4 + $0xde0] sm:$0xff]  ;;  %v603_v57 = vld [vmem:[%s3667_s4 + $0xde8] sm:$0xff] }
 0x118   : > { %v604_v58 = vld [vmem:[%s3667_s4 + $0xdf0] sm:$0xff]  ;;  %2644 = vst [vmem:[%s3682_s18 + $0xdb0] sm:$0xff] %v1620_v47  ;;  %2645 = vst [vmem:[%s3682_s18 + $0xdb8] sm:$0xff] %v1621_v48  ;;  %v1626_v59 = vmul.f32 0.03125, %v602_v56  ;;  %v1627_v60 = vmul.f32 0.03125, %v603_v57  ;;  %v605_v62 = vld [vmem:[%s3667_s4 + $0xdf8] sm:$0xff] }
 0x119   : > { %2646 = vst [vmem:[%s3682_s18 + $0xdc0] sm:$0xff] %v1622_v49  ;;  %v1628_v61 = vmul.f32 0.03125, %v604_v58  ;;  %v606_v63 = vld [vmem:[%s3667_s4 + $0xe00] sm:$0xff]  ;;  %v607_v0 = vld [vmem:[%s3667_s4 + $0xe08] sm:$0xff]  ;;  %2647 = vst [vmem:[%s3682_s18 + $0xdc8] sm:$0xff] %v1623_v53  ;;  %v1629_v1 = vmul.f32 0.03125, %v605_v62 }
 0x11a   : > { %2648 = vst [vmem:[%s3682_s18 + $0xdd0] sm:$0xff] %v1624_v54  ;;  %2649 = vst [vmem:[%s3682_s18 + $0xdd8] sm:$0xff] %v1625_v55  ;;  %v1630_v2 = vmul.f32 0.03125, %v606_v63  ;;  %v1631_v3 = vmul.f32 0.03125, %v607_v0  ;;  %v608_v4 = vld [vmem:[%s3667_s4 + $0xe10] sm:$0xff]  ;;  %v609_v5 = vld [vmem:[%s3667_s4 + $0xe18] sm:$0xff] }
 0x11b   : > { %v610_v6 = vld [vmem:[%s3667_s4 + $0xe20] sm:$0xff]  ;;  %2650 = vst [vmem:[%s3682_s18 + $0xde0] sm:$0xff] %v1626_v59  ;;  %2651 = vst [vmem:[%s3682_s18 + $0xde8] sm:$0xff] %v1627_v60  ;;  %v1632_v7 = vmul.f32 0.03125, %v608_v4  ;;  %v1633_v8 = vmul.f32 0.03125, %v609_v5  ;;  %v611_v10 = vld [vmem:[%s3667_s4 + $0xe28] sm:$0xff] }
 0x11c   : > { %2652 = vst [vmem:[%s3682_s18 + $0xdf0] sm:$0xff] %v1628_v61  ;;  %v1634_v9 = vmul.f32 0.03125, %v610_v6  ;;  %v612_v11 = vld [vmem:[%s3667_s4 + $0xe30] sm:$0xff]  ;;  %v613_v12 = vld [vmem:[%s3667_s4 + $0xe38] sm:$0xff]  ;;  %2653 = vst [vmem:[%s3682_s18 + $0xdf8] sm:$0xff] %v1629_v1  ;;  %v1635_v13 = vmul.f32 0.03125, %v611_v10 }
 0x11d   : > { %2654 = vst [vmem:[%s3682_s18 + $0xe00] sm:$0xff] %v1630_v2  ;;  %2655 = vst [vmem:[%s3682_s18 + $0xe08] sm:$0xff] %v1631_v3  ;;  %v1636_v14 = vmul.f32 0.03125, %v612_v11  ;;  %v1637_v15 = vmul.f32 0.03125, %v613_v12  ;;  %v614_v16 = vld [vmem:[%s3667_s4 + $0xe40] sm:$0xff]  ;;  %v615_v17 = vld [vmem:[%s3667_s4 + $0xe48] sm:$0xff] }
 0x11e   : > { %v616_v18 = vld [vmem:[%s3667_s4 + $0xe50] sm:$0xff]  ;;  %2656 = vst [vmem:[%s3682_s18 + $0xe10] sm:$0xff] %v1632_v7  ;;  %2657 = vst [vmem:[%s3682_s18 + $0xe18] sm:$0xff] %v1633_v8  ;;  %v1638_v19 = vmul.f32 0.03125, %v614_v16  ;;  %v1639_v20 = vmul.f32 0.03125, %v615_v17  ;;  %v617_v22 = vld [vmem:[%s3667_s4 + $0xe58] sm:$0xff] }
 0x11f   : > { %2658 = vst [vmem:[%s3682_s18 + $0xe20] sm:$0xff] %v1634_v9  ;;  %v1640_v21 = vmul.f32 0.03125, %v616_v18  ;;  %v618_v23 = vld [vmem:[%s3667_s4 + $0xe60] sm:$0xff]  ;;  %v619_v24 = vld [vmem:[%s3667_s4 + $0xe68] sm:$0xff]  ;;  %2659 = vst [vmem:[%s3682_s18 + $0xe28] sm:$0xff] %v1635_v13  ;;  %v1641_v25 = vmul.f32 0.03125, %v617_v22 }
 0x120   : > { %2660 = vst [vmem:[%s3682_s18 + $0xe30] sm:$0xff] %v1636_v14  ;;  %2661 = vst [vmem:[%s3682_s18 + $0xe38] sm:$0xff] %v1637_v15  ;;  %v1642_v26 = vmul.f32 0.03125, %v618_v23  ;;  %v1643_v27 = vmul.f32 0.03125, %v619_v24  ;;  %v620_v28 = vld [vmem:[%s3667_s4 + $0xe70] sm:$0xff]  ;;  %v621_v29 = vld [vmem:[%s3667_s4 + $0xe78] sm:$0xff] }
 0x121   : > { %v622_v30 = vld [vmem:[%s3667_s4 + $0xe80] sm:$0xff]  ;;  %2662 = vst [vmem:[%s3682_s18 + $0xe40] sm:$0xff] %v1638_v19  ;;  %2663 = vst [vmem:[%s3682_s18 + $0xe48] sm:$0xff] %v1639_v20  ;;  %v1644_v31 = vmul.f32 0.03125, %v620_v28  ;;  %v1645_v32 = vmul.f32 0.03125, %v621_v29  ;;  %v623_v34 = vld [vmem:[%s3667_s4 + $0xe88] sm:$0xff] }
 0x122   : > { %2664 = vst [vmem:[%s3682_s18 + $0xe50] sm:$0xff] %v1640_v21  ;;  %v1646_v33 = vmul.f32 0.03125, %v622_v30  ;;  %v624_v35 = vld [vmem:[%s3667_s4 + $0xe90] sm:$0xff]  ;;  %v625_v36 = vld [vmem:[%s3667_s4 + $0xe98] sm:$0xff]  ;;  %2665 = vst [vmem:[%s3682_s18 + $0xe58] sm:$0xff] %v1641_v25  ;;  %v1647_v37 = vmul.f32 0.03125, %v623_v34 }
 0x123   : > { %2666 = vst [vmem:[%s3682_s18 + $0xe60] sm:$0xff] %v1642_v26  ;;  %2667 = vst [vmem:[%s3682_s18 + $0xe68] sm:$0xff] %v1643_v27  ;;  %v1648_v38 = vmul.f32 0.03125, %v624_v35  ;;  %v1649_v39 = vmul.f32 0.03125, %v625_v36  ;;  %v626_v40 = vld [vmem:[%s3667_s4 + $0xea0] sm:$0xff]  ;;  %v627_v41 = vld [vmem:[%s3667_s4 + $0xea8] sm:$0xff] }
 0x124   : > { %v628_v42 = vld [vmem:[%s3667_s4 + $0xeb0] sm:$0xff]  ;;  %2668 = vst [vmem:[%s3682_s18 + $0xe70] sm:$0xff] %v1644_v31  ;;  %2669 = vst [vmem:[%s3682_s18 + $0xe78] sm:$0xff] %v1645_v32  ;;  %v1650_v43 = vmul.f32 0.03125, %v626_v40  ;;  %v1651_v44 = vmul.f32 0.03125, %v627_v41  ;;  %v629_v46 = vld [vmem:[%s3667_s4 + $0xeb8] sm:$0xff] }
 0x125   : > { %2670 = vst [vmem:[%s3682_s18 + $0xe80] sm:$0xff] %v1646_v33  ;;  %v1652_v45 = vmul.f32 0.03125, %v628_v42  ;;  %v630_v47 = vld [vmem:[%s3667_s4 + $0xec0] sm:$0xff]  ;;  %v631_v48 = vld [vmem:[%s3667_s4 + $0xec8] sm:$0xff]  ;;  %2671 = vst [vmem:[%s3682_s18 + $0xe88] sm:$0xff] %v1647_v37  ;;  %v1653_v49 = vmul.f32 0.03125, %v629_v46 }
 0x126   : > { %2672 = vst [vmem:[%s3682_s18 + $0xe90] sm:$0xff] %v1648_v38  ;;  %2673 = vst [vmem:[%s3682_s18 + $0xe98] sm:$0xff] %v1649_v39  ;;  %v1654_v50 = vmul.f32 0.03125, %v630_v47  ;;  %v1655_v51 = vmul.f32 0.03125, %v631_v48  ;;  %v632_v52 = vld [vmem:[%s3667_s4 + $0xed0] sm:$0xff]  ;;  %v633_v53 = vld [vmem:[%s3667_s4 + $0xed8] sm:$0xff] }
 0x127   : > { %v634_v54 = vld [vmem:[%s3667_s4 + $0xee0] sm:$0xff]  ;;  %2674 = vst [vmem:[%s3682_s18 + $0xea0] sm:$0xff] %v1650_v43  ;;  %2675 = vst [vmem:[%s3682_s18 + $0xea8] sm:$0xff] %v1651_v44  ;;  %v1656_v55 = vmul.f32 0.03125, %v632_v52  ;;  %v1657_v56 = vmul.f32 0.03125, %v633_v53  ;;  %v635_v58 = vld [vmem:[%s3667_s4 + $0xee8] sm:$0xff] }
 0x128   : > { %2676 = vst [vmem:[%s3682_s18 + $0xeb0] sm:$0xff] %v1652_v45  ;;  %v1658_v57 = vmul.f32 0.03125, %v634_v54  ;;  %v636_v59 = vld [vmem:[%s3667_s4 + $0xef0] sm:$0xff]  ;;  %v637_v60 = vld [vmem:[%s3667_s4 + $0xef8] sm:$0xff]  ;;  %2677 = vst [vmem:[%s3682_s18 + $0xeb8] sm:$0xff] %v1653_v49  ;;  %v1659_v61 = vmul.f32 0.03125, %v635_v58 }
 0x129   : > { %2678 = vst [vmem:[%s3682_s18 + $0xec0] sm:$0xff] %v1654_v50  ;;  %2679 = vst [vmem:[%s3682_s18 + $0xec8] sm:$0xff] %v1655_v51  ;;  %v1660_v62 = vmul.f32 0.03125, %v636_v59  ;;  %v1661_v63 = vmul.f32 0.03125, %v637_v60  ;;  %v638_v0 = vld [vmem:[%s3667_s4 + $0xf00] sm:$0xff]  ;;  %v639_v1 = vld [vmem:[%s3667_s4 + $0xf08] sm:$0xff] }
 0x12a   : > { %v640_v2 = vld [vmem:[%s3667_s4 + $0xf10] sm:$0xff]  ;;  %2680 = vst [vmem:[%s3682_s18 + $0xed0] sm:$0xff] %v1656_v55  ;;  %2681 = vst [vmem:[%s3682_s18 + $0xed8] sm:$0xff] %v1657_v56  ;;  %v1662_v3 = vmul.f32 0.03125, %v638_v0  ;;  %v1663_v4 = vmul.f32 0.03125, %v639_v1  ;;  %v641_v6 = vld [vmem:[%s3667_s4 + $0xf18] sm:$0xff] }
 0x12b   : > { %2682 = vst [vmem:[%s3682_s18 + $0xee0] sm:$0xff] %v1658_v57  ;;  %v1664_v5 = vmul.f32 0.03125, %v640_v2  ;;  %v642_v7 = vld [vmem:[%s3667_s4 + $0xf20] sm:$0xff]  ;;  %v643_v8 = vld [vmem:[%s3667_s4 + $0xf28] sm:$0xff]  ;;  %2683 = vst [vmem:[%s3682_s18 + $0xee8] sm:$0xff] %v1659_v61  ;;  %v1665_v9 = vmul.f32 0.03125, %v641_v6 }
 0x12c   : > { %2684 = vst [vmem:[%s3682_s18 + $0xef0] sm:$0xff] %v1660_v62  ;;  %2685 = vst [vmem:[%s3682_s18 + $0xef8] sm:$0xff] %v1661_v63  ;;  %v1666_v10 = vmul.f32 0.03125, %v642_v7  ;;  %v1667_v11 = vmul.f32 0.03125, %v643_v8  ;;  %v644_v12 = vld [vmem:[%s3667_s4 + $0xf30] sm:$0xff]  ;;  %v645_v13 = vld [vmem:[%s3667_s4 + $0xf38] sm:$0xff] }
 0x12d   : > { %v646_v14 = vld [vmem:[%s3667_s4 + $0xf40] sm:$0xff]  ;;  %2686 = vst [vmem:[%s3682_s18 + $0xf00] sm:$0xff] %v1662_v3  ;;  %2687 = vst [vmem:[%s3682_s18 + $0xf08] sm:$0xff] %v1663_v4  ;;  %v1668_v15 = vmul.f32 0.03125, %v644_v12  ;;  %v1669_v16 = vmul.f32 0.03125, %v645_v13  ;;  %v647_v18 = vld [vmem:[%s3667_s4 + $0xf48] sm:$0xff] }
 0x12e   : > { %2688 = vst [vmem:[%s3682_s18 + $0xf10] sm:$0xff] %v1664_v5  ;;  %v1670_v17 = vmul.f32 0.03125, %v646_v14  ;;  %v648_v19 = vld [vmem:[%s3667_s4 + $0xf50] sm:$0xff]  ;;  %v649_v20 = vld [vmem:[%s3667_s4 + $0xf58] sm:$0xff]  ;;  %2689 = vst [vmem:[%s3682_s18 + $0xf18] sm:$0xff] %v1665_v9  ;;  %v1671_v21 = vmul.f32 0.03125, %v647_v18 }
 0x12f   : > { %2690 = vst [vmem:[%s3682_s18 + $0xf20] sm:$0xff] %v1666_v10  ;;  %2691 = vst [vmem:[%s3682_s18 + $0xf28] sm:$0xff] %v1667_v11  ;;  %v1672_v22 = vmul.f32 0.03125, %v648_v19  ;;  %v1673_v23 = vmul.f32 0.03125, %v649_v20  ;;  %v650_v24 = vld [vmem:[%s3667_s4 + $0xf60] sm:$0xff]  ;;  %v651_v25 = vld [vmem:[%s3667_s4 + $0xf68] sm:$0xff] }
 0x130   : > { %v652_v26 = vld [vmem:[%s3667_s4 + $0xf70] sm:$0xff]  ;;  %2692 = vst [vmem:[%s3682_s18 + $0xf30] sm:$0xff] %v1668_v15  ;;  %2693 = vst [vmem:[%s3682_s18 + $0xf38] sm:$0xff] %v1669_v16  ;;  %v1674_v27 = vmul.f32 0.03125, %v650_v24  ;;  %v1675_v28 = vmul.f32 0.03125, %v651_v25  ;;  %v653_v30 = vld [vmem:[%s3667_s4 + $0xf78] sm:$0xff] }
 0x131   : > { %2694 = vst [vmem:[%s3682_s18 + $0xf40] sm:$0xff] %v1670_v17  ;;  %v1676_v29 = vmul.f32 0.03125, %v652_v26  ;;  %v654_v31 = vld [vmem:[%s3667_s4 + $0xf80] sm:$0xff]  ;;  %v655_v32 = vld [vmem:[%s3667_s4 + $0xf88] sm:$0xff]  ;;  %2695 = vst [vmem:[%s3682_s18 + $0xf48] sm:$0xff] %v1671_v21  ;;  %v1677_v33 = vmul.f32 0.03125, %v653_v30 }
 0x132   : > { %2696 = vst [vmem:[%s3682_s18 + $0xf50] sm:$0xff] %v1672_v22  ;;  %2697 = vst [vmem:[%s3682_s18 + $0xf58] sm:$0xff] %v1673_v23  ;;  %v1678_v34 = vmul.f32 0.03125, %v654_v31  ;;  %v1679_v35 = vmul.f32 0.03125, %v655_v32  ;;  %v656_v36 = vld [vmem:[%s3667_s4 + $0xf90] sm:$0xff]  ;;  %v657_v37 = vld [vmem:[%s3667_s4 + $0xf98] sm:$0xff] }
 0x133   : > { %v658_v38 = vld [vmem:[%s3667_s4 + $0xfa0] sm:$0xff]  ;;  %2698 = vst [vmem:[%s3682_s18 + $0xf60] sm:$0xff] %v1674_v27  ;;  %2699 = vst [vmem:[%s3682_s18 + $0xf68] sm:$0xff] %v1675_v28  ;;  %v1680_v39 = vmul.f32 0.03125, %v656_v36  ;;  %v1681_v40 = vmul.f32 0.03125, %v657_v37  ;;  %v659_v42 = vld [vmem:[%s3667_s4 + $0xfa8] sm:$0xff] }
 0x134   : > { %2700 = vst [vmem:[%s3682_s18 + $0xf70] sm:$0xff] %v1676_v29  ;;  %v1682_v41 = vmul.f32 0.03125, %v658_v38  ;;  %v660_v43 = vld [vmem:[%s3667_s4 + $0xfb0] sm:$0xff]  ;;  %v661_v44 = vld [vmem:[%s3667_s4 + $0xfb8] sm:$0xff]  ;;  %2701 = vst [vmem:[%s3682_s18 + $0xf78] sm:$0xff] %v1677_v33  ;;  %v1683_v45 = vmul.f32 0.03125, %v659_v42 }
 0x135   : > { %2702 = vst [vmem:[%s3682_s18 + $0xf80] sm:$0xff] %v1678_v34  ;;  %2703 = vst [vmem:[%s3682_s18 + $0xf88] sm:$0xff] %v1679_v35  ;;  %v1684_v46 = vmul.f32 0.03125, %v660_v43  ;;  %v1685_v47 = vmul.f32 0.03125, %v661_v44  ;;  %v662_v48 = vld [vmem:[%s3667_s4 + $0xfc0] sm:$0xff]  ;;  %v663_v49 = vld [vmem:[%s3667_s4 + $0xfc8] sm:$0xff] }
 0x136   : > { %v664_v50 = vld [vmem:[%s3667_s4 + $0xfd0] sm:$0xff]  ;;  %2704 = vst [vmem:[%s3682_s18 + $0xf90] sm:$0xff] %v1680_v39  ;;  %2705 = vst [vmem:[%s3682_s18 + $0xf98] sm:$0xff] %v1681_v40  ;;  %v1686_v51 = vmul.f32 0.03125, %v662_v48  ;;  %v1687_v52 = vmul.f32 0.03125, %v663_v49  ;;  %v665_v54 = vld [vmem:[%s3667_s4 + $0xfd8] sm:$0xff] }
 0x137   : > { %2706 = vst [vmem:[%s3682_s18 + $0xfa0] sm:$0xff] %v1682_v41  ;;  %v1688_v53 = vmul.f32 0.03125, %v664_v50  ;;  %v666_v55 = vld [vmem:[%s3667_s4 + $0xfe0] sm:$0xff]  ;;  %v667_v56 = vld [vmem:[%s3667_s4 + $0xfe8] sm:$0xff]  ;;  %2707 = vst [vmem:[%s3682_s18 + $0xfa8] sm:$0xff] %v1683_v45  ;;  %v1689_v57 = vmul.f32 0.03125, %v665_v54 }
 0x138   : > { %2708 = vst [vmem:[%s3682_s18 + $0xfb0] sm:$0xff] %v1684_v46  ;;  %2709 = vst [vmem:[%s3682_s18 + $0xfb8] sm:$0xff] %v1685_v47  ;;  %v1690_v58 = vmul.f32 0.03125, %v666_v55  ;;  %v1691_v59 = vmul.f32 0.03125, %v667_v56  ;;  %v668_v60 = vld [vmem:[%s3667_s4 + $0xff0] sm:$0xff]  ;;  %v669_v61 = vld [vmem:[%s3667_s4 + $0xff8] sm:$0xff] }
 0x139   : > { %v670_v62 = vld [vmem:[%s3667_s4 + $0x1000] sm:$0xff]  ;;  %2710 = vst [vmem:[%s3682_s18 + $0xfc0] sm:$0xff] %v1686_v51  ;;  %2711 = vst [vmem:[%s3682_s18 + $0xfc8] sm:$0xff] %v1687_v52  ;;  %v1692_v63 = vmul.f32 0.03125, %v668_v60  ;;  %v1693_v0 = vmul.f32 0.03125, %v669_v61  ;;  %v671_v2 = vld [vmem:[%s3667_s4 + $0x1008] sm:$0xff] }
 0x13a   : > { %2712 = vst [vmem:[%s3682_s18 + $0xfd0] sm:$0xff] %v1688_v53  ;;  %v1694_v1 = vmul.f32 0.03125, %v670_v62  ;;  %v672_v3 = vld [vmem:[%s3667_s4 + $0x1010] sm:$0xff]  ;;  %v673_v4 = vld [vmem:[%s3667_s4 + $0x1018] sm:$0xff]  ;;  %2713 = vst [vmem:[%s3682_s18 + $0xfd8] sm:$0xff] %v1689_v57  ;;  %v1695_v5 = vmul.f32 0.03125, %v671_v2 }
 0x13b   : > { %2714 = vst [vmem:[%s3682_s18 + $0xfe0] sm:$0xff] %v1690_v58  ;;  %2715 = vst [vmem:[%s3682_s18 + $0xfe8] sm:$0xff] %v1691_v59  ;;  %v1696_v6 = vmul.f32 0.03125, %v672_v3  ;;  %v1697_v7 = vmul.f32 0.03125, %v673_v4  ;;  %v674_v8 = vld [vmem:[%s3667_s4 + $0x1020] sm:$0xff]  ;;  %v675_v9 = vld [vmem:[%s3667_s4 + $0x1028] sm:$0xff] }
 0x13c   : > { %v676_v10 = vld [vmem:[%s3667_s4 + $0x1030] sm:$0xff]  ;;  %2716 = vst [vmem:[%s3682_s18 + $0xff0] sm:$0xff] %v1692_v63  ;;  %2717 = vst [vmem:[%s3682_s18 + $0xff8] sm:$0xff] %v1693_v0  ;;  %v1698_v11 = vmul.f32 0.03125, %v674_v8  ;;  %v1699_v12 = vmul.f32 0.03125, %v675_v9  ;;  %v677_v14 = vld [vmem:[%s3667_s4 + $0x1038] sm:$0xff] }
 0x13d   : > { %2718 = vst [vmem:[%s3682_s18 + $0x1000] sm:$0xff] %v1694_v1  ;;  %v1700_v13 = vmul.f32 0.03125, %v676_v10  ;;  %v678_v15 = vld [vmem:[%s3667_s4 + $0x1040] sm:$0xff]  ;;  %v679_v16 = vld [vmem:[%s3667_s4 + $0x1048] sm:$0xff]  ;;  %2719 = vst [vmem:[%s3682_s18 + $0x1008] sm:$0xff] %v1695_v5  ;;  %v1701_v17 = vmul.f32 0.03125, %v677_v14 }
 0x13e   : > { %2720 = vst [vmem:[%s3682_s18 + $0x1010] sm:$0xff] %v1696_v6  ;;  %2721 = vst [vmem:[%s3682_s18 + $0x1018] sm:$0xff] %v1697_v7  ;;  %v1702_v18 = vmul.f32 0.03125, %v678_v15  ;;  %v1703_v19 = vmul.f32 0.03125, %v679_v16  ;;  %v680_v20 = vld [vmem:[%s3667_s4 + $0x1050] sm:$0xff]  ;;  %v681_v21 = vld [vmem:[%s3667_s4 + $0x1058] sm:$0xff] }
 0x13f   : > { %v682_v22 = vld [vmem:[%s3667_s4 + $0x1060] sm:$0xff]  ;;  %2722 = vst [vmem:[%s3682_s18 + $0x1020] sm:$0xff] %v1698_v11  ;;  %2723 = vst [vmem:[%s3682_s18 + $0x1028] sm:$0xff] %v1699_v12  ;;  %v1704_v23 = vmul.f32 0.03125, %v680_v20  ;;  %v1705_v24 = vmul.f32 0.03125, %v681_v21  ;;  %v683_v26 = vld [vmem:[%s3667_s4 + $0x1068] sm:$0xff] }
 0x140   : > { %2724 = vst [vmem:[%s3682_s18 + $0x1030] sm:$0xff] %v1700_v13  ;;  %v1706_v25 = vmul.f32 0.03125, %v682_v22  ;;  %v684_v27 = vld [vmem:[%s3667_s4 + $0x1070] sm:$0xff]  ;;  %v685_v28 = vld [vmem:[%s3667_s4 + $0x1078] sm:$0xff]  ;;  %2725 = vst [vmem:[%s3682_s18 + $0x1038] sm:$0xff] %v1701_v17  ;;  %v1707_v29 = vmul.f32 0.03125, %v683_v26 }
 0x141   : > { %2726 = vst [vmem:[%s3682_s18 + $0x1040] sm:$0xff] %v1702_v18  ;;  %2727 = vst [vmem:[%s3682_s18 + $0x1048] sm:$0xff] %v1703_v19  ;;  %v1708_v30 = vmul.f32 0.03125, %v684_v27  ;;  %v1709_v31 = vmul.f32 0.03125, %v685_v28  ;;  %v686_v32 = vld [vmem:[%s3667_s4 + $0x1080] sm:$0xff]  ;;  %v687_v33 = vld [vmem:[%s3667_s4 + $0x1088] sm:$0xff] }
 0x142   : > { %v688_v34 = vld [vmem:[%s3667_s4 + $0x1090] sm:$0xff]  ;;  %2728 = vst [vmem:[%s3682_s18 + $0x1050] sm:$0xff] %v1704_v23  ;;  %2729 = vst [vmem:[%s3682_s18 + $0x1058] sm:$0xff] %v1705_v24  ;;  %v1710_v35 = vmul.f32 0.03125, %v686_v32  ;;  %v1711_v36 = vmul.f32 0.03125, %v687_v33  ;;  %v689_v38 = vld [vmem:[%s3667_s4 + $0x1098] sm:$0xff] }
 0x143   : > { %2730 = vst [vmem:[%s3682_s18 + $0x1060] sm:$0xff] %v1706_v25  ;;  %v1712_v37 = vmul.f32 0.03125, %v688_v34  ;;  %v690_v39 = vld [vmem:[%s3667_s4 + $0x10a0] sm:$0xff]  ;;  %v691_v40 = vld [vmem:[%s3667_s4 + $0x10a8] sm:$0xff]  ;;  %2731 = vst [vmem:[%s3682_s18 + $0x1068] sm:$0xff] %v1707_v29  ;;  %v1713_v41 = vmul.f32 0.03125, %v689_v38 }
 0x144   : > { %2732 = vst [vmem:[%s3682_s18 + $0x1070] sm:$0xff] %v1708_v30  ;;  %2733 = vst [vmem:[%s3682_s18 + $0x1078] sm:$0xff] %v1709_v31  ;;  %v1714_v42 = vmul.f32 0.03125, %v690_v39  ;;  %v1715_v43 = vmul.f32 0.03125, %v691_v40  ;;  %v692_v44 = vld [vmem:[%s3667_s4 + $0x10b0] sm:$0xff]  ;;  %v693_v45 = vld [vmem:[%s3667_s4 + $0x10b8] sm:$0xff] }
 0x145   : > { %v694_v46 = vld [vmem:[%s3667_s4 + $0x10c0] sm:$0xff]  ;;  %2734 = vst [vmem:[%s3682_s18 + $0x1080] sm:$0xff] %v1710_v35  ;;  %2735 = vst [vmem:[%s3682_s18 + $0x1088] sm:$0xff] %v1711_v36  ;;  %v1716_v47 = vmul.f32 0.03125, %v692_v44  ;;  %v1717_v48 = vmul.f32 0.03125, %v693_v45  ;;  %v695_v50 = vld [vmem:[%s3667_s4 + $0x10c8] sm:$0xff] }
 0x146   : > { %2736 = vst [vmem:[%s3682_s18 + $0x1090] sm:$0xff] %v1712_v37  ;;  %v1718_v49 = vmul.f32 0.03125, %v694_v46  ;;  %v696_v51 = vld [vmem:[%s3667_s4 + $0x10d0] sm:$0xff]  ;;  %v697_v52 = vld [vmem:[%s3667_s4 + $0x10d8] sm:$0xff]  ;;  %2737 = vst [vmem:[%s3682_s18 + $0x1098] sm:$0xff] %v1713_v41  ;;  %v1719_v53 = vmul.f32 0.03125, %v695_v50 }
 0x147   : > { %2738 = vst [vmem:[%s3682_s18 + $0x10a0] sm:$0xff] %v1714_v42  ;;  %2739 = vst [vmem:[%s3682_s18 + $0x10a8] sm:$0xff] %v1715_v43  ;;  %v1720_v54 = vmul.f32 0.03125, %v696_v51  ;;  %v1721_v55 = vmul.f32 0.03125, %v697_v52  ;;  %v698_v56 = vld [vmem:[%s3667_s4 + $0x10e0] sm:$0xff]  ;;  %v699_v57 = vld [vmem:[%s3667_s4 + $0x10e8] sm:$0xff] }
 0x148   : > { %v700_v58 = vld [vmem:[%s3667_s4 + $0x10f0] sm:$0xff]  ;;  %2740 = vst [vmem:[%s3682_s18 + $0x10b0] sm:$0xff] %v1716_v47  ;;  %2741 = vst [vmem:[%s3682_s18 + $0x10b8] sm:$0xff] %v1717_v48  ;;  %v1722_v59 = vmul.f32 0.03125, %v698_v56  ;;  %v1723_v60 = vmul.f32 0.03125, %v699_v57  ;;  %v701_v62 = vld [vmem:[%s3667_s4 + $0x10f8] sm:$0xff] }
 0x149   : > { %2742 = vst [vmem:[%s3682_s18 + $0x10c0] sm:$0xff] %v1718_v49  ;;  %v1724_v61 = vmul.f32 0.03125, %v700_v58  ;;  %v702_v63 = vld [vmem:[%s3667_s4 + $0x1100] sm:$0xff]  ;;  %v703_v0 = vld [vmem:[%s3667_s4 + $0x1108] sm:$0xff]  ;;  %2743 = vst [vmem:[%s3682_s18 + $0x10c8] sm:$0xff] %v1719_v53  ;;  %v1725_v1 = vmul.f32 0.03125, %v701_v62 }
 0x14a   : > { %2744 = vst [vmem:[%s3682_s18 + $0x10d0] sm:$0xff] %v1720_v54  ;;  %2745 = vst [vmem:[%s3682_s18 + $0x10d8] sm:$0xff] %v1721_v55  ;;  %v1726_v2 = vmul.f32 0.03125, %v702_v63  ;;  %v1727_v3 = vmul.f32 0.03125, %v703_v0  ;;  %v704_v4 = vld [vmem:[%s3667_s4 + $0x1110] sm:$0xff]  ;;  %v705_v5 = vld [vmem:[%s3667_s4 + $0x1118] sm:$0xff] }
 0x14b   : > { %v706_v6 = vld [vmem:[%s3667_s4 + $0x1120] sm:$0xff]  ;;  %2746 = vst [vmem:[%s3682_s18 + $0x10e0] sm:$0xff] %v1722_v59  ;;  %2747 = vst [vmem:[%s3682_s18 + $0x10e8] sm:$0xff] %v1723_v60  ;;  %v1728_v7 = vmul.f32 0.03125, %v704_v4  ;;  %v1729_v8 = vmul.f32 0.03125, %v705_v5  ;;  %v707_v10 = vld [vmem:[%s3667_s4 + $0x1128] sm:$0xff] }
 0x14c   : > { %2748 = vst [vmem:[%s3682_s18 + $0x10f0] sm:$0xff] %v1724_v61  ;;  %v1730_v9 = vmul.f32 0.03125, %v706_v6  ;;  %v708_v11 = vld [vmem:[%s3667_s4 + $0x1130] sm:$0xff]  ;;  %v709_v12 = vld [vmem:[%s3667_s4 + $0x1138] sm:$0xff]  ;;  %2749 = vst [vmem:[%s3682_s18 + $0x10f8] sm:$0xff] %v1725_v1  ;;  %v1731_v13 = vmul.f32 0.03125, %v707_v10 }
 0x14d   : > { %2750 = vst [vmem:[%s3682_s18 + $0x1100] sm:$0xff] %v1726_v2  ;;  %2751 = vst [vmem:[%s3682_s18 + $0x1108] sm:$0xff] %v1727_v3  ;;  %v1732_v14 = vmul.f32 0.03125, %v708_v11  ;;  %v1733_v15 = vmul.f32 0.03125, %v709_v12  ;;  %v710_v16 = vld [vmem:[%s3667_s4 + $0x1140] sm:$0xff]  ;;  %v711_v17 = vld [vmem:[%s3667_s4 + $0x1148] sm:$0xff] }
 0x14e   : > { %v712_v18 = vld [vmem:[%s3667_s4 + $0x1150] sm:$0xff]  ;;  %2752 = vst [vmem:[%s3682_s18 + $0x1110] sm:$0xff] %v1728_v7  ;;  %2753 = vst [vmem:[%s3682_s18 + $0x1118] sm:$0xff] %v1729_v8  ;;  %v1734_v19 = vmul.f32 0.03125, %v710_v16  ;;  %v1735_v20 = vmul.f32 0.03125, %v711_v17  ;;  %v713_v22 = vld [vmem:[%s3667_s4 + $0x1158] sm:$0xff] }
 0x14f   : > { %2754 = vst [vmem:[%s3682_s18 + $0x1120] sm:$0xff] %v1730_v9  ;;  %v1736_v21 = vmul.f32 0.03125, %v712_v18  ;;  %v714_v23 = vld [vmem:[%s3667_s4 + $0x1160] sm:$0xff]  ;;  %v715_v24 = vld [vmem:[%s3667_s4 + $0x1168] sm:$0xff]  ;;  %2755 = vst [vmem:[%s3682_s18 + $0x1128] sm:$0xff] %v1731_v13  ;;  %v1737_v25 = vmul.f32 0.03125, %v713_v22 }
 0x150   : > { %2756 = vst [vmem:[%s3682_s18 + $0x1130] sm:$0xff] %v1732_v14  ;;  %2757 = vst [vmem:[%s3682_s18 + $0x1138] sm:$0xff] %v1733_v15  ;;  %v1738_v26 = vmul.f32 0.03125, %v714_v23  ;;  %v1739_v27 = vmul.f32 0.03125, %v715_v24  ;;  %v716_v28 = vld [vmem:[%s3667_s4 + $0x1170] sm:$0xff]  ;;  %v717_v29 = vld [vmem:[%s3667_s4 + $0x1178] sm:$0xff] }
 0x151   : > { %v718_v30 = vld [vmem:[%s3667_s4 + $0x1180] sm:$0xff]  ;;  %2758 = vst [vmem:[%s3682_s18 + $0x1140] sm:$0xff] %v1734_v19  ;;  %2759 = vst [vmem:[%s3682_s18 + $0x1148] sm:$0xff] %v1735_v20  ;;  %v1740_v31 = vmul.f32 0.03125, %v716_v28  ;;  %v1741_v32 = vmul.f32 0.03125, %v717_v29  ;;  %v719_v34 = vld [vmem:[%s3667_s4 + $0x1188] sm:$0xff] }
 0x152   : > { %2760 = vst [vmem:[%s3682_s18 + $0x1150] sm:$0xff] %v1736_v21  ;;  %v1742_v33 = vmul.f32 0.03125, %v718_v30  ;;  %v720_v35 = vld [vmem:[%s3667_s4 + $0x1190] sm:$0xff]  ;;  %v721_v36 = vld [vmem:[%s3667_s4 + $0x1198] sm:$0xff]  ;;  %2761 = vst [vmem:[%s3682_s18 + $0x1158] sm:$0xff] %v1737_v25  ;;  %v1743_v37 = vmul.f32 0.03125, %v719_v34 }
 0x153   : > { %2762 = vst [vmem:[%s3682_s18 + $0x1160] sm:$0xff] %v1738_v26  ;;  %2763 = vst [vmem:[%s3682_s18 + $0x1168] sm:$0xff] %v1739_v27  ;;  %v1744_v38 = vmul.f32 0.03125, %v720_v35  ;;  %v1745_v39 = vmul.f32 0.03125, %v721_v36  ;;  %v722_v40 = vld [vmem:[%s3667_s4 + $0x11a0] sm:$0xff]  ;;  %v723_v41 = vld [vmem:[%s3667_s4 + $0x11a8] sm:$0xff] }
 0x154   : > { %v724_v42 = vld [vmem:[%s3667_s4 + $0x11b0] sm:$0xff]  ;;  %2764 = vst [vmem:[%s3682_s18 + $0x1170] sm:$0xff] %v1740_v31  ;;  %2765 = vst [vmem:[%s3682_s18 + $0x1178] sm:$0xff] %v1741_v32  ;;  %v1746_v43 = vmul.f32 0.03125, %v722_v40  ;;  %v1747_v44 = vmul.f32 0.03125, %v723_v41  ;;  %v725_v46 = vld [vmem:[%s3667_s4 + $0x11b8] sm:$0xff] }
 0x155   : > { %2766 = vst [vmem:[%s3682_s18 + $0x1180] sm:$0xff] %v1742_v33  ;;  %v1748_v45 = vmul.f32 0.03125, %v724_v42  ;;  %v726_v47 = vld [vmem:[%s3667_s4 + $0x11c0] sm:$0xff]  ;;  %v727_v48 = vld [vmem:[%s3667_s4 + $0x11c8] sm:$0xff]  ;;  %2767 = vst [vmem:[%s3682_s18 + $0x1188] sm:$0xff] %v1743_v37  ;;  %v1749_v49 = vmul.f32 0.03125, %v725_v46 }
 0x156   : > { %2768 = vst [vmem:[%s3682_s18 + $0x1190] sm:$0xff] %v1744_v38  ;;  %2769 = vst [vmem:[%s3682_s18 + $0x1198] sm:$0xff] %v1745_v39  ;;  %v1750_v50 = vmul.f32 0.03125, %v726_v47  ;;  %v1751_v51 = vmul.f32 0.03125, %v727_v48  ;;  %v728_v52 = vld [vmem:[%s3667_s4 + $0x11d0] sm:$0xff]  ;;  %v729_v53 = vld [vmem:[%s3667_s4 + $0x11d8] sm:$0xff] }
 0x157   : > { %v730_v54 = vld [vmem:[%s3667_s4 + $0x11e0] sm:$0xff]  ;;  %2770 = vst [vmem:[%s3682_s18 + $0x11a0] sm:$0xff] %v1746_v43  ;;  %2771 = vst [vmem:[%s3682_s18 + $0x11a8] sm:$0xff] %v1747_v44  ;;  %v1752_v55 = vmul.f32 0.03125, %v728_v52  ;;  %v1753_v56 = vmul.f32 0.03125, %v729_v53  ;;  %v731_v58 = vld [vmem:[%s3667_s4 + $0x11e8] sm:$0xff] }
 0x158   : > { %2772 = vst [vmem:[%s3682_s18 + $0x11b0] sm:$0xff] %v1748_v45  ;;  %v1754_v57 = vmul.f32 0.03125, %v730_v54  ;;  %v732_v59 = vld [vmem:[%s3667_s4 + $0x11f0] sm:$0xff]  ;;  %v733_v60 = vld [vmem:[%s3667_s4 + $0x11f8] sm:$0xff]  ;;  %2773 = vst [vmem:[%s3682_s18 + $0x11b8] sm:$0xff] %v1749_v49  ;;  %v1755_v61 = vmul.f32 0.03125, %v731_v58 }
 0x159   : > { %2774 = vst [vmem:[%s3682_s18 + $0x11c0] sm:$0xff] %v1750_v50  ;;  %2775 = vst [vmem:[%s3682_s18 + $0x11c8] sm:$0xff] %v1751_v51  ;;  %v1756_v62 = vmul.f32 0.03125, %v732_v59  ;;  %v1757_v63 = vmul.f32 0.03125, %v733_v60  ;;  %v734_v0 = vld [vmem:[%s3667_s4 + $0x1200] sm:$0xff]  ;;  %v735_v1 = vld [vmem:[%s3667_s4 + $0x1208] sm:$0xff] }
 0x15a   : > { %v736_v2 = vld [vmem:[%s3667_s4 + $0x1210] sm:$0xff]  ;;  %2776 = vst [vmem:[%s3682_s18 + $0x11d0] sm:$0xff] %v1752_v55  ;;  %2777 = vst [vmem:[%s3682_s18 + $0x11d8] sm:$0xff] %v1753_v56  ;;  %v1758_v3 = vmul.f32 0.03125, %v734_v0  ;;  %v1759_v4 = vmul.f32 0.03125, %v735_v1  ;;  %v737_v6 = vld [vmem:[%s3667_s4 + $0x1218] sm:$0xff] }
 0x15b   : > { %2778 = vst [vmem:[%s3682_s18 + $0x11e0] sm:$0xff] %v1754_v57  ;;  %v1760_v5 = vmul.f32 0.03125, %v736_v2  ;;  %v738_v7 = vld [vmem:[%s3667_s4 + $0x1220] sm:$0xff]  ;;  %v739_v8 = vld [vmem:[%s3667_s4 + $0x1228] sm:$0xff]  ;;  %2779 = vst [vmem:[%s3682_s18 + $0x11e8] sm:$0xff] %v1755_v61  ;;  %v1761_v9 = vmul.f32 0.03125, %v737_v6 }
 0x15c   : > { %2780 = vst [vmem:[%s3682_s18 + $0x11f0] sm:$0xff] %v1756_v62  ;;  %2781 = vst [vmem:[%s3682_s18 + $0x11f8] sm:$0xff] %v1757_v63  ;;  %v1762_v10 = vmul.f32 0.03125, %v738_v7  ;;  %v1763_v11 = vmul.f32 0.03125, %v739_v8  ;;  %v740_v12 = vld [vmem:[%s3667_s4 + $0x1230] sm:$0xff]  ;;  %v741_v13 = vld [vmem:[%s3667_s4 + $0x1238] sm:$0xff] }
 0x15d   : > { %v742_v14 = vld [vmem:[%s3667_s4 + $0x1240] sm:$0xff]  ;;  %2782 = vst [vmem:[%s3682_s18 + $0x1200] sm:$0xff] %v1758_v3  ;;  %2783 = vst [vmem:[%s3682_s18 + $0x1208] sm:$0xff] %v1759_v4  ;;  %v1764_v15 = vmul.f32 0.03125, %v740_v12  ;;  %v1765_v16 = vmul.f32 0.03125, %v741_v13  ;;  %v743_v18 = vld [vmem:[%s3667_s4 + $0x1248] sm:$0xff] }
 0x15e   : > { %2784 = vst [vmem:[%s3682_s18 + $0x1210] sm:$0xff] %v1760_v5  ;;  %v1766_v17 = vmul.f32 0.03125, %v742_v14  ;;  %v744_v19 = vld [vmem:[%s3667_s4 + $0x1250] sm:$0xff]  ;;  %v745_v20 = vld [vmem:[%s3667_s4 + $0x1258] sm:$0xff]  ;;  %2785 = vst [vmem:[%s3682_s18 + $0x1218] sm:$0xff] %v1761_v9  ;;  %v1767_v21 = vmul.f32 0.03125, %v743_v18 }
 0x15f   : > { %2786 = vst [vmem:[%s3682_s18 + $0x1220] sm:$0xff] %v1762_v10  ;;  %2787 = vst [vmem:[%s3682_s18 + $0x1228] sm:$0xff] %v1763_v11  ;;  %v1768_v22 = vmul.f32 0.03125, %v744_v19  ;;  %v1769_v23 = vmul.f32 0.03125, %v745_v20  ;;  %v746_v24 = vld [vmem:[%s3667_s4 + $0x1260] sm:$0xff]  ;;  %v747_v25 = vld [vmem:[%s3667_s4 + $0x1268] sm:$0xff] }
 0x160   : > { %v748_v26 = vld [vmem:[%s3667_s4 + $0x1270] sm:$0xff]  ;;  %2788 = vst [vmem:[%s3682_s18 + $0x1230] sm:$0xff] %v1764_v15  ;;  %2789 = vst [vmem:[%s3682_s18 + $0x1238] sm:$0xff] %v1765_v16  ;;  %v1770_v27 = vmul.f32 0.03125, %v746_v24  ;;  %v1771_v28 = vmul.f32 0.03125, %v747_v25  ;;  %v749_v30 = vld [vmem:[%s3667_s4 + $0x1278] sm:$0xff] }
 0x161   : > { %2790 = vst [vmem:[%s3682_s18 + $0x1240] sm:$0xff] %v1766_v17  ;;  %v1772_v29 = vmul.f32 0.03125, %v748_v26  ;;  %v750_v31 = vld [vmem:[%s3667_s4 + $0x1280] sm:$0xff]  ;;  %v751_v32 = vld [vmem:[%s3667_s4 + $0x1288] sm:$0xff]  ;;  %2791 = vst [vmem:[%s3682_s18 + $0x1248] sm:$0xff] %v1767_v21  ;;  %v1773_v33 = vmul.f32 0.03125, %v749_v30 }
 0x162   : > { %2792 = vst [vmem:[%s3682_s18 + $0x1250] sm:$0xff] %v1768_v22  ;;  %2793 = vst [vmem:[%s3682_s18 + $0x1258] sm:$0xff] %v1769_v23  ;;  %v1774_v34 = vmul.f32 0.03125, %v750_v31  ;;  %v1775_v35 = vmul.f32 0.03125, %v751_v32  ;;  %v752_v36 = vld [vmem:[%s3667_s4 + $0x1290] sm:$0xff]  ;;  %v753_v37 = vld [vmem:[%s3667_s4 + $0x1298] sm:$0xff] }
 0x163   : > { %v754_v38 = vld [vmem:[%s3667_s4 + $0x12a0] sm:$0xff]  ;;  %2794 = vst [vmem:[%s3682_s18 + $0x1260] sm:$0xff] %v1770_v27  ;;  %2795 = vst [vmem:[%s3682_s18 + $0x1268] sm:$0xff] %v1771_v28  ;;  %v1776_v39 = vmul.f32 0.03125, %v752_v36  ;;  %v1777_v40 = vmul.f32 0.03125, %v753_v37  ;;  %v755_v42 = vld [vmem:[%s3667_s4 + $0x12a8] sm:$0xff] }
 0x164   : > { %2796 = vst [vmem:[%s3682_s18 + $0x1270] sm:$0xff] %v1772_v29  ;;  %v1778_v41 = vmul.f32 0.03125, %v754_v38  ;;  %v756_v43 = vld [vmem:[%s3667_s4 + $0x12b0] sm:$0xff]  ;;  %v757_v44 = vld [vmem:[%s3667_s4 + $0x12b8] sm:$0xff]  ;;  %2797 = vst [vmem:[%s3682_s18 + $0x1278] sm:$0xff] %v1773_v33  ;;  %v1779_v45 = vmul.f32 0.03125, %v755_v42 }
 0x165   : > { %2798 = vst [vmem:[%s3682_s18 + $0x1280] sm:$0xff] %v1774_v34  ;;  %2799 = vst [vmem:[%s3682_s18 + $0x1288] sm:$0xff] %v1775_v35  ;;  %v1780_v46 = vmul.f32 0.03125, %v756_v43  ;;  %v1781_v47 = vmul.f32 0.03125, %v757_v44  ;;  %v758_v48 = vld [vmem:[%s3667_s4 + $0x12c0] sm:$0xff]  ;;  %v759_v49 = vld [vmem:[%s3667_s4 + $0x12c8] sm:$0xff] }
 0x166   : > { %v760_v50 = vld [vmem:[%s3667_s4 + $0x12d0] sm:$0xff]  ;;  %2800 = vst [vmem:[%s3682_s18 + $0x1290] sm:$0xff] %v1776_v39  ;;  %2801 = vst [vmem:[%s3682_s18 + $0x1298] sm:$0xff] %v1777_v40  ;;  %v1782_v51 = vmul.f32 0.03125, %v758_v48  ;;  %v1783_v52 = vmul.f32 0.03125, %v759_v49  ;;  %v761_v54 = vld [vmem:[%s3667_s4 + $0x12d8] sm:$0xff] }
 0x167   : > { %2802 = vst [vmem:[%s3682_s18 + $0x12a0] sm:$0xff] %v1778_v41  ;;  %v1784_v53 = vmul.f32 0.03125, %v760_v50  ;;  %v762_v55 = vld [vmem:[%s3667_s4 + $0x12e0] sm:$0xff]  ;;  %v763_v56 = vld [vmem:[%s3667_s4 + $0x12e8] sm:$0xff]  ;;  %2803 = vst [vmem:[%s3682_s18 + $0x12a8] sm:$0xff] %v1779_v45  ;;  %v1785_v57 = vmul.f32 0.03125, %v761_v54 }
 0x168   : > { %2804 = vst [vmem:[%s3682_s18 + $0x12b0] sm:$0xff] %v1780_v46  ;;  %2805 = vst [vmem:[%s3682_s18 + $0x12b8] sm:$0xff] %v1781_v47  ;;  %v1786_v58 = vmul.f32 0.03125, %v762_v55  ;;  %v1787_v59 = vmul.f32 0.03125, %v763_v56  ;;  %v764_v60 = vld [vmem:[%s3667_s4 + $0x12f0] sm:$0xff]  ;;  %v765_v61 = vld [vmem:[%s3667_s4 + $0x12f8] sm:$0xff] }
 0x169   : > { %v766_v62 = vld [vmem:[%s3667_s4 + $0x1300] sm:$0xff]  ;;  %2806 = vst [vmem:[%s3682_s18 + $0x12c0] sm:$0xff] %v1782_v51  ;;  %2807 = vst [vmem:[%s3682_s18 + $0x12c8] sm:$0xff] %v1783_v52  ;;  %v1788_v63 = vmul.f32 0.03125, %v764_v60  ;;  %v1789_v0 = vmul.f32 0.03125, %v765_v61  ;;  %v767_v2 = vld [vmem:[%s3667_s4 + $0x1308] sm:$0xff] }
 0x16a   : > { %2808 = vst [vmem:[%s3682_s18 + $0x12d0] sm:$0xff] %v1784_v53  ;;  %v1790_v1 = vmul.f32 0.03125, %v766_v62  ;;  %v768_v3 = vld [vmem:[%s3667_s4 + $0x1310] sm:$0xff]  ;;  %v769_v4 = vld [vmem:[%s3667_s4 + $0x1318] sm:$0xff]  ;;  %2809 = vst [vmem:[%s3682_s18 + $0x12d8] sm:$0xff] %v1785_v57  ;;  %v1791_v5 = vmul.f32 0.03125, %v767_v2 }
 0x16b   : > { %2810 = vst [vmem:[%s3682_s18 + $0x12e0] sm:$0xff] %v1786_v58  ;;  %2811 = vst [vmem:[%s3682_s18 + $0x12e8] sm:$0xff] %v1787_v59  ;;  %v1792_v6 = vmul.f32 0.03125, %v768_v3  ;;  %v1793_v7 = vmul.f32 0.03125, %v769_v4  ;;  %v770_v8 = vld [vmem:[%s3667_s4 + $0x1320] sm:$0xff]  ;;  %v771_v9 = vld [vmem:[%s3667_s4 + $0x1328] sm:$0xff] }
 0x16c   : > { %v772_v10 = vld [vmem:[%s3667_s4 + $0x1330] sm:$0xff]  ;;  %2812 = vst [vmem:[%s3682_s18 + $0x12f0] sm:$0xff] %v1788_v63  ;;  %2813 = vst [vmem:[%s3682_s18 + $0x12f8] sm:$0xff] %v1789_v0  ;;  %v1794_v11 = vmul.f32 0.03125, %v770_v8  ;;  %v1795_v12 = vmul.f32 0.03125, %v771_v9  ;;  %v773_v14 = vld [vmem:[%s3667_s4 + $0x1338] sm:$0xff] }
 0x16d   : > { %2814 = vst [vmem:[%s3682_s18 + $0x1300] sm:$0xff] %v1790_v1  ;;  %v1796_v13 = vmul.f32 0.03125, %v772_v10  ;;  %v774_v15 = vld [vmem:[%s3667_s4 + $0x1340] sm:$0xff]  ;;  %v775_v16 = vld [vmem:[%s3667_s4 + $0x1348] sm:$0xff]  ;;  %2815 = vst [vmem:[%s3682_s18 + $0x1308] sm:$0xff] %v1791_v5  ;;  %v1797_v17 = vmul.f32 0.03125, %v773_v14 }
 0x16e   : > { %2816 = vst [vmem:[%s3682_s18 + $0x1310] sm:$0xff] %v1792_v6  ;;  %2817 = vst [vmem:[%s3682_s18 + $0x1318] sm:$0xff] %v1793_v7  ;;  %v1798_v18 = vmul.f32 0.03125, %v774_v15  ;;  %v1799_v19 = vmul.f32 0.03125, %v775_v16  ;;  %v776_v20 = vld [vmem:[%s3667_s4 + $0x1350] sm:$0xff]  ;;  %v777_v21 = vld [vmem:[%s3667_s4 + $0x1358] sm:$0xff] }
 0x16f   : > { %v778_v22 = vld [vmem:[%s3667_s4 + $0x1360] sm:$0xff]  ;;  %2818 = vst [vmem:[%s3682_s18 + $0x1320] sm:$0xff] %v1794_v11  ;;  %2819 = vst [vmem:[%s3682_s18 + $0x1328] sm:$0xff] %v1795_v12  ;;  %v1800_v23 = vmul.f32 0.03125, %v776_v20  ;;  %v1801_v24 = vmul.f32 0.03125, %v777_v21  ;;  %v779_v26 = vld [vmem:[%s3667_s4 + $0x1368] sm:$0xff] }
 0x170   : > { %2820 = vst [vmem:[%s3682_s18 + $0x1330] sm:$0xff] %v1796_v13  ;;  %v1802_v25 = vmul.f32 0.03125, %v778_v22  ;;  %v780_v27 = vld [vmem:[%s3667_s4 + $0x1370] sm:$0xff]  ;;  %v781_v28 = vld [vmem:[%s3667_s4 + $0x1378] sm:$0xff]  ;;  %2821 = vst [vmem:[%s3682_s18 + $0x1338] sm:$0xff] %v1797_v17  ;;  %v1803_v29 = vmul.f32 0.03125, %v779_v26 }
 0x171   : > { %2822 = vst [vmem:[%s3682_s18 + $0x1340] sm:$0xff] %v1798_v18  ;;  %2823 = vst [vmem:[%s3682_s18 + $0x1348] sm:$0xff] %v1799_v19  ;;  %v1804_v30 = vmul.f32 0.03125, %v780_v27  ;;  %v1805_v31 = vmul.f32 0.03125, %v781_v28  ;;  %v782_v32 = vld [vmem:[%s3667_s4 + $0x1380] sm:$0xff]  ;;  %v783_v33 = vld [vmem:[%s3667_s4 + $0x1388] sm:$0xff] }
 0x172   : > { %v784_v34 = vld [vmem:[%s3667_s4 + $0x1390] sm:$0xff]  ;;  %2824 = vst [vmem:[%s3682_s18 + $0x1350] sm:$0xff] %v1800_v23  ;;  %2825 = vst [vmem:[%s3682_s18 + $0x1358] sm:$0xff] %v1801_v24  ;;  %v1806_v35 = vmul.f32 0.03125, %v782_v32  ;;  %v1807_v36 = vmul.f32 0.03125, %v783_v33  ;;  %v785_v38 = vld [vmem:[%s3667_s4 + $0x1398] sm:$0xff] }
 0x173   : > { %2826 = vst [vmem:[%s3682_s18 + $0x1360] sm:$0xff] %v1802_v25  ;;  %v1808_v37 = vmul.f32 0.03125, %v784_v34  ;;  %v786_v39 = vld [vmem:[%s3667_s4 + $0x13a0] sm:$0xff]  ;;  %v787_v40 = vld [vmem:[%s3667_s4 + $0x13a8] sm:$0xff]  ;;  %2827 = vst [vmem:[%s3682_s18 + $0x1368] sm:$0xff] %v1803_v29  ;;  %v1809_v41 = vmul.f32 0.03125, %v785_v38 }
 0x174   : > { %2828 = vst [vmem:[%s3682_s18 + $0x1370] sm:$0xff] %v1804_v30  ;;  %2829 = vst [vmem:[%s3682_s18 + $0x1378] sm:$0xff] %v1805_v31  ;;  %v1810_v42 = vmul.f32 0.03125, %v786_v39  ;;  %v1811_v43 = vmul.f32 0.03125, %v787_v40  ;;  %v788_v44 = vld [vmem:[%s3667_s4 + $0x13b0] sm:$0xff]  ;;  %v789_v45 = vld [vmem:[%s3667_s4 + $0x13b8] sm:$0xff] }
 0x175   : > { %v790_v46 = vld [vmem:[%s3667_s4 + $0x13c0] sm:$0xff]  ;;  %2830 = vst [vmem:[%s3682_s18 + $0x1380] sm:$0xff] %v1806_v35  ;;  %2831 = vst [vmem:[%s3682_s18 + $0x1388] sm:$0xff] %v1807_v36  ;;  %v1812_v47 = vmul.f32 0.03125, %v788_v44  ;;  %v1813_v48 = vmul.f32 0.03125, %v789_v45  ;;  %v791_v50 = vld [vmem:[%s3667_s4 + $0x13c8] sm:$0xff] }
 0x176   : > { %2832 = vst [vmem:[%s3682_s18 + $0x1390] sm:$0xff] %v1808_v37  ;;  %v1814_v49 = vmul.f32 0.03125, %v790_v46  ;;  %v792_v51 = vld [vmem:[%s3667_s4 + $0x13d0] sm:$0xff]  ;;  %v793_v52 = vld [vmem:[%s3667_s4 + $0x13d8] sm:$0xff]  ;;  %2833 = vst [vmem:[%s3682_s18 + $0x1398] sm:$0xff] %v1809_v41  ;;  %v1815_v53 = vmul.f32 0.03125, %v791_v50 }
 0x177   : > { %2834 = vst [vmem:[%s3682_s18 + $0x13a0] sm:$0xff] %v1810_v42  ;;  %2835 = vst [vmem:[%s3682_s18 + $0x13a8] sm:$0xff] %v1811_v43  ;;  %v1816_v54 = vmul.f32 0.03125, %v792_v51  ;;  %v1817_v55 = vmul.f32 0.03125, %v793_v52  ;;  %v794_v56 = vld [vmem:[%s3667_s4 + $0x13e0] sm:$0xff]  ;;  %v795_v57 = vld [vmem:[%s3667_s4 + $0x13e8] sm:$0xff] }
 0x178   : > { %v796_v58 = vld [vmem:[%s3667_s4 + $0x13f0] sm:$0xff]  ;;  %2836 = vst [vmem:[%s3682_s18 + $0x13b0] sm:$0xff] %v1812_v47  ;;  %2837 = vst [vmem:[%s3682_s18 + $0x13b8] sm:$0xff] %v1813_v48  ;;  %v1818_v59 = vmul.f32 0.03125, %v794_v56  ;;  %v1819_v60 = vmul.f32 0.03125, %v795_v57  ;;  %v797_v62 = vld [vmem:[%s3667_s4 + $0x13f8] sm:$0xff] }
 0x179   : > { %2838 = vst [vmem:[%s3682_s18 + $0x13c0] sm:$0xff] %v1814_v49  ;;  %v1820_v61 = vmul.f32 0.03125, %v796_v58  ;;  %v798_v63 = vld [vmem:[%s3667_s4 + $0x1400] sm:$0xff]  ;;  %v799_v0 = vld [vmem:[%s3667_s4 + $0x1408] sm:$0xff]  ;;  %2839 = vst [vmem:[%s3682_s18 + $0x13c8] sm:$0xff] %v1815_v53  ;;  %v1821_v1 = vmul.f32 0.03125, %v797_v62 }
 0x17a   : > { %2840 = vst [vmem:[%s3682_s18 + $0x13d0] sm:$0xff] %v1816_v54  ;;  %2841 = vst [vmem:[%s3682_s18 + $0x13d8] sm:$0xff] %v1817_v55  ;;  %v1822_v2 = vmul.f32 0.03125, %v798_v63  ;;  %v1823_v3 = vmul.f32 0.03125, %v799_v0  ;;  %v800_v4 = vld [vmem:[%s3667_s4 + $0x1410] sm:$0xff]  ;;  %v801_v5 = vld [vmem:[%s3667_s4 + $0x1418] sm:$0xff] }
 0x17b   : > { %v802_v6 = vld [vmem:[%s3667_s4 + $0x1420] sm:$0xff]  ;;  %2842 = vst [vmem:[%s3682_s18 + $0x13e0] sm:$0xff] %v1818_v59  ;;  %2843 = vst [vmem:[%s3682_s18 + $0x13e8] sm:$0xff] %v1819_v60  ;;  %v1824_v7 = vmul.f32 0.03125, %v800_v4  ;;  %v1825_v8 = vmul.f32 0.03125, %v801_v5  ;;  %v803_v10 = vld [vmem:[%s3667_s4 + $0x1428] sm:$0xff] }
 0x17c   : > { %2844 = vst [vmem:[%s3682_s18 + $0x13f0] sm:$0xff] %v1820_v61  ;;  %v1826_v9 = vmul.f32 0.03125, %v802_v6  ;;  %v804_v11 = vld [vmem:[%s3667_s4 + $0x1430] sm:$0xff]  ;;  %v805_v12 = vld [vmem:[%s3667_s4 + $0x1438] sm:$0xff]  ;;  %2845 = vst [vmem:[%s3682_s18 + $0x13f8] sm:$0xff] %v1821_v1  ;;  %v1827_v13 = vmul.f32 0.03125, %v803_v10 }
 0x17d   : > { %2846 = vst [vmem:[%s3682_s18 + $0x1400] sm:$0xff] %v1822_v2  ;;  %2847 = vst [vmem:[%s3682_s18 + $0x1408] sm:$0xff] %v1823_v3  ;;  %v1828_v14 = vmul.f32 0.03125, %v804_v11  ;;  %v1829_v15 = vmul.f32 0.03125, %v805_v12  ;;  %v806_v16 = vld [vmem:[%s3667_s4 + $0x1440] sm:$0xff]  ;;  %v807_v17 = vld [vmem:[%s3667_s4 + $0x1448] sm:$0xff] }
 0x17e   : > { %v808_v18 = vld [vmem:[%s3667_s4 + $0x1450] sm:$0xff]  ;;  %2848 = vst [vmem:[%s3682_s18 + $0x1410] sm:$0xff] %v1824_v7  ;;  %2849 = vst [vmem:[%s3682_s18 + $0x1418] sm:$0xff] %v1825_v8  ;;  %v1830_v19 = vmul.f32 0.03125, %v806_v16  ;;  %v1831_v20 = vmul.f32 0.03125, %v807_v17  ;;  %v809_v22 = vld [vmem:[%s3667_s4 + $0x1458] sm:$0xff] }
 0x17f   : > { %2850 = vst [vmem:[%s3682_s18 + $0x1420] sm:$0xff] %v1826_v9  ;;  %v1832_v21 = vmul.f32 0.03125, %v808_v18  ;;  %v810_v23 = vld [vmem:[%s3667_s4 + $0x1460] sm:$0xff]  ;;  %v811_v24 = vld [vmem:[%s3667_s4 + $0x1468] sm:$0xff]  ;;  %2851 = vst [vmem:[%s3682_s18 + $0x1428] sm:$0xff] %v1827_v13  ;;  %v1833_v25 = vmul.f32 0.03125, %v809_v22 }
 0x180   : > { %2852 = vst [vmem:[%s3682_s18 + $0x1430] sm:$0xff] %v1828_v14  ;;  %2853 = vst [vmem:[%s3682_s18 + $0x1438] sm:$0xff] %v1829_v15  ;;  %v1834_v26 = vmul.f32 0.03125, %v810_v23  ;;  %v1835_v27 = vmul.f32 0.03125, %v811_v24  ;;  %v812_v28 = vld [vmem:[%s3667_s4 + $0x1470] sm:$0xff]  ;;  %v813_v29 = vld [vmem:[%s3667_s4 + $0x1478] sm:$0xff] }
 0x181   : > { %v814_v30 = vld [vmem:[%s3667_s4 + $0x1480] sm:$0xff]  ;;  %2854 = vst [vmem:[%s3682_s18 + $0x1440] sm:$0xff] %v1830_v19  ;;  %2855 = vst [vmem:[%s3682_s18 + $0x1448] sm:$0xff] %v1831_v20  ;;  %v1836_v31 = vmul.f32 0.03125, %v812_v28  ;;  %v1837_v32 = vmul.f32 0.03125, %v813_v29  ;;  %v815_v34 = vld [vmem:[%s3667_s4 + $0x1488] sm:$0xff] }
 0x182   : > { %2856 = vst [vmem:[%s3682_s18 + $0x1450] sm:$0xff] %v1832_v21  ;;  %v1838_v33 = vmul.f32 0.03125, %v814_v30  ;;  %v816_v35 = vld [vmem:[%s3667_s4 + $0x1490] sm:$0xff]  ;;  %v817_v36 = vld [vmem:[%s3667_s4 + $0x1498] sm:$0xff]  ;;  %2857 = vst [vmem:[%s3682_s18 + $0x1458] sm:$0xff] %v1833_v25  ;;  %v1839_v37 = vmul.f32 0.03125, %v815_v34 }
 0x183   : > { %2858 = vst [vmem:[%s3682_s18 + $0x1460] sm:$0xff] %v1834_v26  ;;  %2859 = vst [vmem:[%s3682_s18 + $0x1468] sm:$0xff] %v1835_v27  ;;  %v1840_v38 = vmul.f32 0.03125, %v816_v35  ;;  %v1841_v39 = vmul.f32 0.03125, %v817_v36  ;;  %v818_v40 = vld [vmem:[%s3667_s4 + $0x14a0] sm:$0xff]  ;;  %v819_v41 = vld [vmem:[%s3667_s4 + $0x14a8] sm:$0xff] }
 0x184   : > { %v820_v42 = vld [vmem:[%s3667_s4 + $0x14b0] sm:$0xff]  ;;  %2860 = vst [vmem:[%s3682_s18 + $0x1470] sm:$0xff] %v1836_v31  ;;  %2861 = vst [vmem:[%s3682_s18 + $0x1478] sm:$0xff] %v1837_v32  ;;  %v1842_v43 = vmul.f32 0.03125, %v818_v40  ;;  %v1843_v44 = vmul.f32 0.03125, %v819_v41  ;;  %v821_v46 = vld [vmem:[%s3667_s4 + $0x14b8] sm:$0xff] }
 0x185   : > { %2862 = vst [vmem:[%s3682_s18 + $0x1480] sm:$0xff] %v1838_v33  ;;  %v1844_v45 = vmul.f32 0.03125, %v820_v42  ;;  %v822_v47 = vld [vmem:[%s3667_s4 + $0x14c0] sm:$0xff]  ;;  %v823_v48 = vld [vmem:[%s3667_s4 + $0x14c8] sm:$0xff]  ;;  %2863 = vst [vmem:[%s3682_s18 + $0x1488] sm:$0xff] %v1839_v37  ;;  %v1845_v49 = vmul.f32 0.03125, %v821_v46 }
 0x186   : > { %2864 = vst [vmem:[%s3682_s18 + $0x1490] sm:$0xff] %v1840_v38  ;;  %2865 = vst [vmem:[%s3682_s18 + $0x1498] sm:$0xff] %v1841_v39  ;;  %v1846_v50 = vmul.f32 0.03125, %v822_v47  ;;  %v1847_v51 = vmul.f32 0.03125, %v823_v48  ;;  %v824_v52 = vld [vmem:[%s3667_s4 + $0x14d0] sm:$0xff]  ;;  %v825_v53 = vld [vmem:[%s3667_s4 + $0x14d8] sm:$0xff] }
 0x187   : > { %v826_v54 = vld [vmem:[%s3667_s4 + $0x14e0] sm:$0xff]  ;;  %2866 = vst [vmem:[%s3682_s18 + $0x14a0] sm:$0xff] %v1842_v43  ;;  %2867 = vst [vmem:[%s3682_s18 + $0x14a8] sm:$0xff] %v1843_v44  ;;  %v1848_v55 = vmul.f32 0.03125, %v824_v52  ;;  %v1849_v56 = vmul.f32 0.03125, %v825_v53  ;;  %v827_v58 = vld [vmem:[%s3667_s4 + $0x14e8] sm:$0xff] }
 0x188   : > { %2868 = vst [vmem:[%s3682_s18 + $0x14b0] sm:$0xff] %v1844_v45  ;;  %v1850_v57 = vmul.f32 0.03125, %v826_v54  ;;  %v828_v59 = vld [vmem:[%s3667_s4 + $0x14f0] sm:$0xff]  ;;  %v829_v60 = vld [vmem:[%s3667_s4 + $0x14f8] sm:$0xff]  ;;  %2869 = vst [vmem:[%s3682_s18 + $0x14b8] sm:$0xff] %v1845_v49  ;;  %v1851_v61 = vmul.f32 0.03125, %v827_v58 }
 0x189   : > { %2870 = vst [vmem:[%s3682_s18 + $0x14c0] sm:$0xff] %v1846_v50  ;;  %2871 = vst [vmem:[%s3682_s18 + $0x14c8] sm:$0xff] %v1847_v51  ;;  %v1852_v62 = vmul.f32 0.03125, %v828_v59  ;;  %v1853_v63 = vmul.f32 0.03125, %v829_v60  ;;  %v830_v0 = vld [vmem:[%s3667_s4 + $0x1500] sm:$0xff]  ;;  %v831_v1 = vld [vmem:[%s3667_s4 + $0x1508] sm:$0xff] }
 0x18a   : > { %v832_v2 = vld [vmem:[%s3667_s4 + $0x1510] sm:$0xff]  ;;  %2872 = vst [vmem:[%s3682_s18 + $0x14d0] sm:$0xff] %v1848_v55  ;;  %2873 = vst [vmem:[%s3682_s18 + $0x14d8] sm:$0xff] %v1849_v56  ;;  %v1854_v3 = vmul.f32 0.03125, %v830_v0  ;;  %v1855_v4 = vmul.f32 0.03125, %v831_v1  ;;  %v833_v6 = vld [vmem:[%s3667_s4 + $0x1518] sm:$0xff] }
 0x18b   : > { %2874 = vst [vmem:[%s3682_s18 + $0x14e0] sm:$0xff] %v1850_v57  ;;  %v1856_v5 = vmul.f32 0.03125, %v832_v2  ;;  %v834_v7 = vld [vmem:[%s3667_s4 + $0x1520] sm:$0xff]  ;;  %v835_v8 = vld [vmem:[%s3667_s4 + $0x1528] sm:$0xff]  ;;  %2875 = vst [vmem:[%s3682_s18 + $0x14e8] sm:$0xff] %v1851_v61  ;;  %v1857_v9 = vmul.f32 0.03125, %v833_v6 }
 0x18c   : > { %2876 = vst [vmem:[%s3682_s18 + $0x14f0] sm:$0xff] %v1852_v62  ;;  %2877 = vst [vmem:[%s3682_s18 + $0x14f8] sm:$0xff] %v1853_v63  ;;  %v1858_v10 = vmul.f32 0.03125, %v834_v7  ;;  %v1859_v11 = vmul.f32 0.03125, %v835_v8  ;;  %v836_v12 = vld [vmem:[%s3667_s4 + $0x1530] sm:$0xff]  ;;  %v837_v13 = vld [vmem:[%s3667_s4 + $0x1538] sm:$0xff] }
 0x18d   : > { %v838_v14 = vld [vmem:[%s3667_s4 + $0x1540] sm:$0xff]  ;;  %2878 = vst [vmem:[%s3682_s18 + $0x1500] sm:$0xff] %v1854_v3  ;;  %2879 = vst [vmem:[%s3682_s18 + $0x1508] sm:$0xff] %v1855_v4  ;;  %v1860_v15 = vmul.f32 0.03125, %v836_v12  ;;  %v1861_v16 = vmul.f32 0.03125, %v837_v13  ;;  %v839_v18 = vld [vmem:[%s3667_s4 + $0x1548] sm:$0xff] }
 0x18e   : > { %2880 = vst [vmem:[%s3682_s18 + $0x1510] sm:$0xff] %v1856_v5  ;;  %v1862_v17 = vmul.f32 0.03125, %v838_v14  ;;  %v840_v19 = vld [vmem:[%s3667_s4 + $0x1550] sm:$0xff]  ;;  %v841_v20 = vld [vmem:[%s3667_s4 + $0x1558] sm:$0xff]  ;;  %2881 = vst [vmem:[%s3682_s18 + $0x1518] sm:$0xff] %v1857_v9  ;;  %v1863_v21 = vmul.f32 0.03125, %v839_v18 }
 0x18f   : > { %2882 = vst [vmem:[%s3682_s18 + $0x1520] sm:$0xff] %v1858_v10  ;;  %2883 = vst [vmem:[%s3682_s18 + $0x1528] sm:$0xff] %v1859_v11  ;;  %v1864_v22 = vmul.f32 0.03125, %v840_v19  ;;  %v1865_v23 = vmul.f32 0.03125, %v841_v20  ;;  %v842_v24 = vld [vmem:[%s3667_s4 + $0x1560] sm:$0xff]  ;;  %v843_v25 = vld [vmem:[%s3667_s4 + $0x1568] sm:$0xff] }
 0x190   : > { %v844_v26 = vld [vmem:[%s3667_s4 + $0x1570] sm:$0xff]  ;;  %2884 = vst [vmem:[%s3682_s18 + $0x1530] sm:$0xff] %v1860_v15  ;;  %2885 = vst [vmem:[%s3682_s18 + $0x1538] sm:$0xff] %v1861_v16  ;;  %v1866_v27 = vmul.f32 0.03125, %v842_v24  ;;  %v1867_v28 = vmul.f32 0.03125, %v843_v25  ;;  %v845_v30 = vld [vmem:[%s3667_s4 + $0x1578] sm:$0xff] }
 0x191   : > { %2886 = vst [vmem:[%s3682_s18 + $0x1540] sm:$0xff] %v1862_v17  ;;  %v1868_v29 = vmul.f32 0.03125, %v844_v26  ;;  %v846_v31 = vld [vmem:[%s3667_s4 + $0x1580] sm:$0xff]  ;;  %v847_v32 = vld [vmem:[%s3667_s4 + $0x1588] sm:$0xff]  ;;  %2887 = vst [vmem:[%s3682_s18 + $0x1548] sm:$0xff] %v1863_v21  ;;  %v1869_v33 = vmul.f32 0.03125, %v845_v30 }
 0x192   : > { %2888 = vst [vmem:[%s3682_s18 + $0x1550] sm:$0xff] %v1864_v22  ;;  %2889 = vst [vmem:[%s3682_s18 + $0x1558] sm:$0xff] %v1865_v23  ;;  %v1870_v34 = vmul.f32 0.03125, %v846_v31  ;;  %v1871_v35 = vmul.f32 0.03125, %v847_v32  ;;  %v848_v36 = vld [vmem:[%s3667_s4 + $0x1590] sm:$0xff]  ;;  %v849_v37 = vld [vmem:[%s3667_s4 + $0x1598] sm:$0xff] }
 0x193   : > { %v850_v38 = vld [vmem:[%s3667_s4 + $0x15a0] sm:$0xff]  ;;  %2890 = vst [vmem:[%s3682_s18 + $0x1560] sm:$0xff] %v1866_v27  ;;  %2891 = vst [vmem:[%s3682_s18 + $0x1568] sm:$0xff] %v1867_v28  ;;  %v1872_v39 = vmul.f32 0.03125, %v848_v36  ;;  %v1873_v40 = vmul.f32 0.03125, %v849_v37  ;;  %v851_v42 = vld [vmem:[%s3667_s4 + $0x15a8] sm:$0xff] }
 0x194   : > { %2892 = vst [vmem:[%s3682_s18 + $0x1570] sm:$0xff] %v1868_v29  ;;  %v1874_v41 = vmul.f32 0.03125, %v850_v38  ;;  %v852_v43 = vld [vmem:[%s3667_s4 + $0x15b0] sm:$0xff]  ;;  %v853_v44 = vld [vmem:[%s3667_s4 + $0x15b8] sm:$0xff]  ;;  %2893 = vst [vmem:[%s3682_s18 + $0x1578] sm:$0xff] %v1869_v33  ;;  %v1875_v45 = vmul.f32 0.03125, %v851_v42 }
 0x195   : > { %2894 = vst [vmem:[%s3682_s18 + $0x1580] sm:$0xff] %v1870_v34  ;;  %2895 = vst [vmem:[%s3682_s18 + $0x1588] sm:$0xff] %v1871_v35  ;;  %v1876_v46 = vmul.f32 0.03125, %v852_v43  ;;  %v1877_v47 = vmul.f32 0.03125, %v853_v44  ;;  %v854_v48 = vld [vmem:[%s3667_s4 + $0x15c0] sm:$0xff]  ;;  %v855_v49 = vld [vmem:[%s3667_s4 + $0x15c8] sm:$0xff] }
 0x196   : > { %v856_v50 = vld [vmem:[%s3667_s4 + $0x15d0] sm:$0xff]  ;;  %2896 = vst [vmem:[%s3682_s18 + $0x1590] sm:$0xff] %v1872_v39  ;;  %2897 = vst [vmem:[%s3682_s18 + $0x1598] sm:$0xff] %v1873_v40  ;;  %v1878_v51 = vmul.f32 0.03125, %v854_v48  ;;  %v1879_v52 = vmul.f32 0.03125, %v855_v49  ;;  %v857_v54 = vld [vmem:[%s3667_s4 + $0x15d8] sm:$0xff] }
 0x197   : > { %2898 = vst [vmem:[%s3682_s18 + $0x15a0] sm:$0xff] %v1874_v41  ;;  %v1880_v53 = vmul.f32 0.03125, %v856_v50  ;;  %v858_v55 = vld [vmem:[%s3667_s4 + $0x15e0] sm:$0xff]  ;;  %v859_v56 = vld [vmem:[%s3667_s4 + $0x15e8] sm:$0xff]  ;;  %2899 = vst [vmem:[%s3682_s18 + $0x15a8] sm:$0xff] %v1875_v45  ;;  %v1881_v57 = vmul.f32 0.03125, %v857_v54 }
 0x198   : > { %2900 = vst [vmem:[%s3682_s18 + $0x15b0] sm:$0xff] %v1876_v46  ;;  %2901 = vst [vmem:[%s3682_s18 + $0x15b8] sm:$0xff] %v1877_v47  ;;  %v1882_v58 = vmul.f32 0.03125, %v858_v55  ;;  %v1883_v59 = vmul.f32 0.03125, %v859_v56  ;;  %v860_v60 = vld [vmem:[%s3667_s4 + $0x15f0] sm:$0xff]  ;;  %v861_v61 = vld [vmem:[%s3667_s4 + $0x15f8] sm:$0xff] }
 0x199   : > { %v862_v62 = vld [vmem:[%s3667_s4 + $0x1600] sm:$0xff]  ;;  %2902 = vst [vmem:[%s3682_s18 + $0x15c0] sm:$0xff] %v1878_v51  ;;  %2903 = vst [vmem:[%s3682_s18 + $0x15c8] sm:$0xff] %v1879_v52  ;;  %v1884_v63 = vmul.f32 0.03125, %v860_v60  ;;  %v1885_v0 = vmul.f32 0.03125, %v861_v61  ;;  %v863_v2 = vld [vmem:[%s3667_s4 + $0x1608] sm:$0xff] }
 0x19a   : > { %2904 = vst [vmem:[%s3682_s18 + $0x15d0] sm:$0xff] %v1880_v53  ;;  %v1886_v1 = vmul.f32 0.03125, %v862_v62  ;;  %v864_v3 = vld [vmem:[%s3667_s4 + $0x1610] sm:$0xff]  ;;  %v865_v4 = vld [vmem:[%s3667_s4 + $0x1618] sm:$0xff]  ;;  %2905 = vst [vmem:[%s3682_s18 + $0x15d8] sm:$0xff] %v1881_v57  ;;  %v1887_v5 = vmul.f32 0.03125, %v863_v2 }
 0x19b   : > { %2906 = vst [vmem:[%s3682_s18 + $0x15e0] sm:$0xff] %v1882_v58  ;;  %2907 = vst [vmem:[%s3682_s18 + $0x15e8] sm:$0xff] %v1883_v59  ;;  %v1888_v6 = vmul.f32 0.03125, %v864_v3  ;;  %v1889_v7 = vmul.f32 0.03125, %v865_v4  ;;  %v866_v8 = vld [vmem:[%s3667_s4 + $0x1620] sm:$0xff]  ;;  %v867_v9 = vld [vmem:[%s3667_s4 + $0x1628] sm:$0xff] }
 0x19c   : > { %v868_v10 = vld [vmem:[%s3667_s4 + $0x1630] sm:$0xff]  ;;  %2908 = vst [vmem:[%s3682_s18 + $0x15f0] sm:$0xff] %v1884_v63  ;;  %2909 = vst [vmem:[%s3682_s18 + $0x15f8] sm:$0xff] %v1885_v0  ;;  %v1890_v11 = vmul.f32 0.03125, %v866_v8  ;;  %v1891_v12 = vmul.f32 0.03125, %v867_v9  ;;  %v869_v14 = vld [vmem:[%s3667_s4 + $0x1638] sm:$0xff] }
 0x19d   : > { %2910 = vst [vmem:[%s3682_s18 + $0x1600] sm:$0xff] %v1886_v1  ;;  %v1892_v13 = vmul.f32 0.03125, %v868_v10  ;;  %v870_v15 = vld [vmem:[%s3667_s4 + $0x1640] sm:$0xff]  ;;  %v871_v16 = vld [vmem:[%s3667_s4 + $0x1648] sm:$0xff]  ;;  %2911 = vst [vmem:[%s3682_s18 + $0x1608] sm:$0xff] %v1887_v5  ;;  %v1893_v17 = vmul.f32 0.03125, %v869_v14 }
 0x19e   : > { %2912 = vst [vmem:[%s3682_s18 + $0x1610] sm:$0xff] %v1888_v6  ;;  %2913 = vst [vmem:[%s3682_s18 + $0x1618] sm:$0xff] %v1889_v7  ;;  %v1894_v18 = vmul.f32 0.03125, %v870_v15  ;;  %v1895_v19 = vmul.f32 0.03125, %v871_v16  ;;  %v872_v20 = vld [vmem:[%s3667_s4 + $0x1650] sm:$0xff]  ;;  %v873_v21 = vld [vmem:[%s3667_s4 + $0x1658] sm:$0xff] }
 0x19f   : > { %v874_v22 = vld [vmem:[%s3667_s4 + $0x1660] sm:$0xff]  ;;  %2914 = vst [vmem:[%s3682_s18 + $0x1620] sm:$0xff] %v1890_v11  ;;  %2915 = vst [vmem:[%s3682_s18 + $0x1628] sm:$0xff] %v1891_v12  ;;  %v1896_v23 = vmul.f32 0.03125, %v872_v20  ;;  %v1897_v24 = vmul.f32 0.03125, %v873_v21  ;;  %v875_v26 = vld [vmem:[%s3667_s4 + $0x1668] sm:$0xff] }
 0x1a0   : > { %2916 = vst [vmem:[%s3682_s18 + $0x1630] sm:$0xff] %v1892_v13  ;;  %v1898_v25 = vmul.f32 0.03125, %v874_v22  ;;  %v876_v27 = vld [vmem:[%s3667_s4 + $0x1670] sm:$0xff]  ;;  %v877_v28 = vld [vmem:[%s3667_s4 + $0x1678] sm:$0xff]  ;;  %2917 = vst [vmem:[%s3682_s18 + $0x1638] sm:$0xff] %v1893_v17  ;;  %v1899_v29 = vmul.f32 0.03125, %v875_v26 }
 0x1a1   : > { %2918 = vst [vmem:[%s3682_s18 + $0x1640] sm:$0xff] %v1894_v18  ;;  %2919 = vst [vmem:[%s3682_s18 + $0x1648] sm:$0xff] %v1895_v19  ;;  %v1900_v30 = vmul.f32 0.03125, %v876_v27  ;;  %v1901_v31 = vmul.f32 0.03125, %v877_v28  ;;  %v878_v32 = vld [vmem:[%s3667_s4 + $0x1680] sm:$0xff]  ;;  %v879_v33 = vld [vmem:[%s3667_s4 + $0x1688] sm:$0xff] }
 0x1a2   : > { %v880_v34 = vld [vmem:[%s3667_s4 + $0x1690] sm:$0xff]  ;;  %2920 = vst [vmem:[%s3682_s18 + $0x1650] sm:$0xff] %v1896_v23  ;;  %2921 = vst [vmem:[%s3682_s18 + $0x1658] sm:$0xff] %v1897_v24  ;;  %v1902_v35 = vmul.f32 0.03125, %v878_v32  ;;  %v1903_v36 = vmul.f32 0.03125, %v879_v33  ;;  %v881_v38 = vld [vmem:[%s3667_s4 + $0x1698] sm:$0xff] }
 0x1a3   : > { %2922 = vst [vmem:[%s3682_s18 + $0x1660] sm:$0xff] %v1898_v25  ;;  %v1904_v37 = vmul.f32 0.03125, %v880_v34  ;;  %v882_v39 = vld [vmem:[%s3667_s4 + $0x16a0] sm:$0xff]  ;;  %v883_v40 = vld [vmem:[%s3667_s4 + $0x16a8] sm:$0xff]  ;;  %2923 = vst [vmem:[%s3682_s18 + $0x1668] sm:$0xff] %v1899_v29  ;;  %v1905_v41 = vmul.f32 0.03125, %v881_v38 }
 0x1a4   : > { %2924 = vst [vmem:[%s3682_s18 + $0x1670] sm:$0xff] %v1900_v30  ;;  %2925 = vst [vmem:[%s3682_s18 + $0x1678] sm:$0xff] %v1901_v31  ;;  %v1906_v42 = vmul.f32 0.03125, %v882_v39  ;;  %v1907_v43 = vmul.f32 0.03125, %v883_v40  ;;  %v884_v44 = vld [vmem:[%s3667_s4 + $0x16b0] sm:$0xff]  ;;  %v885_v45 = vld [vmem:[%s3667_s4 + $0x16b8] sm:$0xff] }
 0x1a5   : > { %v886_v46 = vld [vmem:[%s3667_s4 + $0x16c0] sm:$0xff]  ;;  %2926 = vst [vmem:[%s3682_s18 + $0x1680] sm:$0xff] %v1902_v35  ;;  %2927 = vst [vmem:[%s3682_s18 + $0x1688] sm:$0xff] %v1903_v36  ;;  %v1908_v47 = vmul.f32 0.03125, %v884_v44  ;;  %v1909_v48 = vmul.f32 0.03125, %v885_v45  ;;  %v887_v50 = vld [vmem:[%s3667_s4 + $0x16c8] sm:$0xff] }
 0x1a6   : > { %2928 = vst [vmem:[%s3682_s18 + $0x1690] sm:$0xff] %v1904_v37  ;;  %v1910_v49 = vmul.f32 0.03125, %v886_v46  ;;  %v888_v51 = vld [vmem:[%s3667_s4 + $0x16d0] sm:$0xff]  ;;  %v889_v52 = vld [vmem:[%s3667_s4 + $0x16d8] sm:$0xff]  ;;  %2929 = vst [vmem:[%s3682_s18 + $0x1698] sm:$0xff] %v1905_v41  ;;  %v1911_v53 = vmul.f32 0.03125, %v887_v50 }
 0x1a7   : > { %2930 = vst [vmem:[%s3682_s18 + $0x16a0] sm:$0xff] %v1906_v42  ;;  %2931 = vst [vmem:[%s3682_s18 + $0x16a8] sm:$0xff] %v1907_v43  ;;  %v1912_v54 = vmul.f32 0.03125, %v888_v51  ;;  %v1913_v55 = vmul.f32 0.03125, %v889_v52  ;;  %v890_v56 = vld [vmem:[%s3667_s4 + $0x16e0] sm:$0xff]  ;;  %v891_v57 = vld [vmem:[%s3667_s4 + $0x16e8] sm:$0xff] }
 0x1a8   : > { %v892_v58 = vld [vmem:[%s3667_s4 + $0x16f0] sm:$0xff]  ;;  %2932 = vst [vmem:[%s3682_s18 + $0x16b0] sm:$0xff] %v1908_v47  ;;  %2933 = vst [vmem:[%s3682_s18 + $0x16b8] sm:$0xff] %v1909_v48  ;;  %v1914_v59 = vmul.f32 0.03125, %v890_v56  ;;  %v1915_v60 = vmul.f32 0.03125, %v891_v57  ;;  %v893_v62 = vld [vmem:[%s3667_s4 + $0x16f8] sm:$0xff] }
 0x1a9   : > { %2934 = vst [vmem:[%s3682_s18 + $0x16c0] sm:$0xff] %v1910_v49  ;;  %v1916_v61 = vmul.f32 0.03125, %v892_v58  ;;  %v894_v63 = vld [vmem:[%s3667_s4 + $0x1700] sm:$0xff]  ;;  %v895_v0 = vld [vmem:[%s3667_s4 + $0x1708] sm:$0xff]  ;;  %2935 = vst [vmem:[%s3682_s18 + $0x16c8] sm:$0xff] %v1911_v53  ;;  %v1917_v1 = vmul.f32 0.03125, %v893_v62 }
 0x1aa   : > { %2936 = vst [vmem:[%s3682_s18 + $0x16d0] sm:$0xff] %v1912_v54  ;;  %2937 = vst [vmem:[%s3682_s18 + $0x16d8] sm:$0xff] %v1913_v55  ;;  %v1918_v2 = vmul.f32 0.03125, %v894_v63  ;;  %v1919_v3 = vmul.f32 0.03125, %v895_v0  ;;  %v896_v4 = vld [vmem:[%s3667_s4 + $0x1710] sm:$0xff]  ;;  %v897_v5 = vld [vmem:[%s3667_s4 + $0x1718] sm:$0xff] }
 0x1ab   : > { %v898_v6 = vld [vmem:[%s3667_s4 + $0x1720] sm:$0xff]  ;;  %2938 = vst [vmem:[%s3682_s18 + $0x16e0] sm:$0xff] %v1914_v59  ;;  %2939 = vst [vmem:[%s3682_s18 + $0x16e8] sm:$0xff] %v1915_v60  ;;  %v1920_v7 = vmul.f32 0.03125, %v896_v4  ;;  %v1921_v8 = vmul.f32 0.03125, %v897_v5  ;;  %v899_v10 = vld [vmem:[%s3667_s4 + $0x1728] sm:$0xff] }
 0x1ac   : > { %2940 = vst [vmem:[%s3682_s18 + $0x16f0] sm:$0xff] %v1916_v61  ;;  %v1922_v9 = vmul.f32 0.03125, %v898_v6  ;;  %v900_v11 = vld [vmem:[%s3667_s4 + $0x1730] sm:$0xff]  ;;  %v901_v12 = vld [vmem:[%s3667_s4 + $0x1738] sm:$0xff]  ;;  %2941 = vst [vmem:[%s3682_s18 + $0x16f8] sm:$0xff] %v1917_v1  ;;  %v1923_v13 = vmul.f32 0.03125, %v899_v10 }
 0x1ad   : > { %2942 = vst [vmem:[%s3682_s18 + $0x1700] sm:$0xff] %v1918_v2  ;;  %2943 = vst [vmem:[%s3682_s18 + $0x1708] sm:$0xff] %v1919_v3  ;;  %v1924_v14 = vmul.f32 0.03125, %v900_v11  ;;  %v1925_v15 = vmul.f32 0.03125, %v901_v12  ;;  %v902_v16 = vld [vmem:[%s3667_s4 + $0x1740] sm:$0xff]  ;;  %v903_v17 = vld [vmem:[%s3667_s4 + $0x1748] sm:$0xff] }
 0x1ae   : > { %v904_v18 = vld [vmem:[%s3667_s4 + $0x1750] sm:$0xff]  ;;  %2944 = vst [vmem:[%s3682_s18 + $0x1710] sm:$0xff] %v1920_v7  ;;  %2945 = vst [vmem:[%s3682_s18 + $0x1718] sm:$0xff] %v1921_v8  ;;  %v1926_v19 = vmul.f32 0.03125, %v902_v16  ;;  %v1927_v20 = vmul.f32 0.03125, %v903_v17  ;;  %v905_v22 = vld [vmem:[%s3667_s4 + $0x1758] sm:$0xff] }
 0x1af   : > { %2946 = vst [vmem:[%s3682_s18 + $0x1720] sm:$0xff] %v1922_v9  ;;  %v1928_v21 = vmul.f32 0.03125, %v904_v18  ;;  %v906_v23 = vld [vmem:[%s3667_s4 + $0x1760] sm:$0xff]  ;;  %v907_v24 = vld [vmem:[%s3667_s4 + $0x1768] sm:$0xff]  ;;  %2947 = vst [vmem:[%s3682_s18 + $0x1728] sm:$0xff] %v1923_v13  ;;  %v1929_v25 = vmul.f32 0.03125, %v905_v22 }
 0x1b0   : > { %2948 = vst [vmem:[%s3682_s18 + $0x1730] sm:$0xff] %v1924_v14  ;;  %2949 = vst [vmem:[%s3682_s18 + $0x1738] sm:$0xff] %v1925_v15  ;;  %v1930_v26 = vmul.f32 0.03125, %v906_v23  ;;  %v1931_v27 = vmul.f32 0.03125, %v907_v24  ;;  %v908_v28 = vld [vmem:[%s3667_s4 + $0x1770] sm:$0xff]  ;;  %v909_v29 = vld [vmem:[%s3667_s4 + $0x1778] sm:$0xff] }
 0x1b1   : > { %v910_v30 = vld [vmem:[%s3667_s4 + $0x1780] sm:$0xff]  ;;  %2950 = vst [vmem:[%s3682_s18 + $0x1740] sm:$0xff] %v1926_v19  ;;  %2951 = vst [vmem:[%s3682_s18 + $0x1748] sm:$0xff] %v1927_v20  ;;  %v1932_v31 = vmul.f32 0.03125, %v908_v28  ;;  %v1933_v32 = vmul.f32 0.03125, %v909_v29  ;;  %v911_v34 = vld [vmem:[%s3667_s4 + $0x1788] sm:$0xff] }
 0x1b2   : > { %2952 = vst [vmem:[%s3682_s18 + $0x1750] sm:$0xff] %v1928_v21  ;;  %v1934_v33 = vmul.f32 0.03125, %v910_v30  ;;  %v912_v35 = vld [vmem:[%s3667_s4 + $0x1790] sm:$0xff]  ;;  %v913_v36 = vld [vmem:[%s3667_s4 + $0x1798] sm:$0xff]  ;;  %2953 = vst [vmem:[%s3682_s18 + $0x1758] sm:$0xff] %v1929_v25  ;;  %v1935_v37 = vmul.f32 0.03125, %v911_v34 }
 0x1b3   : > { %2954 = vst [vmem:[%s3682_s18 + $0x1760] sm:$0xff] %v1930_v26  ;;  %2955 = vst [vmem:[%s3682_s18 + $0x1768] sm:$0xff] %v1931_v27  ;;  %v1936_v38 = vmul.f32 0.03125, %v912_v35  ;;  %v1937_v39 = vmul.f32 0.03125, %v913_v36  ;;  %v914_v40 = vld [vmem:[%s3667_s4 + $0x17a0] sm:$0xff]  ;;  %v915_v41 = vld [vmem:[%s3667_s4 + $0x17a8] sm:$0xff] }
 0x1b4   : > { %v916_v42 = vld [vmem:[%s3667_s4 + $0x17b0] sm:$0xff]  ;;  %2956 = vst [vmem:[%s3682_s18 + $0x1770] sm:$0xff] %v1932_v31  ;;  %2957 = vst [vmem:[%s3682_s18 + $0x1778] sm:$0xff] %v1933_v32  ;;  %v1938_v43 = vmul.f32 0.03125, %v914_v40  ;;  %v1939_v44 = vmul.f32 0.03125, %v915_v41  ;;  %v917_v46 = vld [vmem:[%s3667_s4 + $0x17b8] sm:$0xff] }
 0x1b5   : > { %2958 = vst [vmem:[%s3682_s18 + $0x1780] sm:$0xff] %v1934_v33  ;;  %v1940_v45 = vmul.f32 0.03125, %v916_v42  ;;  %v918_v47 = vld [vmem:[%s3667_s4 + $0x17c0] sm:$0xff]  ;;  %v919_v48 = vld [vmem:[%s3667_s4 + $0x17c8] sm:$0xff]  ;;  %2959 = vst [vmem:[%s3682_s18 + $0x1788] sm:$0xff] %v1935_v37  ;;  %v1941_v49 = vmul.f32 0.03125, %v917_v46 }
 0x1b6   : > { %2960 = vst [vmem:[%s3682_s18 + $0x1790] sm:$0xff] %v1936_v38  ;;  %2961 = vst [vmem:[%s3682_s18 + $0x1798] sm:$0xff] %v1937_v39  ;;  %v1942_v50 = vmul.f32 0.03125, %v918_v47  ;;  %v1943_v51 = vmul.f32 0.03125, %v919_v48  ;;  %v920_v52 = vld [vmem:[%s3667_s4 + $0x17d0] sm:$0xff]  ;;  %v921_v53 = vld [vmem:[%s3667_s4 + $0x17d8] sm:$0xff] }
 0x1b7   : > { %v922_v54 = vld [vmem:[%s3667_s4 + $0x17e0] sm:$0xff]  ;;  %2962 = vst [vmem:[%s3682_s18 + $0x17a0] sm:$0xff] %v1938_v43  ;;  %2963 = vst [vmem:[%s3682_s18 + $0x17a8] sm:$0xff] %v1939_v44  ;;  %v1944_v55 = vmul.f32 0.03125, %v920_v52  ;;  %v1945_v56 = vmul.f32 0.03125, %v921_v53  ;;  %v923_v58 = vld [vmem:[%s3667_s4 + $0x17e8] sm:$0xff] }
 0x1b8   : > { %2964 = vst [vmem:[%s3682_s18 + $0x17b0] sm:$0xff] %v1940_v45  ;;  %v1946_v57 = vmul.f32 0.03125, %v922_v54  ;;  %v924_v59 = vld [vmem:[%s3667_s4 + $0x17f0] sm:$0xff]  ;;  %v925_v60 = vld [vmem:[%s3667_s4 + $0x17f8] sm:$0xff]  ;;  %2965 = vst [vmem:[%s3682_s18 + $0x17b8] sm:$0xff] %v1941_v49  ;;  %v1947_v61 = vmul.f32 0.03125, %v923_v58 }
 0x1b9   : > { %2966 = vst [vmem:[%s3682_s18 + $0x17c0] sm:$0xff] %v1942_v50  ;;  %2967 = vst [vmem:[%s3682_s18 + $0x17c8] sm:$0xff] %v1943_v51  ;;  %v1948_v62 = vmul.f32 0.03125, %v924_v59  ;;  %v1949_v63 = vmul.f32 0.03125, %v925_v60  ;;  %v926_v0 = vld [vmem:[%s3667_s4 + $0x1800] sm:$0xff]  ;;  %v927_v1 = vld [vmem:[%s3667_s4 + $0x1808] sm:$0xff] }
 0x1ba   : > { %v928_v2 = vld [vmem:[%s3667_s4 + $0x1810] sm:$0xff]  ;;  %2968 = vst [vmem:[%s3682_s18 + $0x17d0] sm:$0xff] %v1944_v55  ;;  %2969 = vst [vmem:[%s3682_s18 + $0x17d8] sm:$0xff] %v1945_v56  ;;  %v1950_v3 = vmul.f32 0.03125, %v926_v0  ;;  %v1951_v4 = vmul.f32 0.03125, %v927_v1  ;;  %v929_v6 = vld [vmem:[%s3667_s4 + $0x1818] sm:$0xff] }
 0x1bb   : > { %2970 = vst [vmem:[%s3682_s18 + $0x17e0] sm:$0xff] %v1946_v57  ;;  %v1952_v5 = vmul.f32 0.03125, %v928_v2  ;;  %v930_v7 = vld [vmem:[%s3667_s4 + $0x1820] sm:$0xff]  ;;  %v931_v8 = vld [vmem:[%s3667_s4 + $0x1828] sm:$0xff]  ;;  %2971 = vst [vmem:[%s3682_s18 + $0x17e8] sm:$0xff] %v1947_v61  ;;  %v1953_v9 = vmul.f32 0.03125, %v929_v6 }
 0x1bc   : > { %2972 = vst [vmem:[%s3682_s18 + $0x17f0] sm:$0xff] %v1948_v62  ;;  %2973 = vst [vmem:[%s3682_s18 + $0x17f8] sm:$0xff] %v1949_v63  ;;  %v1954_v10 = vmul.f32 0.03125, %v930_v7  ;;  %v1955_v11 = vmul.f32 0.03125, %v931_v8  ;;  %v932_v12 = vld [vmem:[%s3667_s4 + $0x1830] sm:$0xff]  ;;  %v933_v13 = vld [vmem:[%s3667_s4 + $0x1838] sm:$0xff] }
 0x1bd   : > { %v934_v14 = vld [vmem:[%s3667_s4 + $0x1840] sm:$0xff]  ;;  %2974 = vst [vmem:[%s3682_s18 + $0x1800] sm:$0xff] %v1950_v3  ;;  %2975 = vst [vmem:[%s3682_s18 + $0x1808] sm:$0xff] %v1951_v4  ;;  %v1956_v15 = vmul.f32 0.03125, %v932_v12  ;;  %v1957_v16 = vmul.f32 0.03125, %v933_v13  ;;  %v935_v18 = vld [vmem:[%s3667_s4 + $0x1848] sm:$0xff] }
 0x1be   : > { %2976 = vst [vmem:[%s3682_s18 + $0x1810] sm:$0xff] %v1952_v5  ;;  %v1958_v17 = vmul.f32 0.03125, %v934_v14  ;;  %v936_v19 = vld [vmem:[%s3667_s4 + $0x1850] sm:$0xff]  ;;  %v937_v20 = vld [vmem:[%s3667_s4 + $0x1858] sm:$0xff]  ;;  %2977 = vst [vmem:[%s3682_s18 + $0x1818] sm:$0xff] %v1953_v9  ;;  %v1959_v21 = vmul.f32 0.03125, %v935_v18 }
 0x1bf   : > { %2978 = vst [vmem:[%s3682_s18 + $0x1820] sm:$0xff] %v1954_v10  ;;  %2979 = vst [vmem:[%s3682_s18 + $0x1828] sm:$0xff] %v1955_v11  ;;  %v1960_v22 = vmul.f32 0.03125, %v936_v19  ;;  %v1961_v23 = vmul.f32 0.03125, %v937_v20  ;;  %v938_v24 = vld [vmem:[%s3667_s4 + $0x1860] sm:$0xff]  ;;  %v939_v25 = vld [vmem:[%s3667_s4 + $0x1868] sm:$0xff] }
 0x1c0   : > { %v940_v26 = vld [vmem:[%s3667_s4 + $0x1870] sm:$0xff]  ;;  %2980 = vst [vmem:[%s3682_s18 + $0x1830] sm:$0xff] %v1956_v15  ;;  %2981 = vst [vmem:[%s3682_s18 + $0x1838] sm:$0xff] %v1957_v16  ;;  %v1962_v27 = vmul.f32 0.03125, %v938_v24  ;;  %v1963_v28 = vmul.f32 0.03125, %v939_v25  ;;  %v941_v30 = vld [vmem:[%s3667_s4 + $0x1878] sm:$0xff] }
 0x1c1   : > { %2982 = vst [vmem:[%s3682_s18 + $0x1840] sm:$0xff] %v1958_v17  ;;  %v1964_v29 = vmul.f32 0.03125, %v940_v26  ;;  %v942_v31 = vld [vmem:[%s3667_s4 + $0x1880] sm:$0xff]  ;;  %v943_v32 = vld [vmem:[%s3667_s4 + $0x1888] sm:$0xff]  ;;  %2983 = vst [vmem:[%s3682_s18 + $0x1848] sm:$0xff] %v1959_v21  ;;  %v1965_v33 = vmul.f32 0.03125, %v941_v30 }
 0x1c2   : > { %2984 = vst [vmem:[%s3682_s18 + $0x1850] sm:$0xff] %v1960_v22  ;;  %2985 = vst [vmem:[%s3682_s18 + $0x1858] sm:$0xff] %v1961_v23  ;;  %v1966_v34 = vmul.f32 0.03125, %v942_v31  ;;  %v1967_v35 = vmul.f32 0.03125, %v943_v32  ;;  %v944_v36 = vld [vmem:[%s3667_s4 + $0x1890] sm:$0xff]  ;;  %v945_v37 = vld [vmem:[%s3667_s4 + $0x1898] sm:$0xff] }
 0x1c3   : > { %v946_v38 = vld [vmem:[%s3667_s4 + $0x18a0] sm:$0xff]  ;;  %2986 = vst [vmem:[%s3682_s18 + $0x1860] sm:$0xff] %v1962_v27  ;;  %2987 = vst [vmem:[%s3682_s18 + $0x1868] sm:$0xff] %v1963_v28  ;;  %v1968_v39 = vmul.f32 0.03125, %v944_v36  ;;  %v1969_v40 = vmul.f32 0.03125, %v945_v37  ;;  %v947_v42 = vld [vmem:[%s3667_s4 + $0x18a8] sm:$0xff] }
 0x1c4   : > { %2988 = vst [vmem:[%s3682_s18 + $0x1870] sm:$0xff] %v1964_v29  ;;  %v1970_v41 = vmul.f32 0.03125, %v946_v38  ;;  %v948_v43 = vld [vmem:[%s3667_s4 + $0x18b0] sm:$0xff]  ;;  %v949_v44 = vld [vmem:[%s3667_s4 + $0x18b8] sm:$0xff]  ;;  %2989 = vst [vmem:[%s3682_s18 + $0x1878] sm:$0xff] %v1965_v33  ;;  %v1971_v45 = vmul.f32 0.03125, %v947_v42 }
 0x1c5   : > { %2990 = vst [vmem:[%s3682_s18 + $0x1880] sm:$0xff] %v1966_v34  ;;  %2991 = vst [vmem:[%s3682_s18 + $0x1888] sm:$0xff] %v1967_v35  ;;  %v1972_v46 = vmul.f32 0.03125, %v948_v43  ;;  %v1973_v47 = vmul.f32 0.03125, %v949_v44  ;;  %v950_v48 = vld [vmem:[%s3667_s4 + $0x18c0] sm:$0xff]  ;;  %v951_v49 = vld [vmem:[%s3667_s4 + $0x18c8] sm:$0xff] }
 0x1c6   : > { %v952_v50 = vld [vmem:[%s3667_s4 + $0x18d0] sm:$0xff]  ;;  %2992 = vst [vmem:[%s3682_s18 + $0x1890] sm:$0xff] %v1968_v39  ;;  %2993 = vst [vmem:[%s3682_s18 + $0x1898] sm:$0xff] %v1969_v40  ;;  %v1974_v51 = vmul.f32 0.03125, %v950_v48  ;;  %v1975_v52 = vmul.f32 0.03125, %v951_v49  ;;  %v953_v54 = vld [vmem:[%s3667_s4 + $0x18d8] sm:$0xff] }
 0x1c7   : > { %2994 = vst [vmem:[%s3682_s18 + $0x18a0] sm:$0xff] %v1970_v41  ;;  %v1976_v53 = vmul.f32 0.03125, %v952_v50  ;;  %v954_v55 = vld [vmem:[%s3667_s4 + $0x18e0] sm:$0xff]  ;;  %v955_v56 = vld [vmem:[%s3667_s4 + $0x18e8] sm:$0xff]  ;;  %2995 = vst [vmem:[%s3682_s18 + $0x18a8] sm:$0xff] %v1971_v45  ;;  %v1977_v57 = vmul.f32 0.03125, %v953_v54 }
 0x1c8   : > { %2996 = vst [vmem:[%s3682_s18 + $0x18b0] sm:$0xff] %v1972_v46  ;;  %2997 = vst [vmem:[%s3682_s18 + $0x18b8] sm:$0xff] %v1973_v47  ;;  %v1978_v58 = vmul.f32 0.03125, %v954_v55  ;;  %v1979_v59 = vmul.f32 0.03125, %v955_v56  ;;  %v956_v60 = vld [vmem:[%s3667_s4 + $0x18f0] sm:$0xff]  ;;  %v957_v61 = vld [vmem:[%s3667_s4 + $0x18f8] sm:$0xff] }
 0x1c9   : > { %v958_v62 = vld [vmem:[%s3667_s4 + $0x1900] sm:$0xff]  ;;  %2998 = vst [vmem:[%s3682_s18 + $0x18c0] sm:$0xff] %v1974_v51  ;;  %2999 = vst [vmem:[%s3682_s18 + $0x18c8] sm:$0xff] %v1975_v52  ;;  %v1980_v63 = vmul.f32 0.03125, %v956_v60  ;;  %v1981_v0 = vmul.f32 0.03125, %v957_v61  ;;  %v959_v2 = vld [vmem:[%s3667_s4 + $0x1908] sm:$0xff] }
 0x1ca   : > { %3000 = vst [vmem:[%s3682_s18 + $0x18d0] sm:$0xff] %v1976_v53  ;;  %v1982_v1 = vmul.f32 0.03125, %v958_v62  ;;  %v960_v3 = vld [vmem:[%s3667_s4 + $0x1910] sm:$0xff]  ;;  %v961_v4 = vld [vmem:[%s3667_s4 + $0x1918] sm:$0xff]  ;;  %3001 = vst [vmem:[%s3682_s18 + $0x18d8] sm:$0xff] %v1977_v57  ;;  %v1983_v5 = vmul.f32 0.03125, %v959_v2 }
 0x1cb   : > { %3002 = vst [vmem:[%s3682_s18 + $0x18e0] sm:$0xff] %v1978_v58  ;;  %3003 = vst [vmem:[%s3682_s18 + $0x18e8] sm:$0xff] %v1979_v59  ;;  %v1984_v6 = vmul.f32 0.03125, %v960_v3  ;;  %v1985_v7 = vmul.f32 0.03125, %v961_v4  ;;  %v962_v8 = vld [vmem:[%s3667_s4 + $0x1920] sm:$0xff]  ;;  %v963_v9 = vld [vmem:[%s3667_s4 + $0x1928] sm:$0xff] }
 0x1cc   : > { %v964_v10 = vld [vmem:[%s3667_s4 + $0x1930] sm:$0xff]  ;;  %3004 = vst [vmem:[%s3682_s18 + $0x18f0] sm:$0xff] %v1980_v63  ;;  %3005 = vst [vmem:[%s3682_s18 + $0x18f8] sm:$0xff] %v1981_v0  ;;  %v1986_v11 = vmul.f32 0.03125, %v962_v8  ;;  %v1987_v12 = vmul.f32 0.03125, %v963_v9  ;;  %v965_v14 = vld [vmem:[%s3667_s4 + $0x1938] sm:$0xff] }
 0x1cd   : > { %3006 = vst [vmem:[%s3682_s18 + $0x1900] sm:$0xff] %v1982_v1  ;;  %v1988_v13 = vmul.f32 0.03125, %v964_v10  ;;  %v966_v15 = vld [vmem:[%s3667_s4 + $0x1940] sm:$0xff]  ;;  %v967_v16 = vld [vmem:[%s3667_s4 + $0x1948] sm:$0xff]  ;;  %3007 = vst [vmem:[%s3682_s18 + $0x1908] sm:$0xff] %v1983_v5  ;;  %v1989_v17 = vmul.f32 0.03125, %v965_v14 }
 0x1ce   : > { %3008 = vst [vmem:[%s3682_s18 + $0x1910] sm:$0xff] %v1984_v6  ;;  %3009 = vst [vmem:[%s3682_s18 + $0x1918] sm:$0xff] %v1985_v7  ;;  %v1990_v18 = vmul.f32 0.03125, %v966_v15  ;;  %v1991_v19 = vmul.f32 0.03125, %v967_v16  ;;  %v968_v20 = vld [vmem:[%s3667_s4 + $0x1950] sm:$0xff]  ;;  %v969_v21 = vld [vmem:[%s3667_s4 + $0x1958] sm:$0xff] }
 0x1cf   : > { %v970_v22 = vld [vmem:[%s3667_s4 + $0x1960] sm:$0xff]  ;;  %3010 = vst [vmem:[%s3682_s18 + $0x1920] sm:$0xff] %v1986_v11  ;;  %3011 = vst [vmem:[%s3682_s18 + $0x1928] sm:$0xff] %v1987_v12  ;;  %v1992_v23 = vmul.f32 0.03125, %v968_v20  ;;  %v1993_v24 = vmul.f32 0.03125, %v969_v21  ;;  %v971_v26 = vld [vmem:[%s3667_s4 + $0x1968] sm:$0xff] }
 0x1d0   : > { %3012 = vst [vmem:[%s3682_s18 + $0x1930] sm:$0xff] %v1988_v13  ;;  %v1994_v25 = vmul.f32 0.03125, %v970_v22  ;;  %v972_v27 = vld [vmem:[%s3667_s4 + $0x1970] sm:$0xff]  ;;  %v973_v28 = vld [vmem:[%s3667_s4 + $0x1978] sm:$0xff]  ;;  %3013 = vst [vmem:[%s3682_s18 + $0x1938] sm:$0xff] %v1989_v17  ;;  %v1995_v29 = vmul.f32 0.03125, %v971_v26 }
 0x1d1   : > { %3014 = vst [vmem:[%s3682_s18 + $0x1940] sm:$0xff] %v1990_v18  ;;  %3015 = vst [vmem:[%s3682_s18 + $0x1948] sm:$0xff] %v1991_v19  ;;  %v1996_v30 = vmul.f32 0.03125, %v972_v27  ;;  %v1997_v31 = vmul.f32 0.03125, %v973_v28  ;;  %v974_v32 = vld [vmem:[%s3667_s4 + $0x1980] sm:$0xff]  ;;  %v975_v33 = vld [vmem:[%s3667_s4 + $0x1988] sm:$0xff] }
 0x1d2   : > { %v976_v34 = vld [vmem:[%s3667_s4 + $0x1990] sm:$0xff]  ;;  %3016 = vst [vmem:[%s3682_s18 + $0x1950] sm:$0xff] %v1992_v23  ;;  %3017 = vst [vmem:[%s3682_s18 + $0x1958] sm:$0xff] %v1993_v24  ;;  %v1998_v35 = vmul.f32 0.03125, %v974_v32  ;;  %v1999_v36 = vmul.f32 0.03125, %v975_v33  ;;  %v977_v38 = vld [vmem:[%s3667_s4 + $0x1998] sm:$0xff] }
 0x1d3   : > { %3018 = vst [vmem:[%s3682_s18 + $0x1960] sm:$0xff] %v1994_v25  ;;  %v2000_v37 = vmul.f32 0.03125, %v976_v34  ;;  %v978_v39 = vld [vmem:[%s3667_s4 + $0x19a0] sm:$0xff]  ;;  %v979_v40 = vld [vmem:[%s3667_s4 + $0x19a8] sm:$0xff]  ;;  %3019 = vst [vmem:[%s3682_s18 + $0x1968] sm:$0xff] %v1995_v29  ;;  %v2001_v41 = vmul.f32 0.03125, %v977_v38 }
 0x1d4   : > { %3020 = vst [vmem:[%s3682_s18 + $0x1970] sm:$0xff] %v1996_v30  ;;  %3021 = vst [vmem:[%s3682_s18 + $0x1978] sm:$0xff] %v1997_v31  ;;  %v2002_v42 = vmul.f32 0.03125, %v978_v39  ;;  %v2003_v43 = vmul.f32 0.03125, %v979_v40  ;;  %v980_v44 = vld [vmem:[%s3667_s4 + $0x19b0] sm:$0xff]  ;;  %v981_v45 = vld [vmem:[%s3667_s4 + $0x19b8] sm:$0xff] }
 0x1d5   : > { %v982_v46 = vld [vmem:[%s3667_s4 + $0x19c0] sm:$0xff]  ;;  %3022 = vst [vmem:[%s3682_s18 + $0x1980] sm:$0xff] %v1998_v35  ;;  %3023 = vst [vmem:[%s3682_s18 + $0x1988] sm:$0xff] %v1999_v36  ;;  %v2004_v47 = vmul.f32 0.03125, %v980_v44  ;;  %v2005_v48 = vmul.f32 0.03125, %v981_v45  ;;  %v983_v50 = vld [vmem:[%s3667_s4 + $0x19c8] sm:$0xff] }
 0x1d6   : > { %3024 = vst [vmem:[%s3682_s18 + $0x1990] sm:$0xff] %v2000_v37  ;;  %v2006_v49 = vmul.f32 0.03125, %v982_v46  ;;  %v984_v51 = vld [vmem:[%s3667_s4 + $0x19d0] sm:$0xff]  ;;  %v985_v52 = vld [vmem:[%s3667_s4 + $0x19d8] sm:$0xff]  ;;  %3025 = vst [vmem:[%s3682_s18 + $0x1998] sm:$0xff] %v2001_v41  ;;  %v2007_v53 = vmul.f32 0.03125, %v983_v50 }
 0x1d7   : > { %3026 = vst [vmem:[%s3682_s18 + $0x19a0] sm:$0xff] %v2002_v42  ;;  %3027 = vst [vmem:[%s3682_s18 + $0x19a8] sm:$0xff] %v2003_v43  ;;  %v2008_v54 = vmul.f32 0.03125, %v984_v51  ;;  %v2009_v55 = vmul.f32 0.03125, %v985_v52  ;;  %v986_v56 = vld [vmem:[%s3667_s4 + $0x19e0] sm:$0xff]  ;;  %v987_v57 = vld [vmem:[%s3667_s4 + $0x19e8] sm:$0xff] }
 0x1d8   : > { %v988_v58 = vld [vmem:[%s3667_s4 + $0x19f0] sm:$0xff]  ;;  %3028 = vst [vmem:[%s3682_s18 + $0x19b0] sm:$0xff] %v2004_v47  ;;  %3029 = vst [vmem:[%s3682_s18 + $0x19b8] sm:$0xff] %v2005_v48  ;;  %v2010_v59 = vmul.f32 0.03125, %v986_v56  ;;  %v2011_v60 = vmul.f32 0.03125, %v987_v57  ;;  %v989_v62 = vld [vmem:[%s3667_s4 + $0x19f8] sm:$0xff] }
 0x1d9   : > { %3030 = vst [vmem:[%s3682_s18 + $0x19c0] sm:$0xff] %v2006_v49  ;;  %v2012_v61 = vmul.f32 0.03125, %v988_v58  ;;  %v990_v63 = vld [vmem:[%s3667_s4 + $0x1a00] sm:$0xff]  ;;  %v991_v0 = vld [vmem:[%s3667_s4 + $0x1a08] sm:$0xff]  ;;  %3031 = vst [vmem:[%s3682_s18 + $0x19c8] sm:$0xff] %v2007_v53  ;;  %v2013_v1 = vmul.f32 0.03125, %v989_v62 }
 0x1da   : > { %3032 = vst [vmem:[%s3682_s18 + $0x19d0] sm:$0xff] %v2008_v54  ;;  %3033 = vst [vmem:[%s3682_s18 + $0x19d8] sm:$0xff] %v2009_v55  ;;  %v2014_v2 = vmul.f32 0.03125, %v990_v63  ;;  %v2015_v3 = vmul.f32 0.03125, %v991_v0  ;;  %v992_v4 = vld [vmem:[%s3667_s4 + $0x1a10] sm:$0xff]  ;;  %v993_v5 = vld [vmem:[%s3667_s4 + $0x1a18] sm:$0xff] }
 0x1db   : > { %v994_v6 = vld [vmem:[%s3667_s4 + $0x1a20] sm:$0xff]  ;;  %3034 = vst [vmem:[%s3682_s18 + $0x19e0] sm:$0xff] %v2010_v59  ;;  %3035 = vst [vmem:[%s3682_s18 + $0x19e8] sm:$0xff] %v2011_v60  ;;  %v2016_v7 = vmul.f32 0.03125, %v992_v4  ;;  %v2017_v8 = vmul.f32 0.03125, %v993_v5  ;;  %v995_v10 = vld [vmem:[%s3667_s4 + $0x1a28] sm:$0xff] }
 0x1dc   : > { %3036 = vst [vmem:[%s3682_s18 + $0x19f0] sm:$0xff] %v2012_v61  ;;  %v2018_v9 = vmul.f32 0.03125, %v994_v6  ;;  %v996_v11 = vld [vmem:[%s3667_s4 + $0x1a30] sm:$0xff]  ;;  %v997_v12 = vld [vmem:[%s3667_s4 + $0x1a38] sm:$0xff]  ;;  %3037 = vst [vmem:[%s3682_s18 + $0x19f8] sm:$0xff] %v2013_v1  ;;  %v2019_v13 = vmul.f32 0.03125, %v995_v10 }
 0x1dd   : > { %3038 = vst [vmem:[%s3682_s18 + $0x1a00] sm:$0xff] %v2014_v2  ;;  %3039 = vst [vmem:[%s3682_s18 + $0x1a08] sm:$0xff] %v2015_v3  ;;  %v2020_v14 = vmul.f32 0.03125, %v996_v11  ;;  %v2021_v15 = vmul.f32 0.03125, %v997_v12  ;;  %v998_v16 = vld [vmem:[%s3667_s4 + $0x1a40] sm:$0xff]  ;;  %v999_v17 = vld [vmem:[%s3667_s4 + $0x1a48] sm:$0xff] }
 0x1de   : > { %v1000_v18 = vld [vmem:[%s3667_s4 + $0x1a50] sm:$0xff]  ;;  %3040 = vst [vmem:[%s3682_s18 + $0x1a10] sm:$0xff] %v2016_v7  ;;  %3041 = vst [vmem:[%s3682_s18 + $0x1a18] sm:$0xff] %v2017_v8  ;;  %v2022_v19 = vmul.f32 0.03125, %v998_v16  ;;  %v2023_v20 = vmul.f32 0.03125, %v999_v17  ;;  %v1001_v22 = vld [vmem:[%s3667_s4 + $0x1a58] sm:$0xff] }
 0x1df   : > { %3042 = vst [vmem:[%s3682_s18 + $0x1a20] sm:$0xff] %v2018_v9  ;;  %v2024_v21 = vmul.f32 0.03125, %v1000_v18  ;;  %v1002_v23 = vld [vmem:[%s3667_s4 + $0x1a60] sm:$0xff]  ;;  %v1003_v24 = vld [vmem:[%s3667_s4 + $0x1a68] sm:$0xff]  ;;  %3043 = vst [vmem:[%s3682_s18 + $0x1a28] sm:$0xff] %v2019_v13  ;;  %v2025_v25 = vmul.f32 0.03125, %v1001_v22 }
 0x1e0   : > { %3044 = vst [vmem:[%s3682_s18 + $0x1a30] sm:$0xff] %v2020_v14  ;;  %3045 = vst [vmem:[%s3682_s18 + $0x1a38] sm:$0xff] %v2021_v15  ;;  %v2026_v26 = vmul.f32 0.03125, %v1002_v23  ;;  %v2027_v27 = vmul.f32 0.03125, %v1003_v24  ;;  %v1004_v28 = vld [vmem:[%s3667_s4 + $0x1a70] sm:$0xff]  ;;  %v1005_v29 = vld [vmem:[%s3667_s4 + $0x1a78] sm:$0xff] }
 0x1e1   : > { %v1006_v30 = vld [vmem:[%s3667_s4 + $0x1a80] sm:$0xff]  ;;  %3046 = vst [vmem:[%s3682_s18 + $0x1a40] sm:$0xff] %v2022_v19  ;;  %3047 = vst [vmem:[%s3682_s18 + $0x1a48] sm:$0xff] %v2023_v20  ;;  %v2028_v31 = vmul.f32 0.03125, %v1004_v28  ;;  %v2029_v32 = vmul.f32 0.03125, %v1005_v29  ;;  %v1007_v34 = vld [vmem:[%s3667_s4 + $0x1a88] sm:$0xff] }
 0x1e2   : > { %3048 = vst [vmem:[%s3682_s18 + $0x1a50] sm:$0xff] %v2024_v21  ;;  %v2030_v33 = vmul.f32 0.03125, %v1006_v30  ;;  %v1008_v35 = vld [vmem:[%s3667_s4 + $0x1a90] sm:$0xff]  ;;  %v1009_v36 = vld [vmem:[%s3667_s4 + $0x1a98] sm:$0xff]  ;;  %3049 = vst [vmem:[%s3682_s18 + $0x1a58] sm:$0xff] %v2025_v25  ;;  %v2031_v37 = vmul.f32 0.03125, %v1007_v34 }
 0x1e3   : > { %3050 = vst [vmem:[%s3682_s18 + $0x1a60] sm:$0xff] %v2026_v26  ;;  %3051 = vst [vmem:[%s3682_s18 + $0x1a68] sm:$0xff] %v2027_v27  ;;  %v2032_v38 = vmul.f32 0.03125, %v1008_v35  ;;  %v2033_v39 = vmul.f32 0.03125, %v1009_v36  ;;  %v1010_v40 = vld [vmem:[%s3667_s4 + $0x1aa0] sm:$0xff]  ;;  %v1011_v41 = vld [vmem:[%s3667_s4 + $0x1aa8] sm:$0xff] }
 0x1e4   : > { %v1012_v42 = vld [vmem:[%s3667_s4 + $0x1ab0] sm:$0xff]  ;;  %3052 = vst [vmem:[%s3682_s18 + $0x1a70] sm:$0xff] %v2028_v31  ;;  %3053 = vst [vmem:[%s3682_s18 + $0x1a78] sm:$0xff] %v2029_v32  ;;  %v2034_v43 = vmul.f32 0.03125, %v1010_v40  ;;  %v2035_v44 = vmul.f32 0.03125, %v1011_v41  ;;  %v1013_v46 = vld [vmem:[%s3667_s4 + $0x1ab8] sm:$0xff] }
 0x1e5   : > { %3054 = vst [vmem:[%s3682_s18 + $0x1a80] sm:$0xff] %v2030_v33  ;;  %v2036_v45 = vmul.f32 0.03125, %v1012_v42  ;;  %v1014_v47 = vld [vmem:[%s3667_s4 + $0x1ac0] sm:$0xff]  ;;  %v1015_v48 = vld [vmem:[%s3667_s4 + $0x1ac8] sm:$0xff]  ;;  %3055 = vst [vmem:[%s3682_s18 + $0x1a88] sm:$0xff] %v2031_v37  ;;  %v2037_v49 = vmul.f32 0.03125, %v1013_v46 }
 0x1e6   : > { %3056 = vst [vmem:[%s3682_s18 + $0x1a90] sm:$0xff] %v2032_v38  ;;  %3057 = vst [vmem:[%s3682_s18 + $0x1a98] sm:$0xff] %v2033_v39  ;;  %v2038_v50 = vmul.f32 0.03125, %v1014_v47  ;;  %v2039_v51 = vmul.f32 0.03125, %v1015_v48  ;;  %v1016_v52 = vld [vmem:[%s3667_s4 + $0x1ad0] sm:$0xff]  ;;  %v1017_v53 = vld [vmem:[%s3667_s4 + $0x1ad8] sm:$0xff] }
 0x1e7   : > { %v1018_v54 = vld [vmem:[%s3667_s4 + $0x1ae0] sm:$0xff]  ;;  %3058 = vst [vmem:[%s3682_s18 + $0x1aa0] sm:$0xff] %v2034_v43  ;;  %3059 = vst [vmem:[%s3682_s18 + $0x1aa8] sm:$0xff] %v2035_v44  ;;  %v2040_v55 = vmul.f32 0.03125, %v1016_v52  ;;  %v2041_v56 = vmul.f32 0.03125, %v1017_v53  ;;  %v1019_v58 = vld [vmem:[%s3667_s4 + $0x1ae8] sm:$0xff] }
 0x1e8   : > { %3060 = vst [vmem:[%s3682_s18 + $0x1ab0] sm:$0xff] %v2036_v45  ;;  %v2042_v57 = vmul.f32 0.03125, %v1018_v54  ;;  %v1020_v59 = vld [vmem:[%s3667_s4 + $0x1af0] sm:$0xff]  ;;  %v1021_v60 = vld [vmem:[%s3667_s4 + $0x1af8] sm:$0xff]  ;;  %3061 = vst [vmem:[%s3682_s18 + $0x1ab8] sm:$0xff] %v2037_v49  ;;  %v2043_v61 = vmul.f32 0.03125, %v1019_v58 }
 0x1e9   : > { %3062 = vst [vmem:[%s3682_s18 + $0x1ac0] sm:$0xff] %v2038_v50  ;;  %3063 = vst [vmem:[%s3682_s18 + $0x1ac8] sm:$0xff] %v2039_v51  ;;  %v2044_v62 = vmul.f32 0.03125, %v1020_v59  ;;  %v2045_v63 = vmul.f32 0.03125, %v1021_v60  ;;  %v1022_v0 = vld [vmem:[%s3667_s4 + $0x1b00] sm:$0xff]  ;;  %v1023_v1 = vld [vmem:[%s3667_s4 + $0x1b08] sm:$0xff] }
 0x1ea   : > { %v1024_v2 = vld [vmem:[%s3667_s4 + $0x1b10] sm:$0xff]  ;;  %3064 = vst [vmem:[%s3682_s18 + $0x1ad0] sm:$0xff] %v2040_v55  ;;  %3065 = vst [vmem:[%s3682_s18 + $0x1ad8] sm:$0xff] %v2041_v56  ;;  %v2046_v3 = vmul.f32 0.03125, %v1022_v0  ;;  %v2047_v4 = vmul.f32 0.03125, %v1023_v1  ;;  %v1025_v6 = vld [vmem:[%s3667_s4 + $0x1b18] sm:$0xff] }
 0x1eb   : > { %3066 = vst [vmem:[%s3682_s18 + $0x1ae0] sm:$0xff] %v2042_v57  ;;  %v2048_v5 = vmul.f32 0.03125, %v1024_v2  ;;  %v1026_v7 = vld [vmem:[%s3667_s4 + $0x1b20] sm:$0xff]  ;;  %v1027_v8 = vld [vmem:[%s3667_s4 + $0x1b28] sm:$0xff]  ;;  %3067 = vst [vmem:[%s3682_s18 + $0x1ae8] sm:$0xff] %v2043_v61  ;;  %v2049_v9 = vmul.f32 0.03125, %v1025_v6 }
 0x1ec   : > { %3068 = vst [vmem:[%s3682_s18 + $0x1af0] sm:$0xff] %v2044_v62  ;;  %3069 = vst [vmem:[%s3682_s18 + $0x1af8] sm:$0xff] %v2045_v63  ;;  %v2050_v10 = vmul.f32 0.03125, %v1026_v7  ;;  %v2051_v11 = vmul.f32 0.03125, %v1027_v8  ;;  %v1028_v12 = vld [vmem:[%s3667_s4 + $0x1b30] sm:$0xff]  ;;  %v1029_v13 = vld [vmem:[%s3667_s4 + $0x1b38] sm:$0xff] }
 0x1ed   : > { %v1030_v14 = vld [vmem:[%s3667_s4 + $0x1b40] sm:$0xff]  ;;  %3070 = vst [vmem:[%s3682_s18 + $0x1b00] sm:$0xff] %v2046_v3  ;;  %3071 = vst [vmem:[%s3682_s18 + $0x1b08] sm:$0xff] %v2047_v4  ;;  %v2052_v15 = vmul.f32 0.03125, %v1028_v12  ;;  %v2053_v16 = vmul.f32 0.03125, %v1029_v13  ;;  %v1031_v18 = vld [vmem:[%s3667_s4 + $0x1b48] sm:$0xff] }
 0x1ee   : > { %3072 = vst [vmem:[%s3682_s18 + $0x1b10] sm:$0xff] %v2048_v5  ;;  %v2054_v17 = vmul.f32 0.03125, %v1030_v14  ;;  %v1032_v19 = vld [vmem:[%s3667_s4 + $0x1b50] sm:$0xff]  ;;  %v1033_v20 = vld [vmem:[%s3667_s4 + $0x1b58] sm:$0xff]  ;;  %3073 = vst [vmem:[%s3682_s18 + $0x1b18] sm:$0xff] %v2049_v9  ;;  %v2055_v21 = vmul.f32 0.03125, %v1031_v18 }
 0x1ef   : > { %3074 = vst [vmem:[%s3682_s18 + $0x1b20] sm:$0xff] %v2050_v10  ;;  %3075 = vst [vmem:[%s3682_s18 + $0x1b28] sm:$0xff] %v2051_v11  ;;  %v2056_v22 = vmul.f32 0.03125, %v1032_v19  ;;  %v2057_v23 = vmul.f32 0.03125, %v1033_v20  ;;  %v1034_v24 = vld [vmem:[%s3667_s4 + $0x1b60] sm:$0xff]  ;;  %v1035_v25 = vld [vmem:[%s3667_s4 + $0x1b68] sm:$0xff] }
 0x1f0   : > { %v1036_v26 = vld [vmem:[%s3667_s4 + $0x1b70] sm:$0xff]  ;;  %3076 = vst [vmem:[%s3682_s18 + $0x1b30] sm:$0xff] %v2052_v15  ;;  %3077 = vst [vmem:[%s3682_s18 + $0x1b38] sm:$0xff] %v2053_v16  ;;  %v2058_v27 = vmul.f32 0.03125, %v1034_v24  ;;  %v2059_v28 = vmul.f32 0.03125, %v1035_v25  ;;  %v1037_v30 = vld [vmem:[%s3667_s4 + $0x1b78] sm:$0xff] }
 0x1f1   : > { %3078 = vst [vmem:[%s3682_s18 + $0x1b40] sm:$0xff] %v2054_v17  ;;  %v2060_v29 = vmul.f32 0.03125, %v1036_v26  ;;  %v1038_v31 = vld [vmem:[%s3667_s4 + $0x1b80] sm:$0xff]  ;;  %v1039_v32 = vld [vmem:[%s3667_s4 + $0x1b88] sm:$0xff]  ;;  %3079 = vst [vmem:[%s3682_s18 + $0x1b48] sm:$0xff] %v2055_v21  ;;  %v2061_v33 = vmul.f32 0.03125, %v1037_v30 }
 0x1f2   : > { %3080 = vst [vmem:[%s3682_s18 + $0x1b50] sm:$0xff] %v2056_v22  ;;  %3081 = vst [vmem:[%s3682_s18 + $0x1b58] sm:$0xff] %v2057_v23  ;;  %v2062_v34 = vmul.f32 0.03125, %v1038_v31  ;;  %v2063_v35 = vmul.f32 0.03125, %v1039_v32  ;;  %v1040_v36 = vld [vmem:[%s3667_s4 + $0x1b90] sm:$0xff]  ;;  %v1041_v37 = vld [vmem:[%s3667_s4 + $0x1b98] sm:$0xff] }
 0x1f3   : > { %v1042_v38 = vld [vmem:[%s3667_s4 + $0x1ba0] sm:$0xff]  ;;  %3082 = vst [vmem:[%s3682_s18 + $0x1b60] sm:$0xff] %v2058_v27  ;;  %3083 = vst [vmem:[%s3682_s18 + $0x1b68] sm:$0xff] %v2059_v28  ;;  %v2064_v39 = vmul.f32 0.03125, %v1040_v36  ;;  %v2065_v40 = vmul.f32 0.03125, %v1041_v37  ;;  %v1043_v42 = vld [vmem:[%s3667_s4 + $0x1ba8] sm:$0xff] }
 0x1f4   : > { %3084 = vst [vmem:[%s3682_s18 + $0x1b70] sm:$0xff] %v2060_v29  ;;  %v2066_v41 = vmul.f32 0.03125, %v1042_v38  ;;  %v1044_v43 = vld [vmem:[%s3667_s4 + $0x1bb0] sm:$0xff]  ;;  %v1045_v44 = vld [vmem:[%s3667_s4 + $0x1bb8] sm:$0xff]  ;;  %3085 = vst [vmem:[%s3682_s18 + $0x1b78] sm:$0xff] %v2061_v33  ;;  %v2067_v45 = vmul.f32 0.03125, %v1043_v42 }
 0x1f5   : > { %3086 = vst [vmem:[%s3682_s18 + $0x1b80] sm:$0xff] %v2062_v34  ;;  %3087 = vst [vmem:[%s3682_s18 + $0x1b88] sm:$0xff] %v2063_v35  ;;  %v2068_v46 = vmul.f32 0.03125, %v1044_v43  ;;  %v2069_v47 = vmul.f32 0.03125, %v1045_v44  ;;  %v1046_v48 = vld [vmem:[%s3667_s4 + $0x1bc0] sm:$0xff]  ;;  %v1047_v49 = vld [vmem:[%s3667_s4 + $0x1bc8] sm:$0xff] }
 0x1f6   : > { %v1048_v50 = vld [vmem:[%s3667_s4 + $0x1bd0] sm:$0xff]  ;;  %3088 = vst [vmem:[%s3682_s18 + $0x1b90] sm:$0xff] %v2064_v39  ;;  %3089 = vst [vmem:[%s3682_s18 + $0x1b98] sm:$0xff] %v2065_v40  ;;  %v2070_v51 = vmul.f32 0.03125, %v1046_v48  ;;  %v2071_v52 = vmul.f32 0.03125, %v1047_v49  ;;  %v1049_v54 = vld [vmem:[%s3667_s4 + $0x1bd8] sm:$0xff] }
 0x1f7   : > { %3090 = vst [vmem:[%s3682_s18 + $0x1ba0] sm:$0xff] %v2066_v41  ;;  %v2072_v53 = vmul.f32 0.03125, %v1048_v50  ;;  %v1050_v55 = vld [vmem:[%s3667_s4 + $0x1be0] sm:$0xff]  ;;  %v1051_v56 = vld [vmem:[%s3667_s4 + $0x1be8] sm:$0xff]  ;;  %3091 = vst [vmem:[%s3682_s18 + $0x1ba8] sm:$0xff] %v2067_v45  ;;  %v2073_v57 = vmul.f32 0.03125, %v1049_v54 }
 0x1f8   : > { %3092 = vst [vmem:[%s3682_s18 + $0x1bb0] sm:$0xff] %v2068_v46  ;;  %3093 = vst [vmem:[%s3682_s18 + $0x1bb8] sm:$0xff] %v2069_v47  ;;  %v2074_v58 = vmul.f32 0.03125, %v1050_v55  ;;  %v2075_v59 = vmul.f32 0.03125, %v1051_v56  ;;  %v1052_v60 = vld [vmem:[%s3667_s4 + $0x1bf0] sm:$0xff]  ;;  %v1053_v61 = vld [vmem:[%s3667_s4 + $0x1bf8] sm:$0xff] }
 0x1f9   : > { %v1054_v62 = vld [vmem:[%s3667_s4 + $0x1c00] sm:$0xff]  ;;  %3094 = vst [vmem:[%s3682_s18 + $0x1bc0] sm:$0xff] %v2070_v51  ;;  %3095 = vst [vmem:[%s3682_s18 + $0x1bc8] sm:$0xff] %v2071_v52  ;;  %v2076_v63 = vmul.f32 0.03125, %v1052_v60  ;;  %v2077_v0 = vmul.f32 0.03125, %v1053_v61  ;;  %v1055_v2 = vld [vmem:[%s3667_s4 + $0x1c08] sm:$0xff] }
 0x1fa   : > { %3096 = vst [vmem:[%s3682_s18 + $0x1bd0] sm:$0xff] %v2072_v53  ;;  %v2078_v1 = vmul.f32 0.03125, %v1054_v62  ;;  %v1056_v3 = vld [vmem:[%s3667_s4 + $0x1c10] sm:$0xff]  ;;  %v1057_v4 = vld [vmem:[%s3667_s4 + $0x1c18] sm:$0xff]  ;;  %3097 = vst [vmem:[%s3682_s18 + $0x1bd8] sm:$0xff] %v2073_v57  ;;  %v2079_v5 = vmul.f32 0.03125, %v1055_v2 }
 0x1fb   : > { %3098 = vst [vmem:[%s3682_s18 + $0x1be0] sm:$0xff] %v2074_v58  ;;  %3099 = vst [vmem:[%s3682_s18 + $0x1be8] sm:$0xff] %v2075_v59  ;;  %v2080_v6 = vmul.f32 0.03125, %v1056_v3  ;;  %v2081_v7 = vmul.f32 0.03125, %v1057_v4  ;;  %v1058_v8 = vld [vmem:[%s3667_s4 + $0x1c20] sm:$0xff]  ;;  %v1059_v9 = vld [vmem:[%s3667_s4 + $0x1c28] sm:$0xff] }
 0x1fc   : > { %v1060_v10 = vld [vmem:[%s3667_s4 + $0x1c30] sm:$0xff]  ;;  %3100 = vst [vmem:[%s3682_s18 + $0x1bf0] sm:$0xff] %v2076_v63  ;;  %3101 = vst [vmem:[%s3682_s18 + $0x1bf8] sm:$0xff] %v2077_v0  ;;  %v2082_v11 = vmul.f32 0.03125, %v1058_v8  ;;  %v2083_v12 = vmul.f32 0.03125, %v1059_v9  ;;  %v1061_v14 = vld [vmem:[%s3667_s4 + $0x1c38] sm:$0xff] }
 0x1fd   : > { %3102 = vst [vmem:[%s3682_s18 + $0x1c00] sm:$0xff] %v2078_v1  ;;  %v2084_v13 = vmul.f32 0.03125, %v1060_v10  ;;  %v1062_v15 = vld [vmem:[%s3667_s4 + $0x1c40] sm:$0xff]  ;;  %v1063_v16 = vld [vmem:[%s3667_s4 + $0x1c48] sm:$0xff]  ;;  %3103 = vst [vmem:[%s3682_s18 + $0x1c08] sm:$0xff] %v2079_v5  ;;  %v2085_v17 = vmul.f32 0.03125, %v1061_v14 }
 0x1fe   : > { %3104 = vst [vmem:[%s3682_s18 + $0x1c10] sm:$0xff] %v2080_v6  ;;  %3105 = vst [vmem:[%s3682_s18 + $0x1c18] sm:$0xff] %v2081_v7  ;;  %v2086_v18 = vmul.f32 0.03125, %v1062_v15  ;;  %v2087_v19 = vmul.f32 0.03125, %v1063_v16  ;;  %v1064_v20 = vld [vmem:[%s3667_s4 + $0x1c50] sm:$0xff]  ;;  %v1065_v21 = vld [vmem:[%s3667_s4 + $0x1c58] sm:$0xff] }
 0x1ff   : > { %v1066_v22 = vld [vmem:[%s3667_s4 + $0x1c60] sm:$0xff]  ;;  %3106 = vst [vmem:[%s3682_s18 + $0x1c20] sm:$0xff] %v2082_v11  ;;  %3107 = vst [vmem:[%s3682_s18 + $0x1c28] sm:$0xff] %v2083_v12  ;;  %v2088_v23 = vmul.f32 0.03125, %v1064_v20  ;;  %v2089_v24 = vmul.f32 0.03125, %v1065_v21  ;;  %v1067_v26 = vld [vmem:[%s3667_s4 + $0x1c68] sm:$0xff] }
 0x200   : > { %3108 = vst [vmem:[%s3682_s18 + $0x1c30] sm:$0xff] %v2084_v13  ;;  %v2090_v25 = vmul.f32 0.03125, %v1066_v22  ;;  %v1068_v27 = vld [vmem:[%s3667_s4 + $0x1c70] sm:$0xff]  ;;  %v1069_v28 = vld [vmem:[%s3667_s4 + $0x1c78] sm:$0xff]  ;;  %3109 = vst [vmem:[%s3682_s18 + $0x1c38] sm:$0xff] %v2085_v17  ;;  %v2091_v29 = vmul.f32 0.03125, %v1067_v26 }
 0x201   : > { %3110 = vst [vmem:[%s3682_s18 + $0x1c40] sm:$0xff] %v2086_v18  ;;  %3111 = vst [vmem:[%s3682_s18 + $0x1c48] sm:$0xff] %v2087_v19  ;;  %v2092_v30 = vmul.f32 0.03125, %v1068_v27  ;;  %v2093_v31 = vmul.f32 0.03125, %v1069_v28  ;;  %v1070_v32 = vld [vmem:[%s3667_s4 + $0x1c80] sm:$0xff]  ;;  %v1071_v33 = vld [vmem:[%s3667_s4 + $0x1c88] sm:$0xff] }
 0x202   : > { %v1072_v34 = vld [vmem:[%s3667_s4 + $0x1c90] sm:$0xff]  ;;  %3112 = vst [vmem:[%s3682_s18 + $0x1c50] sm:$0xff] %v2088_v23  ;;  %3113 = vst [vmem:[%s3682_s18 + $0x1c58] sm:$0xff] %v2089_v24  ;;  %v2094_v35 = vmul.f32 0.03125, %v1070_v32  ;;  %v2095_v36 = vmul.f32 0.03125, %v1071_v33  ;;  %v1073_v38 = vld [vmem:[%s3667_s4 + $0x1c98] sm:$0xff] }
 0x203   : > { %3114 = vst [vmem:[%s3682_s18 + $0x1c60] sm:$0xff] %v2090_v25  ;;  %v2096_v37 = vmul.f32 0.03125, %v1072_v34  ;;  %v1074_v39 = vld [vmem:[%s3667_s4 + $0x1ca0] sm:$0xff]  ;;  %v1075_v40 = vld [vmem:[%s3667_s4 + $0x1ca8] sm:$0xff]  ;;  %3115 = vst [vmem:[%s3682_s18 + $0x1c68] sm:$0xff] %v2091_v29  ;;  %v2097_v41 = vmul.f32 0.03125, %v1073_v38 }
 0x204   : > { %3116 = vst [vmem:[%s3682_s18 + $0x1c70] sm:$0xff] %v2092_v30  ;;  %3117 = vst [vmem:[%s3682_s18 + $0x1c78] sm:$0xff] %v2093_v31  ;;  %v2098_v42 = vmul.f32 0.03125, %v1074_v39  ;;  %v2099_v43 = vmul.f32 0.03125, %v1075_v40  ;;  %v1076_v44 = vld [vmem:[%s3667_s4 + $0x1cb0] sm:$0xff]  ;;  %v1077_v45 = vld [vmem:[%s3667_s4 + $0x1cb8] sm:$0xff] }
 0x205   : > { %v1078_v46 = vld [vmem:[%s3667_s4 + $0x1cc0] sm:$0xff]  ;;  %3118 = vst [vmem:[%s3682_s18 + $0x1c80] sm:$0xff] %v2094_v35  ;;  %3119 = vst [vmem:[%s3682_s18 + $0x1c88] sm:$0xff] %v2095_v36  ;;  %v2100_v47 = vmul.f32 0.03125, %v1076_v44  ;;  %v2101_v48 = vmul.f32 0.03125, %v1077_v45  ;;  %v1079_v50 = vld [vmem:[%s3667_s4 + $0x1cc8] sm:$0xff] }
 0x206   : > { %3120 = vst [vmem:[%s3682_s18 + $0x1c90] sm:$0xff] %v2096_v37  ;;  %v2102_v49 = vmul.f32 0.03125, %v1078_v46  ;;  %v1080_v51 = vld [vmem:[%s3667_s4 + $0x1cd0] sm:$0xff]  ;;  %v1081_v52 = vld [vmem:[%s3667_s4 + $0x1cd8] sm:$0xff]  ;;  %3121 = vst [vmem:[%s3682_s18 + $0x1c98] sm:$0xff] %v2097_v41  ;;  %v2103_v53 = vmul.f32 0.03125, %v1079_v50 }
 0x207   : > { %3122 = vst [vmem:[%s3682_s18 + $0x1ca0] sm:$0xff] %v2098_v42  ;;  %3123 = vst [vmem:[%s3682_s18 + $0x1ca8] sm:$0xff] %v2099_v43  ;;  %v2104_v54 = vmul.f32 0.03125, %v1080_v51  ;;  %v2105_v55 = vmul.f32 0.03125, %v1081_v52  ;;  %v1082_v56 = vld [vmem:[%s3667_s4 + $0x1ce0] sm:$0xff]  ;;  %v1083_v57 = vld [vmem:[%s3667_s4 + $0x1ce8] sm:$0xff] }
 0x208   : > { %v1084_v58 = vld [vmem:[%s3667_s4 + $0x1cf0] sm:$0xff]  ;;  %3124 = vst [vmem:[%s3682_s18 + $0x1cb0] sm:$0xff] %v2100_v47  ;;  %3125 = vst [vmem:[%s3682_s18 + $0x1cb8] sm:$0xff] %v2101_v48  ;;  %v2106_v59 = vmul.f32 0.03125, %v1082_v56  ;;  %v2107_v60 = vmul.f32 0.03125, %v1083_v57  ;;  %v1085_v62 = vld [vmem:[%s3667_s4 + $0x1cf8] sm:$0xff] }
 0x209   : > { %3126 = vst [vmem:[%s3682_s18 + $0x1cc0] sm:$0xff] %v2102_v49  ;;  %v2108_v61 = vmul.f32 0.03125, %v1084_v58  ;;  %v1086_v63 = vld [vmem:[%s3667_s4 + $0x1d00] sm:$0xff]  ;;  %v1087_v0 = vld [vmem:[%s3667_s4 + $0x1d08] sm:$0xff]  ;;  %3127 = vst [vmem:[%s3682_s18 + $0x1cc8] sm:$0xff] %v2103_v53  ;;  %v2109_v1 = vmul.f32 0.03125, %v1085_v62 }
 0x20a   : > { %3128 = vst [vmem:[%s3682_s18 + $0x1cd0] sm:$0xff] %v2104_v54  ;;  %3129 = vst [vmem:[%s3682_s18 + $0x1cd8] sm:$0xff] %v2105_v55  ;;  %v2110_v2 = vmul.f32 0.03125, %v1086_v63  ;;  %v2111_v3 = vmul.f32 0.03125, %v1087_v0  ;;  %v1088_v4 = vld [vmem:[%s3667_s4 + $0x1d10] sm:$0xff]  ;;  %v1089_v5 = vld [vmem:[%s3667_s4 + $0x1d18] sm:$0xff] }
 0x20b   : > { %v1090_v6 = vld [vmem:[%s3667_s4 + $0x1d20] sm:$0xff]  ;;  %3130 = vst [vmem:[%s3682_s18 + $0x1ce0] sm:$0xff] %v2106_v59  ;;  %3131 = vst [vmem:[%s3682_s18 + $0x1ce8] sm:$0xff] %v2107_v60  ;;  %v2112_v7 = vmul.f32 0.03125, %v1088_v4  ;;  %v2113_v8 = vmul.f32 0.03125, %v1089_v5  ;;  %v1091_v10 = vld [vmem:[%s3667_s4 + $0x1d28] sm:$0xff] }
 0x20c   : > { %3132 = vst [vmem:[%s3682_s18 + $0x1cf0] sm:$0xff] %v2108_v61  ;;  %v2114_v9 = vmul.f32 0.03125, %v1090_v6  ;;  %v1092_v11 = vld [vmem:[%s3667_s4 + $0x1d30] sm:$0xff]  ;;  %v1093_v12 = vld [vmem:[%s3667_s4 + $0x1d38] sm:$0xff]  ;;  %3133 = vst [vmem:[%s3682_s18 + $0x1cf8] sm:$0xff] %v2109_v1  ;;  %v2115_v13 = vmul.f32 0.03125, %v1091_v10 }
 0x20d   : > { %3134 = vst [vmem:[%s3682_s18 + $0x1d00] sm:$0xff] %v2110_v2  ;;  %3135 = vst [vmem:[%s3682_s18 + $0x1d08] sm:$0xff] %v2111_v3  ;;  %v2116_v14 = vmul.f32 0.03125, %v1092_v11  ;;  %v2117_v15 = vmul.f32 0.03125, %v1093_v12  ;;  %v1094_v16 = vld [vmem:[%s3667_s4 + $0x1d40] sm:$0xff]  ;;  %v1095_v17 = vld [vmem:[%s3667_s4 + $0x1d48] sm:$0xff] }
 0x20e   : > { %v1096_v18 = vld [vmem:[%s3667_s4 + $0x1d50] sm:$0xff]  ;;  %3136 = vst [vmem:[%s3682_s18 + $0x1d10] sm:$0xff] %v2112_v7  ;;  %3137 = vst [vmem:[%s3682_s18 + $0x1d18] sm:$0xff] %v2113_v8  ;;  %v2118_v19 = vmul.f32 0.03125, %v1094_v16  ;;  %v2119_v20 = vmul.f32 0.03125, %v1095_v17  ;;  %v1097_v22 = vld [vmem:[%s3667_s4 + $0x1d58] sm:$0xff] }
 0x20f   : > { %3138 = vst [vmem:[%s3682_s18 + $0x1d20] sm:$0xff] %v2114_v9  ;;  %v2120_v21 = vmul.f32 0.03125, %v1096_v18  ;;  %v1098_v23 = vld [vmem:[%s3667_s4 + $0x1d60] sm:$0xff]  ;;  %v1099_v24 = vld [vmem:[%s3667_s4 + $0x1d68] sm:$0xff]  ;;  %3139 = vst [vmem:[%s3682_s18 + $0x1d28] sm:$0xff] %v2115_v13  ;;  %v2121_v25 = vmul.f32 0.03125, %v1097_v22 }
 0x210   : > { %3140 = vst [vmem:[%s3682_s18 + $0x1d30] sm:$0xff] %v2116_v14  ;;  %3141 = vst [vmem:[%s3682_s18 + $0x1d38] sm:$0xff] %v2117_v15  ;;  %v2122_v26 = vmul.f32 0.03125, %v1098_v23  ;;  %v2123_v27 = vmul.f32 0.03125, %v1099_v24  ;;  %v1100_v28 = vld [vmem:[%s3667_s4 + $0x1d70] sm:$0xff]  ;;  %v1101_v29 = vld [vmem:[%s3667_s4 + $0x1d78] sm:$0xff] }
 0x211   : > { %v1102_v30 = vld [vmem:[%s3667_s4 + $0x1d80] sm:$0xff]  ;;  %3142 = vst [vmem:[%s3682_s18 + $0x1d40] sm:$0xff] %v2118_v19  ;;  %3143 = vst [vmem:[%s3682_s18 + $0x1d48] sm:$0xff] %v2119_v20  ;;  %v2124_v31 = vmul.f32 0.03125, %v1100_v28  ;;  %v2125_v32 = vmul.f32 0.03125, %v1101_v29  ;;  %v1103_v34 = vld [vmem:[%s3667_s4 + $0x1d88] sm:$0xff] }
 0x212   : > { %3144 = vst [vmem:[%s3682_s18 + $0x1d50] sm:$0xff] %v2120_v21  ;;  %v2126_v33 = vmul.f32 0.03125, %v1102_v30  ;;  %v1104_v35 = vld [vmem:[%s3667_s4 + $0x1d90] sm:$0xff]  ;;  %v1105_v36 = vld [vmem:[%s3667_s4 + $0x1d98] sm:$0xff]  ;;  %3145 = vst [vmem:[%s3682_s18 + $0x1d58] sm:$0xff] %v2121_v25  ;;  %v2127_v37 = vmul.f32 0.03125, %v1103_v34 }
 0x213   : > { %3146 = vst [vmem:[%s3682_s18 + $0x1d60] sm:$0xff] %v2122_v26  ;;  %3147 = vst [vmem:[%s3682_s18 + $0x1d68] sm:$0xff] %v2123_v27  ;;  %v2128_v38 = vmul.f32 0.03125, %v1104_v35  ;;  %v2129_v39 = vmul.f32 0.03125, %v1105_v36  ;;  %v1106_v40 = vld [vmem:[%s3667_s4 + $0x1da0] sm:$0xff]  ;;  %v1107_v41 = vld [vmem:[%s3667_s4 + $0x1da8] sm:$0xff] }
 0x214   : > { %v1108_v42 = vld [vmem:[%s3667_s4 + $0x1db0] sm:$0xff]  ;;  %3148 = vst [vmem:[%s3682_s18 + $0x1d70] sm:$0xff] %v2124_v31  ;;  %3149 = vst [vmem:[%s3682_s18 + $0x1d78] sm:$0xff] %v2125_v32  ;;  %v2130_v43 = vmul.f32 0.03125, %v1106_v40  ;;  %v2131_v44 = vmul.f32 0.03125, %v1107_v41  ;;  %v1109_v46 = vld [vmem:[%s3667_s4 + $0x1db8] sm:$0xff] }
 0x215   : > { %3150 = vst [vmem:[%s3682_s18 + $0x1d80] sm:$0xff] %v2126_v33  ;;  %v2132_v45 = vmul.f32 0.03125, %v1108_v42  ;;  %v1110_v47 = vld [vmem:[%s3667_s4 + $0x1dc0] sm:$0xff]  ;;  %v1111_v48 = vld [vmem:[%s3667_s4 + $0x1dc8] sm:$0xff]  ;;  %3151 = vst [vmem:[%s3682_s18 + $0x1d88] sm:$0xff] %v2127_v37  ;;  %v2133_v49 = vmul.f32 0.03125, %v1109_v46 }
 0x216   : > { %3152 = vst [vmem:[%s3682_s18 + $0x1d90] sm:$0xff] %v2128_v38  ;;  %3153 = vst [vmem:[%s3682_s18 + $0x1d98] sm:$0xff] %v2129_v39  ;;  %v2134_v50 = vmul.f32 0.03125, %v1110_v47  ;;  %v2135_v51 = vmul.f32 0.03125, %v1111_v48  ;;  %v1112_v52 = vld [vmem:[%s3667_s4 + $0x1dd0] sm:$0xff]  ;;  %v1113_v53 = vld [vmem:[%s3667_s4 + $0x1dd8] sm:$0xff] }
 0x217   : > { %v1114_v54 = vld [vmem:[%s3667_s4 + $0x1de0] sm:$0xff]  ;;  %3154 = vst [vmem:[%s3682_s18 + $0x1da0] sm:$0xff] %v2130_v43  ;;  %3155 = vst [vmem:[%s3682_s18 + $0x1da8] sm:$0xff] %v2131_v44  ;;  %v2136_v55 = vmul.f32 0.03125, %v1112_v52  ;;  %v2137_v56 = vmul.f32 0.03125, %v1113_v53  ;;  %v1115_v58 = vld [vmem:[%s3667_s4 + $0x1de8] sm:$0xff] }
 0x218   : > { %3156 = vst [vmem:[%s3682_s18 + $0x1db0] sm:$0xff] %v2132_v45  ;;  %v2138_v57 = vmul.f32 0.03125, %v1114_v54  ;;  %v1116_v59 = vld [vmem:[%s3667_s4 + $0x1df0] sm:$0xff]  ;;  %v1117_v60 = vld [vmem:[%s3667_s4 + $0x1df8] sm:$0xff]  ;;  %3157 = vst [vmem:[%s3682_s18 + $0x1db8] sm:$0xff] %v2133_v49  ;;  %v2139_v61 = vmul.f32 0.03125, %v1115_v58 }
 0x219   : > { %3158 = vst [vmem:[%s3682_s18 + $0x1dc0] sm:$0xff] %v2134_v50  ;;  %3159 = vst [vmem:[%s3682_s18 + $0x1dc8] sm:$0xff] %v2135_v51  ;;  %v2140_v62 = vmul.f32 0.03125, %v1116_v59  ;;  %v2141_v63 = vmul.f32 0.03125, %v1117_v60  ;;  %v1118_v0 = vld [vmem:[%s3667_s4 + $0x1e00] sm:$0xff]  ;;  %v1119_v1 = vld [vmem:[%s3667_s4 + $0x1e08] sm:$0xff] }
 0x21a   : > { %v1120_v2 = vld [vmem:[%s3667_s4 + $0x1e10] sm:$0xff]  ;;  %3160 = vst [vmem:[%s3682_s18 + $0x1dd0] sm:$0xff] %v2136_v55  ;;  %3161 = vst [vmem:[%s3682_s18 + $0x1dd8] sm:$0xff] %v2137_v56  ;;  %v2142_v3 = vmul.f32 0.03125, %v1118_v0  ;;  %v2143_v4 = vmul.f32 0.03125, %v1119_v1  ;;  %v1121_v6 = vld [vmem:[%s3667_s4 + $0x1e18] sm:$0xff] }
 0x21b   : > { %3162 = vst [vmem:[%s3682_s18 + $0x1de0] sm:$0xff] %v2138_v57  ;;  %v2144_v5 = vmul.f32 0.03125, %v1120_v2  ;;  %v1122_v7 = vld [vmem:[%s3667_s4 + $0x1e20] sm:$0xff]  ;;  %v1123_v8 = vld [vmem:[%s3667_s4 + $0x1e28] sm:$0xff]  ;;  %3163 = vst [vmem:[%s3682_s18 + $0x1de8] sm:$0xff] %v2139_v61  ;;  %v2145_v9 = vmul.f32 0.03125, %v1121_v6 }
 0x21c   : > { %3164 = vst [vmem:[%s3682_s18 + $0x1df0] sm:$0xff] %v2140_v62  ;;  %3165 = vst [vmem:[%s3682_s18 + $0x1df8] sm:$0xff] %v2141_v63  ;;  %v2146_v10 = vmul.f32 0.03125, %v1122_v7  ;;  %v2147_v11 = vmul.f32 0.03125, %v1123_v8  ;;  %v1124_v12 = vld [vmem:[%s3667_s4 + $0x1e30] sm:$0xff]  ;;  %v1125_v13 = vld [vmem:[%s3667_s4 + $0x1e38] sm:$0xff] }
 0x21d   : > { %v1126_v14 = vld [vmem:[%s3667_s4 + $0x1e40] sm:$0xff]  ;;  %3166 = vst [vmem:[%s3682_s18 + $0x1e00] sm:$0xff] %v2142_v3  ;;  %3167 = vst [vmem:[%s3682_s18 + $0x1e08] sm:$0xff] %v2143_v4  ;;  %v2148_v15 = vmul.f32 0.03125, %v1124_v12  ;;  %v2149_v16 = vmul.f32 0.03125, %v1125_v13  ;;  %v1127_v18 = vld [vmem:[%s3667_s4 + $0x1e48] sm:$0xff] }
 0x21e   : > { %3168 = vst [vmem:[%s3682_s18 + $0x1e10] sm:$0xff] %v2144_v5  ;;  %v2150_v17 = vmul.f32 0.03125, %v1126_v14  ;;  %v1128_v19 = vld [vmem:[%s3667_s4 + $0x1e50] sm:$0xff]  ;;  %v1129_v20 = vld [vmem:[%s3667_s4 + $0x1e58] sm:$0xff]  ;;  %3169 = vst [vmem:[%s3682_s18 + $0x1e18] sm:$0xff] %v2145_v9  ;;  %v2151_v21 = vmul.f32 0.03125, %v1127_v18 }
 0x21f   : > { %3170 = vst [vmem:[%s3682_s18 + $0x1e20] sm:$0xff] %v2146_v10  ;;  %3171 = vst [vmem:[%s3682_s18 + $0x1e28] sm:$0xff] %v2147_v11  ;;  %v2152_v22 = vmul.f32 0.03125, %v1128_v19  ;;  %v2153_v23 = vmul.f32 0.03125, %v1129_v20  ;;  %v1130_v24 = vld [vmem:[%s3667_s4 + $0x1e60] sm:$0xff]  ;;  %v1131_v25 = vld [vmem:[%s3667_s4 + $0x1e68] sm:$0xff] }
 0x220   : > { %v1132_v26 = vld [vmem:[%s3667_s4 + $0x1e70] sm:$0xff]  ;;  %3172 = vst [vmem:[%s3682_s18 + $0x1e30] sm:$0xff] %v2148_v15  ;;  %3173 = vst [vmem:[%s3682_s18 + $0x1e38] sm:$0xff] %v2149_v16  ;;  %v2154_v27 = vmul.f32 0.03125, %v1130_v24  ;;  %v2155_v28 = vmul.f32 0.03125, %v1131_v25  ;;  %v1133_v30 = vld [vmem:[%s3667_s4 + $0x1e78] sm:$0xff] }
 0x221   : > { %3174 = vst [vmem:[%s3682_s18 + $0x1e40] sm:$0xff] %v2150_v17  ;;  %v2156_v29 = vmul.f32 0.03125, %v1132_v26  ;;  %v1134_v31 = vld [vmem:[%s3667_s4 + $0x1e80] sm:$0xff]  ;;  %v1135_v32 = vld [vmem:[%s3667_s4 + $0x1e88] sm:$0xff]  ;;  %3175 = vst [vmem:[%s3682_s18 + $0x1e48] sm:$0xff] %v2151_v21  ;;  %v2157_v33 = vmul.f32 0.03125, %v1133_v30 }
 0x222   : > { %3176 = vst [vmem:[%s3682_s18 + $0x1e50] sm:$0xff] %v2152_v22  ;;  %3177 = vst [vmem:[%s3682_s18 + $0x1e58] sm:$0xff] %v2153_v23  ;;  %v2158_v34 = vmul.f32 0.03125, %v1134_v31  ;;  %v2159_v35 = vmul.f32 0.03125, %v1135_v32  ;;  %v1136_v36 = vld [vmem:[%s3667_s4 + $0x1e90] sm:$0xff]  ;;  %v1137_v37 = vld [vmem:[%s3667_s4 + $0x1e98] sm:$0xff] }
 0x223   : > { %v1138_v38 = vld [vmem:[%s3667_s4 + $0x1ea0] sm:$0xff]  ;;  %3178 = vst [vmem:[%s3682_s18 + $0x1e60] sm:$0xff] %v2154_v27  ;;  %3179 = vst [vmem:[%s3682_s18 + $0x1e68] sm:$0xff] %v2155_v28  ;;  %v2160_v39 = vmul.f32 0.03125, %v1136_v36  ;;  %v2161_v40 = vmul.f32 0.03125, %v1137_v37  ;;  %v1139_v42 = vld [vmem:[%s3667_s4 + $0x1ea8] sm:$0xff] }
 0x224   : > { %3180 = vst [vmem:[%s3682_s18 + $0x1e70] sm:$0xff] %v2156_v29  ;;  %v2162_v41 = vmul.f32 0.03125, %v1138_v38  ;;  %v1140_v43 = vld [vmem:[%s3667_s4 + $0x1eb0] sm:$0xff]  ;;  %v1141_v44 = vld [vmem:[%s3667_s4 + $0x1eb8] sm:$0xff]  ;;  %3181 = vst [vmem:[%s3682_s18 + $0x1e78] sm:$0xff] %v2157_v33  ;;  %v2163_v45 = vmul.f32 0.03125, %v1139_v42 }
 0x225   : > { %3182 = vst [vmem:[%s3682_s18 + $0x1e80] sm:$0xff] %v2158_v34  ;;  %3183 = vst [vmem:[%s3682_s18 + $0x1e88] sm:$0xff] %v2159_v35  ;;  %v2164_v46 = vmul.f32 0.03125, %v1140_v43  ;;  %v2165_v47 = vmul.f32 0.03125, %v1141_v44  ;;  %v1142_v48 = vld [vmem:[%s3667_s4 + $0x1ec0] sm:$0xff]  ;;  %v1143_v49 = vld [vmem:[%s3667_s4 + $0x1ec8] sm:$0xff] }
 0x226   : > { %v1144_v50 = vld [vmem:[%s3667_s4 + $0x1ed0] sm:$0xff]  ;;  %3184 = vst [vmem:[%s3682_s18 + $0x1e90] sm:$0xff] %v2160_v39  ;;  %3185 = vst [vmem:[%s3682_s18 + $0x1e98] sm:$0xff] %v2161_v40  ;;  %v2166_v51 = vmul.f32 0.03125, %v1142_v48  ;;  %v2167_v52 = vmul.f32 0.03125, %v1143_v49  ;;  %v1145_v54 = vld [vmem:[%s3667_s4 + $0x1ed8] sm:$0xff] }
 0x227   : > { %3186 = vst [vmem:[%s3682_s18 + $0x1ea0] sm:$0xff] %v2162_v41  ;;  %v2168_v53 = vmul.f32 0.03125, %v1144_v50  ;;  %v1146_v55 = vld [vmem:[%s3667_s4 + $0x1ee0] sm:$0xff]  ;;  %v1147_v56 = vld [vmem:[%s3667_s4 + $0x1ee8] sm:$0xff]  ;;  %3187 = vst [vmem:[%s3682_s18 + $0x1ea8] sm:$0xff] %v2163_v45  ;;  %v2169_v57 = vmul.f32 0.03125, %v1145_v54 }
 0x228   : > { %3188 = vst [vmem:[%s3682_s18 + $0x1eb0] sm:$0xff] %v2164_v46  ;;  %3189 = vst [vmem:[%s3682_s18 + $0x1eb8] sm:$0xff] %v2165_v47  ;;  %v2170_v58 = vmul.f32 0.03125, %v1146_v55  ;;  %v2171_v59 = vmul.f32 0.03125, %v1147_v56  ;;  %v1148_v60 = vld [vmem:[%s3667_s4 + $0x1ef0] sm:$0xff]  ;;  %v1149_v61 = vld [vmem:[%s3667_s4 + $0x1ef8] sm:$0xff] }
 0x229   : > { %v1150_v62 = vld [vmem:[%s3667_s4 + $0x1f00] sm:$0xff]  ;;  %3190 = vst [vmem:[%s3682_s18 + $0x1ec0] sm:$0xff] %v2166_v51  ;;  %3191 = vst [vmem:[%s3682_s18 + $0x1ec8] sm:$0xff] %v2167_v52  ;;  %v2172_v63 = vmul.f32 0.03125, %v1148_v60  ;;  %v2173_v0 = vmul.f32 0.03125, %v1149_v61  ;;  %v1151_v2 = vld [vmem:[%s3667_s4 + $0x1f08] sm:$0xff] }
 0x22a   : > { %3192 = vst [vmem:[%s3682_s18 + $0x1ed0] sm:$0xff] %v2168_v53  ;;  %v2174_v1 = vmul.f32 0.03125, %v1150_v62  ;;  %v1152_v3 = vld [vmem:[%s3667_s4 + $0x1f10] sm:$0xff]  ;;  %v1153_v4 = vld [vmem:[%s3667_s4 + $0x1f18] sm:$0xff]  ;;  %3193 = vst [vmem:[%s3682_s18 + $0x1ed8] sm:$0xff] %v2169_v57  ;;  %v2175_v5 = vmul.f32 0.03125, %v1151_v2 }
 0x22b   : > { %3194 = vst [vmem:[%s3682_s18 + $0x1ee0] sm:$0xff] %v2170_v58  ;;  %3195 = vst [vmem:[%s3682_s18 + $0x1ee8] sm:$0xff] %v2171_v59  ;;  %v2176_v6 = vmul.f32 0.03125, %v1152_v3  ;;  %v2177_v7 = vmul.f32 0.03125, %v1153_v4  ;;  %v1154_v8 = vld [vmem:[%s3667_s4 + $0x1f20] sm:$0xff]  ;;  %v1155_v9 = vld [vmem:[%s3667_s4 + $0x1f28] sm:$0xff] }
 0x22c   : > { %v1156_v10 = vld [vmem:[%s3667_s4 + $0x1f30] sm:$0xff]  ;;  %3196 = vst [vmem:[%s3682_s18 + $0x1ef0] sm:$0xff] %v2172_v63  ;;  %3197 = vst [vmem:[%s3682_s18 + $0x1ef8] sm:$0xff] %v2173_v0  ;;  %v2178_v11 = vmul.f32 0.03125, %v1154_v8  ;;  %v2179_v12 = vmul.f32 0.03125, %v1155_v9  ;;  %v1157_v14 = vld [vmem:[%s3667_s4 + $0x1f38] sm:$0xff] }
 0x22d   : > { %3198 = vst [vmem:[%s3682_s18 + $0x1f00] sm:$0xff] %v2174_v1  ;;  %v2180_v13 = vmul.f32 0.03125, %v1156_v10  ;;  %v1158_v15 = vld [vmem:[%s3667_s4 + $0x1f40] sm:$0xff]  ;;  %v1159_v16 = vld [vmem:[%s3667_s4 + $0x1f48] sm:$0xff]  ;;  %3199 = vst [vmem:[%s3682_s18 + $0x1f08] sm:$0xff] %v2175_v5  ;;  %v2181_v17 = vmul.f32 0.03125, %v1157_v14 }
 0x22e   : > { %3200 = vst [vmem:[%s3682_s18 + $0x1f10] sm:$0xff] %v2176_v6  ;;  %3201 = vst [vmem:[%s3682_s18 + $0x1f18] sm:$0xff] %v2177_v7  ;;  %v2182_v18 = vmul.f32 0.03125, %v1158_v15  ;;  %v2183_v19 = vmul.f32 0.03125, %v1159_v16  ;;  %v1160_v20 = vld [vmem:[%s3667_s4 + $0x1f50] sm:$0xff]  ;;  %v1161_v21 = vld [vmem:[%s3667_s4 + $0x1f58] sm:$0xff] }
 0x22f   : > { %v1162_v22 = vld [vmem:[%s3667_s4 + $0x1f60] sm:$0xff]  ;;  %3202 = vst [vmem:[%s3682_s18 + $0x1f20] sm:$0xff] %v2178_v11  ;;  %3203 = vst [vmem:[%s3682_s18 + $0x1f28] sm:$0xff] %v2179_v12  ;;  %v2184_v23 = vmul.f32 0.03125, %v1160_v20  ;;  %v2185_v24 = vmul.f32 0.03125, %v1161_v21  ;;  %v1163_v26 = vld [vmem:[%s3667_s4 + $0x1f68] sm:$0xff] }
 0x230   : > { %3204 = vst [vmem:[%s3682_s18 + $0x1f30] sm:$0xff] %v2180_v13  ;;  %v2186_v25 = vmul.f32 0.03125, %v1162_v22  ;;  %v1164_v27 = vld [vmem:[%s3667_s4 + $0x1f70] sm:$0xff]  ;;  %v1165_v28 = vld [vmem:[%s3667_s4 + $0x1f78] sm:$0xff]  ;;  %3205 = vst [vmem:[%s3682_s18 + $0x1f38] sm:$0xff] %v2181_v17  ;;  %v2187_v29 = vmul.f32 0.03125, %v1163_v26 }
 0x231   : > { %3206 = vst [vmem:[%s3682_s18 + $0x1f40] sm:$0xff] %v2182_v18  ;;  %3207 = vst [vmem:[%s3682_s18 + $0x1f48] sm:$0xff] %v2183_v19  ;;  %v2188_v30 = vmul.f32 0.03125, %v1164_v27  ;;  %v2189_v31 = vmul.f32 0.03125, %v1165_v28  ;;  %v1166_v32 = vld [vmem:[%s3667_s4 + $0x1f80] sm:$0xff]  ;;  %v1167_v33 = vld [vmem:[%s3667_s4 + $0x1f88] sm:$0xff] }
 0x232   : > { %v1168_v34 = vld [vmem:[%s3667_s4 + $0x1f90] sm:$0xff]  ;;  %3208 = vst [vmem:[%s3682_s18 + $0x1f50] sm:$0xff] %v2184_v23  ;;  %3209 = vst [vmem:[%s3682_s18 + $0x1f58] sm:$0xff] %v2185_v24  ;;  %v2190_v35 = vmul.f32 0.03125, %v1166_v32  ;;  %v2191_v36 = vmul.f32 0.03125, %v1167_v33  ;;  %v1169_v38 = vld [vmem:[%s3667_s4 + $0x1f98] sm:$0xff] }
 0x233   : > { %3210 = vst [vmem:[%s3682_s18 + $0x1f60] sm:$0xff] %v2186_v25  ;;  %v2192_v37 = vmul.f32 0.03125, %v1168_v34  ;;  %v1170_v39 = vld [vmem:[%s3667_s4 + $0x1fa0] sm:$0xff]  ;;  %v1171_v40 = vld [vmem:[%s3667_s4 + $0x1fa8] sm:$0xff]  ;;  %3211 = vst [vmem:[%s3682_s18 + $0x1f68] sm:$0xff] %v2187_v29  ;;  %v2193_v41 = vmul.f32 0.03125, %v1169_v38 }
 0x234   : > { %3212 = vst [vmem:[%s3682_s18 + $0x1f70] sm:$0xff] %v2188_v30  ;;  %3213 = vst [vmem:[%s3682_s18 + $0x1f78] sm:$0xff] %v2189_v31  ;;  %v2194_v42 = vmul.f32 0.03125, %v1170_v39  ;;  %v2195_v43 = vmul.f32 0.03125, %v1171_v40  ;;  %v1172_v44 = vld [vmem:[%s3667_s4 + $0x1fb0] sm:$0xff]  ;;  %v1173_v45 = vld [vmem:[%s3667_s4 + $0x1fb8] sm:$0xff] }
 0x235   : > { %v1174_v46 = vld [vmem:[%s3667_s4 + $0x1fc0] sm:$0xff]  ;;  %3214 = vst [vmem:[%s3682_s18 + $0x1f80] sm:$0xff] %v2190_v35  ;;  %3215 = vst [vmem:[%s3682_s18 + $0x1f88] sm:$0xff] %v2191_v36  ;;  %v2196_v47 = vmul.f32 0.03125, %v1172_v44  ;;  %v2197_v48 = vmul.f32 0.03125, %v1173_v45  ;;  %v1175_v50 = vld [vmem:[%s3667_s4 + $0x1fc8] sm:$0xff] }
 0x236   : > { %3216 = vst [vmem:[%s3682_s18 + $0x1f90] sm:$0xff] %v2192_v37  ;;  %v2198_v49 = vmul.f32 0.03125, %v1174_v46  ;;  %v1176_v51 = vld [vmem:[%s3667_s4 + $0x1fd0] sm:$0xff]  ;;  %v1177_v52 = vld [vmem:[%s3667_s4 + $0x1fd8] sm:$0xff]  ;;  %3217 = vst [vmem:[%s3682_s18 + $0x1f98] sm:$0xff] %v2193_v41  ;;  %v2199_v53 = vmul.f32 0.03125, %v1175_v50 }
 0x237   : > { %3218 = vst [vmem:[%s3682_s18 + $0x1fa0] sm:$0xff] %v2194_v42  ;;  %3219 = vst [vmem:[%s3682_s18 + $0x1fa8] sm:$0xff] %v2195_v43  ;;  %v2200_v54 = vmul.f32 0.03125, %v1176_v51  ;;  %v2201_v55 = vmul.f32 0.03125, %v1177_v52  ;;  %v1178_v56 = vld [vmem:[%s3667_s4 + $0x1fe0] sm:$0xff]  ;;  %v1179_v57 = vld [vmem:[%s3667_s4 + $0x1fe8] sm:$0xff] }
 0x238   : > { %v1180_v58 = vld [vmem:[%s3667_s4 + $0x1ff0] sm:$0xff]  ;;  %3220 = vst [vmem:[%s3682_s18 + $0x1fb0] sm:$0xff] %v2196_v47  ;;  %3221 = vst [vmem:[%s3682_s18 + $0x1fb8] sm:$0xff] %v2197_v48  ;;  %v2202_v59 = vmul.f32 0.03125, %v1178_v56  ;;  %v2203_v60 = vmul.f32 0.03125, %v1179_v57  ;;  %v1181_v62 = vld [vmem:[%s3667_s4 + $0x1ff8] sm:$0xff] }
 0x239   : > { %3222 = vst [vmem:[%s3682_s18 + $0x1fc0] sm:$0xff] %v2198_v49  ;;  %v2204_v61 = vmul.f32 0.03125, %v1180_v58  ;;  %3223 = vst [vmem:[%s3682_s18 + $0x1fc8] sm:$0xff] %v2199_v53  ;;  %v2205_v63 = vmul.f32 0.03125, %v1181_v62  ;;  %s3231_s9 = scalar_lea.sflag [#allocation4], %s3663_s26  ;;  %s3451_s12 = scalar_lea.vmem %s5729_s5, 131072 }
 0x23a   : > { %3224 = vst [vmem:[%s3682_s18 + $0x1fd0] sm:$0xff] %v2200_v54  ;;  %3225 = vst [vmem:[%s3682_s18 + $0x1fd8] sm:$0xff] %v2201_v55  ;;  %p3452_p8 = scmp.ne.s32.totalorder %s5729_s5, %s3451_s12  ;;  %p5788_p9 = scmp.ne.s32.totalorder %s5784_s19, 0 }
 0x23b   : > { %3226 = vst [vmem:[%s3682_s18 + $0x1fe0] sm:$0xff] %v2202_v59  ;;  %3227 = vst [vmem:[%s3682_s18 + $0x1fe8] sm:$0xff] %v2203_v60  ;;  %s3538_s13 = smov [#allocation5]  }
 0x23c   : > { %3228 = vst [vmem:[%s3682_s18 + $0x1ff0] sm:$0xff] %v2204_v61  ;;  %3229 = vst [vmem:[%s3682_s18 + $0x1ff8] sm:$0xff] %v2205_v63  ;;  %p3453_p11 = pnand %p3452_p8, %p5788_p9  ;;  %s3455_s15 = sshll.u32 %s3538_s13, 4  ;;  %s3456_s15 = int_to_ptr.vmem [resolvable:$false] %s3455_s15 }
 0x23d   : > { %s3457_s16 = scalar_lea.vmem %s3456_s15, 262144  ;;  %p3458_p6 = scmp.lt.s32.totalorder %s5729_s5, %s3456_s15 }
 0x23e   : > { %p3454_p0 = pneg %p3453_p11  ;;  %p3459_p13 = scmp.lt.s32.totalorder %s3457_s16, %s3451_s12 }
 0x240   : > { %p3460_p2 = por %p3459_p13, %p3458_p6 }
 0x242   : > { %p3461_p5 = pnand %p3460_p2, %p3454_p0 }
 0x244   : > { %3464 = shalt.err (!%p3461_p5)
}
 0x245   : > { %s3465_s17 = scalar_lea.hbm %s5723_s2, 131072  ;;  %s3469_s24 = scalar_lea.hbm %s5780_s1, 262144 }
 0x246   : > { %p3466_p4 = scmp.ne.s32.totalorder %s5723_s2, %s3465_s17  ;;  %p3470_p12 = scmp.lt.u32.totalorder %s5723_s2, %s5780_s1 }
 0x247   : > { %p3471_p1 = scmp.lt.u32.totalorder %s3469_s24, %s3465_s17  ;;  %p3473_p8 = scmp.lt.u32.totalorder %s3465_s17, %s5723_s2 }
 0x248   : > { %p3467_p7 = pnand %p3466_p4, %p5788_p9 }
 0x249   : > { %p3472_p3 = por %p3471_p1, %p3470_p12 }
 0x24a   : > { %p3468_p10 = pneg %p3467_p7 }
 0x24b   : > { %p3474_p11 = por %p3473_p8, %p3472_p3 }
 0x24d   : > { %p3475_p0 = pnand %p3474_p11, %p3468_p10 }
 0x24f   : > { %3478 = shalt.err (!%p3475_p0)
}
 0x250   : > { %s3539_s3 = smov 1024   ;;  %s3540_s4 = smov 64  }
 0x251   : > { %3357 = dma.vmem_to_hbm [thread:$0]  (%p5788_p9), %s5729_s5, 131072, %s5723_s2, %s3231_s9, %s3539_s3, %s3539_s3, %s3540_s4  }
 0x252 PF: > { %s3262_s18 = sand.u32 1, %s3513_s6   ;;  %p5789_p6 = scmp.ne.s32.totalorder %s5785_s21, 0 }
 0x253   : > { %p5790_p13 = scmp.ge.s32.totalorder %s3533_s11, 2  ;;  %s3263_s27 = scalar_lea.sflag [#allocation4], %s3262_s18 }
 0x255   : > { %p3364_p2 = pnand %p5790_p13, %p5789_p6 }
 0x257   : > { %3508 = dma.done.wait (!%p3364_p2), %s3263_s27, 131072  }
 0x258   : > { %3510 = vsyncadd (!%p3364_p2), %s3263_s27, 4294836224  ;;  %s17_s11 = sadd.s32 1, %s3533_s11   ;;  %s5791_s6 = smov %s3517_s7 }
 0x259   : > { %p14_p5 = scmp.ge.s32.totalorder %s17_s11, 4   ;;  %s5792_s7 = smov %s3521_s8 }
 0x25a   : > { %s5793_s8 = smov %s3607_s20  ;;  %s5794_s9 = smov %s3529_s10 }
 0x25b   : > { %s5795_s10 = smov %s5797_s14  ;;  %16 = sbr.rel (!%p14_p5) target bundleno = 6 (0x6), region = 69 }
 0x262   :  { %3268 = vsyncpa [#allocation3], 1 }
 0x263   :  { %3270 = vsyncpa [#allocation3 + $0x1], 1 }
 0x264   :  { %3271 = vsyncpa [#allocation4], 1 }
 0x265   :  { %3273 = vsyncpa [#allocation4 + $0x1], 1 }

</bundles_post_ra>
